<compile_context>
chip_gen: v6e
topology: v6e:2x2x1
jax: 0.10.0
libtpu: 0.0.40
codegen_flags: <defaults>
</compile_context>

<pallas_src>
import jax
import jax.numpy as jnp
from jax.experimental import pallas as pl
from jax.experimental.pallas import tpu as pltpu

EPS = 1e-5


def _fused_kernel(w_ref, x_ref, s_ref, g_ref, b_ref, o_ref):
    # w_ref: (Cout, Cin)  bf16   1x1 conv weight
    # x_ref: (Cin, M)     f32    flattened input (M = N*H*W)
    # s_ref: (Cin, 1)     f32    per-input-channel scale (x380)
    # g_ref: (Cout, 1)    f32    BN gamma
    # b_ref: (Cout, 1)    f32    BN beta
    # o_ref: (Cout, M)    f32
    xs = (x_ref[...] * s_ref[...]).astype(jnp.bfloat16)      # VPU mul, cast for MXU
    y = jnp.dot(w_ref[...], xs,
                preferred_element_type=jnp.float32)          # (Cout, M) on MXU, f32 acc

    # BatchNorm2d (training): batch statistics over M = N*H*W per out-channel,
    # biased variance -- all in f32.
    mean = jnp.mean(y, axis=1, keepdims=True)                # (Cout, 1)
    diff = y - mean
    var = jnp.mean(diff * diff, axis=1, keepdims=True)       # (Cout, 1)
    inv = jax.lax.rsqrt(var + EPS)
    o_ref[...] = (diff * inv * g_ref[...] + b_ref[...]).astype(o_ref.dtype)


def mul_conv1x1_bn(x_nchw, scale_nc11, w_oi11, gamma, beta):
    """x_nchw: (N, Cin, H, W); scale_nc11: (1, Cin, 1, 1);
    w_oi11: (Cout, Cin, 1, 1); gamma, beta: (Cout,). Returns (N, Cout, H, W)."""
    N, Cin, H, W = x_nchw.shape
    Cout = w_oi11.shape[0]
    M = N * H * W

    # (N, Cin, H, W) -> (Cin, M).  Zero-copy reshape when N == 1.
    if N == 1:
        x2d = x_nchw.reshape(Cin, M).astype(jnp.float32)
    else:
        x2d = jnp.moveaxis(x_nchw, 1, 0).reshape(Cin, M).astype(jnp.float32)

    s2d = scale_nc11.reshape(Cin, 1).astype(jnp.float32)
    w2d = w_oi11.reshape(Cout, Cin).astype(jnp.bfloat16)      # bf16 weight: half the DMA
    g2d = gamma.reshape(Cout, 1).astype(jnp.float32)
    b2d = beta.reshape(Cout, 1).astype(jnp.float32)

    bytes_accessed = (x2d.size * 4 + s2d.size * 4 + w2d.size * 2
                      + g2d.size * 4 + b2d.size * 4 + Cout * M * 4)
    cost = pl.CostEstimate(flops=2 * M * Cin * Cout,
                           transcendentals=0,
                           bytes_accessed=bytes_accessed)

    out2d = pl.pallas_call(
        _fused_kernel,
        out_shape=jax.ShapeDtypeStruct((Cout, M), jnp.float32),
        grid=(1,),
        in_specs=[
            pl.BlockSpec((Cout, Cin), lambda i: (0, 0)),
            pl.BlockSpec((Cin, M), lambda i: (0, 0)),
            pl.BlockSpec((Cin, 1), lambda i: (0, 0)),
            pl.BlockSpec((Cout, 1), lambda i: (0, 0)),
            pl.BlockSpec((Cout, 1), lambda i: (0, 0)),
        ],
        out_specs=pl.BlockSpec((Cout, M), lambda i: (0, 0)),
        compiler_params=pltpu.CompilerParams(
            dimension_semantics=("arbitrary",)),
        cost_estimate=cost,
    )(w2d, x2d, s2d, g2d, b2d)

    # (Cout, M) -> (N, Cout, H, W).  Zero-copy reshape when N == 1.
    if N == 1:
        return out2d.reshape(1, Cout, H, W)
    return jnp.moveaxis(out2d.reshape(Cout, N, H, W), 0, 1)


if __name__ == "__main__":
    key = jax.random.PRNGKey(0)
    k1, k2, k3 = jax.random.split(key, 3)

    N, Cin, H, W, Cout = 1, 1632, 7, 7, 272

    # deterministic synthetic inputs matching the module's forward signature
    x375 = jax.random.normal(k1, (N, Cin, H, W), dtype=jnp.float32)
    x380 = jax.random.normal(k2, (1, Cin, 1, 1), dtype=jnp.float32)

    # deterministic parameter init (Conv2d weight ~ small normal; BN defaults)
    conv_w = 0.02 * jax.random.normal(k3, (Cout, Cin, 1, 1), dtype=jnp.float32)
    gamma = jnp.ones((Cout,), dtype=jnp.float32)
    beta = jnp.zeros((Cout,), dtype=jnp.float32)

    out = mul_conv1x1_bn(x375, x380, conv_w, gamma, beta)
    out = jax.block_until_ready(out)

    # sanity: reference in plain JAX (f32 end-to-end)
    xs = x375 * x380
    y = jnp.einsum('nchw,oc->nohw', xs, conv_w.reshape(Cout, Cin))
    mu = jnp.mean(y, axis=(0, 2, 3), keepdims=True)
    va = jnp.mean((y - mu) ** 2, axis=(0, 2, 3), keepdims=True)
    ref = (y - mu) * jax.lax.rsqrt(va + EPS) * gamma.reshape(1, Cout, 1, 1) \
        + beta.reshape(1, Cout, 1, 1)

    assert out.shape == (N, Cout, H, W)
    # bf16 matmul operands (f32 accumulation) -> slightly looser tolerance
    assert jnp.allclose(out, ref, atol=2e-2, rtol=2e-2)

    print("KERNEL_OK")
</pallas_src>

<mosaic_0001>
module attributes {stable_mosaic.version = 11 : i64} {
  func.func @_fused_kernel(%arg0: i32, %arg1: memref<272x1632xbf16, #tpu.memory_space<vmem>>, %arg2: memref<1632x49xf32, #tpu.memory_space<vmem>>, %arg3: memref<1632x1xf32, #tpu.memory_space<vmem>>, %arg4: memref<272x1xf32, #tpu.memory_space<vmem>>, %arg5: memref<272x1xf32, #tpu.memory_space<vmem>>, %arg6: memref<272x49xf32, #tpu.memory_space<vmem>>) attributes {dimension_semantics = [#tpu.dimension_semantics<arbitrary>], iteration_bounds = array<i64: 1>, scalar_prefetch = 0 : i64, scratch_operands = 0 : i64, tpu.core_type = #tpu.core_type<tc>, window_params = [{pipeline_mode = #tpu.pipeline_mode<synchronous>, transform_indices = @transform_0, window_bounds = array<i64: 272, 1632>}, {pipeline_mode = #tpu.pipeline_mode<synchronous>, transform_indices = @transform_1, window_bounds = array<i64: 1632, 49>}, {pipeline_mode = #tpu.pipeline_mode<synchronous>, transform_indices = @transform_2, window_bounds = array<i64: 1632, 1>}, {pipeline_mode = #tpu.pipeline_mode<synchronous>, transform_indices = @transform_3, window_bounds = array<i64: 272, 1>}, {pipeline_mode = #tpu.pipeline_mode<synchronous>, transform_indices = @transform_4, window_bounds = array<i64: 272, 1>}, {pipeline_mode = #tpu.pipeline_mode<synchronous>, transform_indices = @transform_5, window_bounds = array<i64: 272, 49>}]} {
    %c0 = arith.constant 0 : index
    %c0_0 = arith.constant 0 : index
    %0 = vector.load %arg2[%c0, %c0_0] : memref<1632x49xf32, #tpu.memory_space<vmem>>, vector<1632x49xf32>
    %c0_1 = arith.constant 0 : index
    %c0_2 = arith.constant 0 : index
    %1 = vector.load %arg3[%c0_1, %c0_2] : memref<1632x1xf32, #tpu.memory_space<vmem>>, vector<1632x1xf32>
    %2 = vector.broadcast %1 : vector<1632x1xf32> to vector<1632x49xf32>
    %3 = arith.mulf %0, %2 : vector<1632x49xf32>
    %4 = arith.truncf %3 : vector<1632x49xf32> to vector<1632x49xbf16>
    %c0_3 = arith.constant 0 : index
    %c0_4 = arith.constant 0 : index
    %5 = vector.load %arg1[%c0_3, %c0_4] : memref<272x1632xbf16, #tpu.memory_space<vmem>>, vector<272x1632xbf16>
    %cst = arith.constant dense<0.000000e+00> : vector<272x49xf32>
    %6 = tpu.matmul %5, %4, %cst {dimension_numbers = #tpu.dot_dimension_numbers<[1], [0], [0], [1], [0, 0, 1, 1], [], []>} : vector<272x1632xbf16>, vector<1632x49xbf16>, vector<272x49xf32> -> vector<272x49xf32>
    %cst_5 = arith.constant dense<0.000000e+00> : vector<272xf32>
    %7 = vector.multi_reduction <add>, %6, %cst_5 [1] : vector<272x49xf32> to vector<272xf32>
    %8 = vector.shape_cast %7 : vector<272xf32> to vector<272x1xf32>
    %cst_6 = arith.constant 4.900000e+01 : f32
    %9 = vector.broadcast %cst_6 : f32 to vector<272x1xf32>
    %10 = arith.divf %8, %9 : vector<272x1xf32>
    %11 = vector.broadcast %10 : vector<272x1xf32> to vector<272x49xf32>
    %12 = arith.subf %6, %11 : vector<272x49xf32>
    %13 = arith.mulf %12, %12 : vector<272x49xf32>
    %cst_7 = arith.constant dense<0.000000e+00> : vector<272xf32>
    %14 = vector.multi_reduction <add>, %13, %cst_7 [1] : vector<272x49xf32> to vector<272xf32>
    %15 = vector.shape_cast %14 : vector<272xf32> to vector<272x1xf32>
    %cst_8 = arith.constant 4.900000e+01 : f32
    %16 = vector.broadcast %cst_8 : f32 to vector<272x1xf32>
    %17 = arith.divf %15, %16 : vector<272x1xf32>
    %cst_9 = arith.constant 9.99999974E-6 : f32
    %18 = vector.broadcast %cst_9 : f32 to vector<272x1xf32>
    %19 = arith.addf %17, %18 : vector<272x1xf32>
    %20 = math.rsqrt %19 : vector<272x1xf32>
    %21 = vector.broadcast %20 : vector<272x1xf32> to vector<272x49xf32>
    %22 = arith.mulf %12, %21 : vector<272x49xf32>
    %c0_10 = arith.constant 0 : index
    %c0_11 = arith.constant 0 : index
    %23 = vector.load %arg4[%c0_10, %c0_11] : memref<272x1xf32, #tpu.memory_space<vmem>>, vector<272x1xf32>
    %24 = vector.broadcast %23 : vector<272x1xf32> to vector<272x49xf32>
    %25 = arith.mulf %22, %24 : vector<272x49xf32>
    %c0_12 = arith.constant 0 : index
    %c0_13 = arith.constant 0 : index
    %26 = vector.load %arg5[%c0_12, %c0_13] : memref<272x1xf32, #tpu.memory_space<vmem>>, vector<272x1xf32>
    %27 = vector.broadcast %26 : vector<272x1xf32> to vector<272x49xf32>
    %28 = arith.addf %25, %27 : vector<272x49xf32>
    %c0_14 = arith.constant 0 : index
    %c0_15 = arith.constant 0 : index
    %29 = vector.load %arg6[%c0_14, %c0_15] : memref<272x49xf32, #tpu.memory_space<vmem>>, vector<272x49xf32>
    tpu.vector_store %arg6[%c0_14, %c0_15], %28 {strides = array<i32>} : memref<272x49xf32, #tpu.memory_space<vmem>>, vector<272x49xf32>,
    return
  }
  func.func @transform_0(%arg0: i32) -> (i32, i32) {
    %c0_i32 = arith.constant 0 : i32
    %c0_i32_0 = arith.constant 0 : i32
    %c0_i32_1 = arith.constant 0 : i32
    return %c0_i32, %c0_i32_0 : i32, i32
  }
  func.func @transform_1(%arg0: i32) -> (i32, i32) {
    %c0_i32 = arith.constant 0 : i32
    %c0_i32_0 = arith.constant 0 : i32
    %c0_i32_1 = arith.constant 0 : i32
    return %c0_i32, %c0_i32_0 : i32, i32
  }
  func.func @transform_2(%arg0: i32) -> (i32, i32) {
    %c0_i32 = arith.constant 0 : i32
    %c0_i32_0 = arith.constant 0 : i32
    %c0_i32_1 = arith.constant 0 : i32
    return %c0_i32, %c0_i32_0 : i32, i32
  }
  func.func @transform_3(%arg0: i32) -> (i32, i32) {
    %c0_i32 = arith.constant 0 : i32
    %c0_i32_0 = arith.constant 0 : i32
    %c0_i32_1 = arith.constant 0 : i32
    return %c0_i32, %c0_i32_0 : i32, i32
  }
  func.func @transform_4(%arg0: i32) -> (i32, i32) {
    %c0_i32 = arith.constant 0 : i32
    %c0_i32_0 = arith.constant 0 : i32
    %c0_i32_1 = arith.constant 0 : i32
    return %c0_i32, %c0_i32_0 : i32, i32
  }
  func.func @transform_5(%arg0: i32) -> (i32, i32) {
    %c0_i32 = arith.constant 0 : i32
    %c0_i32_0 = arith.constant 0 : i32
    %c0_i32_1 = arith.constant 0 : i32
    return %c0_i32, %c0_i32_0 : i32, i32
  }
}

</mosaic_0001>

<bundles_post_ra>
// kernel: tpu_custom_call.1
= control target key start
LH: loop header
LB: loop body
LE: loop exit
PB: predicated region body
PF: predicated region fallthrough
CT: control target
= control target key end

     0   :  { %v6060_v0 = vmov 0   ;;  %vm6062_vm0 = vmmov 0   ;;  %vm3098_vm1 = vcmask 785408   ;;  %vm4333_vm2 = vcmask 400384   ;;  %s9906_s2 = inlined_call_operand.vmem [shape: f32[1632,1], index: 2, kind: input, shape index: {}]   ;;  %s9907_s0 = inlined_call_operand.vmem [shape: bf16[272,1632], index: 0, kind: input, shape index: {}]   ;;  %s9908_s1 = inlined_call_operand.vmem [shape: f32[1632,49], index: 1, kind: input, shape index: {}]   ;;  %s9909_s3 = inlined_call_operand.vmem [shape: f32[272,1], index: 3, kind: input, shape index: {}]   ;;  %s9910_s4 = inlined_call_operand.vmem [shape: f32[272,1], index: 4, kind: input, shape index: {}]   ;;  %s9911_s5 = inlined_call_operand.vmem [shape: f32[272,49], index: 5, kind: output, shape index: {}]  }
   0x1   :  { %5668 = vset.pattern.permute.xlu1 %v6060_v0  ;;  %5667 = vset.pattern.permute.xlu0 %v6060_v0  ;;  %v227_v1 = vld [vmem:[%s9906_s2 + $0x10] sm:$0xff]  ;;  %v225_v2 = vld [vmem:[%s9906_s2] sm:$0xff]  ;;  %v228_v3 = vld [vmem:[%s9906_s2 + $0x18] sm:$0xff] }
   0x2   :  { %441 = vperm.xlu1 %5668, %v227_v1   ;;  %431 = vperm.xlu0 %5667, %v225_v2   ;;  %v226_v4 = vld [vmem:[%s9906_s2 + $0x8] sm:$0xff]  ;;  %v229_v6 = vld [vmem:[%s9906_s2 + $0x20] sm:$0xff]  ;;  %v232_v7 = vld [vmem:[%s9906_s2 + $0x38] sm:$0xff] }
   0x3   :  { %3150 = vmatprep.subr.bf16.mxu0 %v6060_v0  ;;  %5632 = vmatprep.subr.bf16.mxu1 %v6060_v0  ;;  %v230_v5 = vld [vmem:[%s9906_s2 + $0x28] sm:$0xff]  ;;  %v231_v8 = vld [vmem:[%s9906_s2 + $0x30] sm:$0xff]  ;;  %v233_v10 = vld [vmem:[%s9906_s2 + $0x40] sm:$0xff] }
   0x4   :  { %v234_v9 = vld [vmem:[%s9906_s2 + $0x48] sm:$0xff]  ;;  %v236_v11 = vld [vmem:[%s9906_s2 + $0x58] sm:$0xff]  ;;  %v235_v12 = vld [vmem:[%s9906_s2 + $0x50] sm:$0xff] }
   0x5   :  { %v238_v13 = vld [vmem:[%s9906_s2 + $0x68] sm:$0xff]  ;;  %v237_v14 = vld [vmem:[%s9906_s2 + $0x60] sm:$0xff]  ;;  %v240_v15 = vld [vmem:[%s9906_s2 + $0x78] sm:$0xff] }
   0x6   :  { %446 = vperm.xlu1 %5668, %v228_v3   ;;  %436 = vperm.xlu0 %5667, %v226_v4   ;;  %v239_v16 = vld [vmem:[%s9906_s2 + $0x70] sm:$0xff]  ;;  %v242_v17 = vld [vmem:[%s9906_s2 + $0x88] sm:$0xff]  ;;  %v241_v18 = vld [vmem:[%s9906_s2 + $0x80] sm:$0xff] }
   0x7   :  { %v244_v19 = vld [vmem:[%s9906_s2 + $0x98] sm:$0xff]  ;;  %v243_v20 = vld [vmem:[%s9906_s2 + $0x90] sm:$0xff]  ;;  %v246_v21 = vld [vmem:[%s9906_s2 + $0xa8] sm:$0xff] }
   0x8   :  { %v245_v22 = vld [vmem:[%s9906_s2 + $0xa0] sm:$0xff]  ;;  %v248_v23 = vld [vmem:[%s9906_s2 + $0xb8] sm:$0xff]  ;;  %v247_v24 = vld [vmem:[%s9906_s2 + $0xb0] sm:$0xff] }
   0x9   :  { %v250_v25 = vld [vmem:[%s9906_s2 + $0xc8] sm:$0xff]  ;;  %v249_v26 = vld [vmem:[%s9906_s2 + $0xc0] sm:$0xff]  ;;  %v252_v27 = vld [vmem:[%s9906_s2 + $0xd8] sm:$0xff] }
   0xa   :  { %456 = vperm.xlu1 %5668, %v230_v5   ;;  %451 = vperm.xlu0 %5667, %v229_v6   ;;  %v251_v28 = vld [vmem:[%s9906_s2 + $0xd0] sm:$0xff]  ;;  %v254_v29 = vld [vmem:[%s9906_s2 + $0xe8] sm:$0xff]  ;;  %v253_v30 = vld [vmem:[%s9906_s2 + $0xe0] sm:$0xff] }
   0xb   :  { %v256_v31 = vld [vmem:[%s9906_s2 + $0xf8] sm:$0xff]  ;;  %v255_v32 = vld [vmem:[%s9906_s2 + $0xf0] sm:$0xff]  ;;  %v258_v33 = vld [vmem:[%s9906_s2 + $0x108] sm:$0xff] }
   0xc   :  { %v257_v34 = vld [vmem:[%s9906_s2 + $0x100] sm:$0xff]  ;;  %v260_v35 = vld [vmem:[%s9906_s2 + $0x118] sm:$0xff]  ;;  %v259_v36 = vld [vmem:[%s9906_s2 + $0x110] sm:$0xff] }
   0xd   :  { %v262_v37 = vld [vmem:[%s9906_s2 + $0x128] sm:$0xff]  ;;  %v261_v38 = vld [vmem:[%s9906_s2 + $0x120] sm:$0xff]  ;;  %v264_v39 = vld [vmem:[%s9906_s2 + $0x138] sm:$0xff] }
   0xe   :  { %466 = vperm.xlu1 %5668, %v232_v7   ;;  %461 = vperm.xlu0 %5667, %v231_v8   ;;  %v263_v40 = vld [vmem:[%s9906_s2 + $0x130] sm:$0xff]  ;;  %v266_v41 = vld [vmem:[%s9906_s2 + $0x148] sm:$0xff]  ;;  %v265_v42 = vld [vmem:[%s9906_s2 + $0x140] sm:$0xff] }
   0xf   :  { %v268_v43 = vld [vmem:[%s9906_s2 + $0x158] sm:$0xff]  ;;  %v267_v44 = vld [vmem:[%s9906_s2 + $0x150] sm:$0xff]  ;;  %v270_v45 = vld [vmem:[%s9906_s2 + $0x168] sm:$0xff] }
  0x10   :  { %v269_v46 = vld [vmem:[%s9906_s2 + $0x160] sm:$0xff]  ;;  %v272_v47 = vld [vmem:[%s9906_s2 + $0x178] sm:$0xff]  ;;  %v271_v48 = vld [vmem:[%s9906_s2 + $0x170] sm:$0xff] }
  0x11   :  { %v5671_v49 = vld [vmem:[%s9907_s0 + $0x344] ss:$52 sps:$4 sm:$0xff]   ;;  %v274_v50 = vld [vmem:[%s9906_s2 + $0x188] sm:$0xff]  ;;  %v275_v53 = vld [vmem:[%s9906_s2 + $0x190] sm:$0xff] }
  0x12   :  { %476 = vperm.xlu1 %5668, %v234_v9   ;;  %471 = vperm.xlu0 %5667, %v233_v10   ;;  %v273_v51 = vld [vmem:[%s9906_s2 + $0x180] sm:$0xff]  ;;  %v276_v52 = vld [vmem:[%s9906_s2 + $0x198] sm:$0xff]  ;;  %v278_v54 = vld [vmem:[%s9906_s2 + $0x1a8] sm:$0xff] }
  0x13   :  { %3246 = vmatprep.mubr.bf16.mxu1 %v5671_v49  ;;  %v277_v55 = vld [vmem:[%s9906_s2 + $0x1a0] sm:$0xff]  ;;  %v280_v56 = vld [vmem:[%s9906_s2 + $0x1b8] sm:$0xff]  ;;  %v279_v57 = vld [vmem:[%s9906_s2 + $0x1b0] sm:$0xff] }
  0x14   :  { %v282_v58 = vld [vmem:[%s9906_s2 + $0x1c8] sm:$0xff]  ;;  %v281_v59 = vld [vmem:[%s9906_s2 + $0x1c0] sm:$0xff]  ;;  %v284_v60 = vld [vmem:[%s9906_s2 + $0x1d8] sm:$0xff] }
  0x15   :  { %v283_v61 = vld [vmem:[%s9906_s2 + $0x1d0] sm:$0xff]  ;;  %v286_v62 = vld [vmem:[%s9906_s2 + $0x1e8] sm:$0xff]  ;;  %v285_v63 = vld [vmem:[%s9906_s2 + $0x1e0] sm:$0xff] }
  0x16   :  { %486 = vperm.xlu1 %5668, %v236_v11   ;;  %481 = vperm.xlu0 %5667, %v235_v12   ;;  %v288_v1 = vld [vmem:[%s9906_s2 + $0x1f8] sm:$0xff]  ;;  %v287_v2 = vld [vmem:[%s9906_s2 + $0x1f0] sm:$0xff]  ;;  %v290_v5 = vld [vmem:[%s9906_s2 + $0x208] sm:$0xff] }
  0x17   :  { %v289_v6 = vld [vmem:[%s9906_s2 + $0x200] sm:$0xff]  ;;  %v292_v9 = vld [vmem:[%s9906_s2 + $0x218] sm:$0xff]  ;;  %v291_v10 = vld [vmem:[%s9906_s2 + $0x210] sm:$0xff] }
  0x18   :  { %v306_v49 = vld [vmem:[%s9906_s2 + $0x288] sm:$0xff] }
  0x1a   :  { %496 = vperm.xlu1 %5668, %v238_v13   ;;  %491 = vperm.xlu0 %5667, %v237_v14   ;;  %v294_v13 = vld [vmem:[%s9906_s2 + $0x228] sm:$0xff]  ;;  %v293_v14 = vld [vmem:[%s9906_s2 + $0x220] sm:$0xff] }
  0x1e   :  { %506 = vperm.xlu1 %5668, %v240_v15   ;;  %501 = vperm.xlu0 %5667, %v239_v16  }
  0x22   :  { %516 = vperm.xlu1 %5668, %v242_v17   ;;  %511 = vperm.xlu0 %5667, %v241_v18   ;;  %v296_v17 = vld [vmem:[%s9906_s2 + $0x238] sm:$0xff]  ;;  %v295_v18 = vld [vmem:[%s9906_s2 + $0x230] sm:$0xff] }
  0x26   :  { %526 = vperm.xlu1 %5668, %v244_v19   ;;  %521 = vperm.xlu0 %5667, %v243_v20  }
  0x2a   :  { %536 = vperm.xlu1 %5668, %v246_v21   ;;  %531 = vperm.xlu0 %5667, %v245_v22   ;;  %v298_v21 = vld [vmem:[%s9906_s2 + $0x248] sm:$0xff]  ;;  %v297_v22 = vld [vmem:[%s9906_s2 + $0x240] sm:$0xff] }
  0x2e   :  { %546 = vperm.xlu1 %5668, %v248_v23   ;;  %541 = vperm.xlu0 %5667, %v247_v24  }
  0x32   :  { %556 = vperm.xlu1 %5668, %v250_v25   ;;  %551 = vperm.xlu0 %5667, %v249_v26   ;;  %v300_v25 = vld [vmem:[%s9906_s2 + $0x258] sm:$0xff]  ;;  %v299_v26 = vld [vmem:[%s9906_s2 + $0x250] sm:$0xff] }
  0x36   :  { %566 = vperm.xlu1 %5668, %v252_v27   ;;  %561 = vperm.xlu0 %5667, %v251_v28  }
  0x3a   :  { %576 = vperm.xlu1 %5668, %v254_v29   ;;  %571 = vperm.xlu0 %5667, %v253_v30   ;;  %v5695_v29 = vld [vmem:[%s9907_s0 + $0x4] ss:$52 sps:$4 sm:$0xff]  }
  0x3b   :  { %v36_v30 = vld [vmem:[%s9908_s1 + $0x78] sm:$0xff]  ;;  %3182 = vmatprep.mubr.bf16.mxu0 %v5695_v29 }
  0x3e   :  { %586 = vperm.xlu1 %5668, %v256_v31   ;;  %581 = vperm.xlu0 %5667, %v255_v32   ;;  %v35_v31 = vld [vmem:[%s9908_s1 + $0x70] sm:$0xff]  ;;  %v302_v32 = vld [vmem:[%s9906_s2 + $0x268] sm:$0xff] }
  0x42   :  { %596 = vperm.xlu1 %5668, %v258_v33   ;;  %591 = vperm.xlu0 %5667, %v257_v34   ;;  %v301_v33 = vld [vmem:[%s9906_s2 + $0x260] sm:$0xff] }
  0x46   :  { %606 = vperm.xlu1 %5668, %v260_v35   ;;  %601 = vperm.xlu0 %5667, %v259_v36   ;;  %v34_v36 = vld [vmem:[%s9908_s1 + $0x68] sm:$0xff] }
  0x4a   :  { %616 = vperm.xlu1 %5668, %v262_v37   ;;  %611 = vperm.xlu0 %5667, %v261_v38   ;;  %v33_v37 = vld [vmem:[%s9908_s1 + $0x60] sm:$0xff] }
  0x4e   :  { %626 = vperm.xlu1 %5668, %v264_v39   ;;  %621 = vperm.xlu0 %5667, %v263_v40   ;;  %v304_v40 = vld [vmem:[%s9906_s2 + $0x278] sm:$0xff] }
  0x52   :  { %636 = vperm.xlu1 %5668, %v266_v41   ;;  %631 = vperm.xlu0 %5667, %v265_v42   ;;  %v303_v41 = vld [vmem:[%s9906_s2 + $0x270] sm:$0xff] }
  0x56   :  { %646 = vperm.xlu1 %5668, %v268_v43   ;;  %641 = vperm.xlu0 %5667, %v267_v44  }
  0x5a   :  { %656 = vperm.xlu1 %5668, %v270_v45   ;;  %651 = vperm.xlu0 %5667, %v269_v46  }
  0x5e   :  { %666 = vperm.xlu1 %5668, %v272_v47   ;;  %661 = vperm.xlu0 %5667, %v271_v48   ;;  %v32_v47 = vld [vmem:[%s9908_s1 + $0x58] sm:$0xff]  ;;  %v31_v48 = vld [vmem:[%s9908_s1 + $0x50] sm:$0xff] }
  0x62   :  { %676 = vperm.xlu1 %5668, %v274_v50   ;;  %671 = vperm.xlu0 %5667, %v273_v51   ;;  %v305_v50 = vld [vmem:[%s9906_s2 + $0x280] sm:$0xff] }
  0x66   :  { %686 = vperm.xlu1 %5668, %v276_v52   ;;  %681 = vperm.xlu0 %5667, %v275_v53  }
  0x6a   :  { %696 = vperm.xlu1 %5668, %v278_v54   ;;  %691 = vperm.xlu0 %5667, %v277_v55  }
  0x6e   :  { %706 = vperm.xlu1 %5668, %v280_v56   ;;  %701 = vperm.xlu0 %5667, %v279_v57   ;;  %v30_v56 = vld [vmem:[%s9908_s1 + $0x48] sm:$0xff]  ;;  %v29_v57 = vld [vmem:[%s9908_s1 + $0x40] sm:$0xff] }
  0x72   :  { %716 = vperm.xlu1 %5668, %v282_v58   ;;  %711 = vperm.xlu0 %5667, %v281_v59   ;;  %v308_v58 = vld [vmem:[%s9906_s2 + $0x298] sm:$0xff]  ;;  %v307_v59 = vld [vmem:[%s9906_s2 + $0x290] sm:$0xff] }
  0x76   :  { %726 = vperm.xlu1 %5668, %v284_v60   ;;  %721 = vperm.xlu0 %5667, %v283_v61  }
  0x7a   :  { %736 = vperm.xlu1 %5668, %v286_v62   ;;  %731 = vperm.xlu0 %5667, %v285_v63  }
  0x7d   :  { %v6292_v3 = vpop.permute.xlu1 %441  ;;  %v6294_v4 = vpop.permute.xlu0 %431 }
  0x7e   :  { %746 = vperm.xlu1 %5668, %v288_v1   ;;  %741 = vperm.xlu0 %5667, %v287_v2   ;;  %v28_v2 = vld [vmem:[%s9908_s1 + $0x38] sm:$0xff] }
  0x81   :  { %v6302_v7 = vpop.permute.xlu1 %446  ;;  %v6304_v8 = vpop.permute.xlu0 %436 }
  0x82   :  { %756 = vperm.xlu1 %5668, %v290_v5   ;;  %751 = vperm.xlu0 %5667, %v289_v6   ;;  %v27_v5 = vld [vmem:[%s9908_s1 + $0x30] sm:$0xff]  ;;  %v310_v6 = vld [vmem:[%s9906_s2 + $0x2a8] sm:$0xff] }
  0x85   :  { %v6312_v11 = vpop.permute.xlu1 %456  ;;  %v6314_v12 = vpop.permute.xlu0 %451 }
  0x86   :  { %766 = vperm.xlu1 %5668, %v292_v9   ;;  %761 = vperm.xlu0 %5667, %v291_v10   ;;  %v309_v9 = vld [vmem:[%s9906_s2 + $0x2a0] sm:$0xff] }
  0x89   :  { %v6322_v15 = vpop.permute.xlu1 %466  ;;  %v6324_v16 = vpop.permute.xlu0 %461 }
  0x8a   :  { %776 = vperm.xlu1 %5668, %v294_v13   ;;  %771 = vperm.xlu0 %5667, %v293_v14   ;;  %v1456_v10 = vmul.f32 %v6322_v15, %v28_v2  ;;  %v1455_v13 = vmul.f32 %v6324_v16, %v27_v5  ;;  %v312_v15 = vld [vmem:[%s9906_s2 + $0x2b8] sm:$0xff]  ;;  %v311_v16 = vld [vmem:[%s9906_s2 + $0x2b0] sm:$0xff]  ;;  %v321_v2 = vld [vmem:[%s9906_s2 + $0x300] sm:$0xff] }
  0x8d   :  { %v6332_v19 = vpop.permute.xlu1 %476  ;;  %v6334_v20 = vpop.permute.xlu0 %471 }
  0x8e   :  { %786 = vperm.xlu1 %5668, %v296_v17   ;;  %781 = vperm.xlu0 %5667, %v295_v18   ;;  %v1458_v60 = vmul.f32 %v6332_v19, %v30_v56  ;;  %v1457_v61 = vmul.f32 %v6334_v20, %v29_v57  ;;  %v26_v19 = vld [vmem:[%s9908_s1 + $0x28] sm:$0xff]  ;;  %v25_v20 = vld [vmem:[%s9908_s1 + $0x20] sm:$0xff] }
  0x90   :  { %v1657_v14 = vpack.c.bf16 %v1458_v60, %v1457_v61  ;;  %v48_v60 = vld [vmem:[%s9908_s1 + $0xd8] sm:$0xff]  ;;  %v47_v61 = vld [vmem:[%s9908_s1 + $0xd0] sm:$0xff] }
  0x91   :  { %v487_v23 = vpop.permute.xlu1 %486  ;;  %v482_v24 = vpop.permute.xlu0 %481 }
  0x92   :  { %796 = vperm.xlu1 %5668, %v298_v21   ;;  %791 = vperm.xlu0 %5667, %v297_v22   ;;  %v1460_v51 = vmul.f32 %v487_v23, %v32_v47  ;;  %v1459_v52 = vmul.f32 %v482_v24, %v31_v48  ;;  %v1454_v21 = vmul.f32 %v6312_v11, %v26_v19  ;;  %v314_v11 = vld [vmem:[%s9906_s2 + $0x2c8] sm:$0xff]  ;;  %v45_v19 = vld [vmem:[%s9908_s1 + $0xc0] sm:$0xff] }
  0x93   :  { %v1453_v22 = vmul.f32 %v6314_v12, %v25_v20  ;;  %v1656_v23 = vpack.c.bf16 %v1456_v10, %v1455_v13  ;;  %v313_v12 = vld [vmem:[%s9906_s2 + $0x2c0] sm:$0xff]  ;;  %v50_v48 = vld [vmem:[%s9908_s1 + $0xe8] sm:$0xff]  ;;  %v324_v20 = vld [vmem:[%s9906_s2 + $0x318] sm:$0xff] }
  0x94   :  { %v1658_v62 = vpack.c.bf16 %v1460_v51, %v1459_v52  ;;  %v320_v51 = vld [vmem:[%s9906_s2 + $0x2f8] sm:$0xff]  ;;  %v319_v52 = vld [vmem:[%s9906_s2 + $0x2f0] sm:$0xff] }
  0x95   :  { %v497_v27 = vpop.permute.xlu1 %496  ;;  %v492_v28 = vpop.permute.xlu0 %491  ;;  %v1655_v29 = vpack.c.bf16 %v1454_v21, %v1453_v22 }
  0x96   :  { %806 = vperm.xlu1 %5668, %v300_v25   ;;  %801 = vperm.xlu0 %5667, %v299_v26   ;;  %v1462_v43 = vmul.f32 %v497_v27, %v34_v36  ;;  %v1461_v44 = vmul.f32 %v492_v28, %v33_v37  ;;  %v23_v26 = vld [vmem:[%s9908_s1 + $0x10] sm:$0xff]  ;;  %v24_v27 = vld [vmem:[%s9908_s1 + $0x18] sm:$0xff] }
  0x97   :  { %v1452_v28 = vmul.f32 %v6302_v7, %v24_v27  ;;  %v315_v7 = vld [vmem:[%s9906_s2 + $0x2d0] sm:$0xff]  ;;  %v44_v27 = vld [vmem:[%s9908_s1 + $0xb8] sm:$0xff] }
  0x98   :  { %v1659_v53 = vpack.c.bf16 %v1462_v43, %v1461_v44 }
  0x99   :  { %v507_v34 = vpop.permute.xlu1 %506  ;;  %v502_v35 = vpop.permute.xlu0 %501 }
  0x9a   :  { %v1464_v38 = vmul.f32 %v507_v34, %v36_v30  ;;  %v1463_v39 = vmul.f32 %v502_v35, %v35_v31  ;;  %816 = vperm.xlu1 %5668, %v302_v32   ;;  %811 = vperm.xlu0 %5667, %v301_v33   ;;  %v22_v32 = vld [vmem:[%s9908_s1 + $0x8] sm:$0xff]  ;;  %v316_v33 = vld [vmem:[%s9906_s2 + $0x2d8] sm:$0xff]  ;;  %v1451_v34 = vmul.f32 %v6292_v3, %v23_v26  ;;  %v21_v35 = vld [vmem:[%s9908_s1] sm:$0xff] }
  0x9b   :  { %v1450_v37 = vmul.f32 %v6304_v8, %v22_v32  ;;  %v52_v3 = vld [vmem:[%s9908_s1 + $0xf8] sm:$0xff]  ;;  %v317_v8 = vld [vmem:[%s9906_s2 + $0x2e0] sm:$0xff]  ;;  %v42_v32 = vld [vmem:[%s9908_s1 + $0xa8] sm:$0xff] }
  0x9c   :  { %v1660_v42 = vpack.c.bf16 %v1464_v38, %v1463_v39  ;;  %v1654_v36 = vpack.c.bf16 %v1452_v28, %v1451_v34 }
  0x9d   :  { %v6375_v45 = vpop.permute.xlu1 %516  ;;  %v6377_v46 = vpop.permute.xlu0 %511 }
  0x9e   :  { %826 = vperm.xlu1 %5668, %v304_v40   ;;  %821 = vperm.xlu0 %5667, %v303_v41   ;;  %v51_v40 = vld [vmem:[%s9908_s1 + $0xf0] sm:$0xff]  ;;  %v318_v41 = vld [vmem:[%s9906_s2 + $0x2e8] sm:$0xff] }
  0x9f   :  { %3151 = vmatpush1.bf16.msra.mxu0 %v1660_v42  ;;  %5648 = vmatpush1.bf16.msra.mxu1 %v1660_v42  ;;  %v1449_v42 = vmul.f32 %v6294_v4, %v21_v35  ;;  %v49_v4 = vld [vmem:[%s9908_s1 + $0xe0] sm:$0xff] }
  0xa0   :  { %3152 = vmatprep.subr.bf16.mxu0 %v6060_v0  ;;  %5633 = vmatprep.subr.bf16.mxu1 %v6060_v0 }
  0xa1   :  { %v6393_v54 = vpop.permute.xlu1 %526  ;;  %v6395_v55 = vpop.permute.xlu0 %521  ;;  %v1653_v43 = vpack.c.bf16 %v1450_v37, %v1449_v42 }
  0xa2   :  { %836 = vperm.xlu1 %5668, %v306_v49   ;;  %831 = vperm.xlu0 %5667, %v305_v50  }
  0xa3   :  { %3153 = vmatpush1.bf16.msra.mxu0 %v1659_v53  ;;  %5649 = vmatpush1.bf16.msra.mxu1 %v1659_v53 }
  0xa4   :  { %3154 = vmatprep.subr.bf16.mxu0 %v6060_v0  ;;  %5634 = vmatprep.subr.bf16.mxu1 %v6060_v0 }
  0xa5   :  { %v6413_v63 = vpop.permute.xlu1 %536  ;;  %v6415_v1 = vpop.permute.xlu0 %531 }
  0xa6   :  { %846 = vperm.xlu1 %5668, %v308_v58   ;;  %841 = vperm.xlu0 %5667, %v307_v59   ;;  %v1470_v34 = vmul.f32 %v6413_v63, %v42_v32  ;;  %v330_v63 = vld [vmem:[%s9906_s2 + $0x348] sm:$0xff] }
  0xa7   :  { %3155 = vmatpush1.bf16.msra.mxu0 %v1658_v62  ;;  %5650 = vmatpush1.bf16.msra.mxu1 %v1658_v62  ;;  %v322_v62 = vld [vmem:[%s9906_s2 + $0x308] sm:$0xff] }
  0xa8   :  { %3156 = vmatprep.subr.bf16.mxu0 %v6060_v0  ;;  %5635 = vmatprep.subr.bf16.mxu1 %v6060_v0 }
  0xa9   :  { %v6433_v17 = vpop.permute.xlu1 %546  ;;  %v6435_v18 = vpop.permute.xlu0 %541 }
  0xaa   :  { %856 = vperm.xlu1 %5668, %v310_v6   ;;  %851 = vperm.xlu0 %5667, %v309_v9  }
  0xab   :  { %3157 = vmatpush1.bf16.msra.mxu0 %v1657_v14  ;;  %5651 = vmatpush1.bf16.msra.mxu1 %v1657_v14  ;;  %v46_v14 = vld [vmem:[%s9908_s1 + $0xc8] sm:$0xff] }
  0xac   :  { %3158 = vmatprep.subr.bf16.mxu0 %v6060_v0  ;;  %5636 = vmatprep.subr.bf16.mxu1 %v6060_v0 }
  0xad   :  { %v6453_v24 = vpop.permute.xlu1 %556  ;;  %v6455_v25 = vpop.permute.xlu0 %551 }
  0xae   :  { %866 = vperm.xlu1 %5668, %v312_v15   ;;  %861 = vperm.xlu0 %5667, %v311_v16   ;;  %v323_v15 = vld [vmem:[%s9906_s2 + $0x310] sm:$0xff]  ;;  %v1474_v16 = vmul.f32 %v6453_v24, %v46_v14  ;;  %v1473_v21 = vmul.f32 %v6455_v25, %v45_v19  ;;  %v326_v24 = vld [vmem:[%s9906_s2 + $0x328] sm:$0xff]  ;;  %v325_v25 = vld [vmem:[%s9906_s2 + $0x320] sm:$0xff] }
  0xaf   :  { %3159 = vmatpush1.bf16.msra.mxu0 %v1656_v23  ;;  %5652 = vmatpush1.bf16.msra.mxu1 %v1656_v23  ;;  %v63_v14 = vld [vmem:[%s9908_s1 + $0x150] sm:$0xff] }
  0xb0   :  { %3160 = vmatprep.subr.bf16.mxu0 %v6060_v0  ;;  %5637 = vmatprep.subr.bf16.mxu1 %v6060_v0 }
  0xb1   :  { %v567_v30 = vpop.permute.xlu1 %566  ;;  %v562_v31 = vpop.permute.xlu0 %561 }
  0xb2   :  { %876 = vperm.xlu1 %5668, %v314_v11   ;;  %871 = vperm.xlu0 %5667, %v313_v12   ;;  %v1476_v5 = vmul.f32 %v567_v30, %v48_v60  ;;  %v1475_v6 = vmul.f32 %v562_v31, %v47_v61  ;;  %v43_v11 = vld [vmem:[%s9908_s1 + $0xb0] sm:$0xff]  ;;  %v1472_v12 = vmul.f32 %v6433_v17, %v44_v27  ;;  %v328_v17 = vld [vmem:[%s9906_s2 + $0x338] sm:$0xff]  ;;  %v66_v60 = vld [vmem:[%s9908_s1 + $0x168] sm:$0xff] }
  0xb3   :  { %3161 = vmatpush1.bf16.msra.mxu0 %v1655_v29  ;;  %5653 = vmatpush1.bf16.msra.mxu1 %v1655_v29  ;;  %v1471_v28 = vmul.f32 %v6435_v18, %v43_v11  ;;  %v1665_v29 = vpack.c.bf16 %v1474_v16, %v1473_v21  ;;  %v327_v18 = vld [vmem:[%s9906_s2 + $0x330] sm:$0xff]  ;;  %v65_v61 = vld [vmem:[%s9908_s1 + $0x160] sm:$0xff] }
  0xb4   :  { %3162 = vmatprep.subr.bf16.mxu0 %v6060_v0  ;;  %5638 = vmatprep.subr.bf16.mxu1 %v6060_v0  ;;  %v1666_v22 = vpack.c.bf16 %v1476_v5, %v1475_v6  ;;  %v5669_v5 = vld [vmem:[%s9907_s0 + $0x340] ss:$52 sps:$4 sm:$0xff]   ;;  %v336_v6 = vld [vmem:[%s9906_s2 + $0x378] sm:$0xff] }
  0xb5   :  { %v577_v38 = vpop.permute.xlu1 %576  ;;  %v572_v39 = vpop.permute.xlu0 %571  ;;  %v1664_v35 = vpack.c.bf16 %v1472_v12, %v1471_v28  ;;  %v5693_v11 = vld [vmem:[%s9907_s0] ss:$52 sps:$4 sm:$0xff]   ;;  %v62_v28 = vld [vmem:[%s9908_s1 + $0x148] sm:$0xff] }
  0xb6   :  { %886 = vperm.xlu1 %5668, %v316_v33   ;;  %881 = vperm.xlu0 %5667, %v315_v7   ;;  %v1478_v56 = vmul.f32 %v577_v38, %v50_v48  ;;  %v1477_v57 = vmul.f32 %v572_v39, %v49_v4  ;;  %v41_v33 = vld [vmem:[%s9908_s1 + $0xa0] sm:$0xff]  ;;  %v40_v38 = vld [vmem:[%s9908_s1 + $0x98] sm:$0xff]  ;;  %v39_v39 = vld [vmem:[%s9908_s1 + $0x90] sm:$0xff] }
  0xb7   :  { %3163 = vmatpush1.bf16.msra.mxu0 %v1654_v36  ;;  %5654 = vmatpush1.bf16.msra.mxu1 %v1654_v36  ;;  %v1469_v7 = vmul.f32 %v6415_v1, %v41_v33  ;;  %v329_v1 = vld [vmem:[%s9906_s2 + $0x340] sm:$0xff] }
  0xb8   :  { %3164 = vmatprep.subr.bf16.mxu0 %v6060_v0  ;;  %5639 = vmatprep.subr.bf16.mxu1 %v6060_v0  ;;  %v1667_v9 = vpack.c.bf16 %v1478_v56, %v1477_v57  ;;  %v5699_v12 = vld [vmem:[%s9907_s0 + $0x6c] ss:$52 sps:$4 sm:$0xff]  }
  0xb9   :  { %v587_v44 = vpop.permute.xlu1 %586  ;;  %v582_v47 = vpop.permute.xlu0 %581 }
  0xba   :  { %v1480_v49 = vmul.f32 %v587_v44, %v52_v3  ;;  %v1479_v50 = vmul.f32 %v582_v47, %v51_v40  ;;  %896 = vperm.xlu1 %5668, %v318_v41   ;;  %891 = vperm.xlu0 %5667, %v317_v8   ;;  %v1468_v3 = vmul.f32 %v6393_v54, %v40_v38  ;;  %v37_v44 = vld [vmem:[%s9908_s1 + $0x80] sm:$0xff]  ;;  %v332_v54 = vld [vmem:[%s9906_s2 + $0x358] sm:$0xff]  ;;  %v339_v38 = vld [vmem:[%s9906_s2 + $0x390] sm:$0xff] }
  0xbb   :  { %3165 = vmatpush1.bf16.msra.mxu0 %v1653_v43  ;;  %5655 = vmatpush1.bf16.msra.mxu1 %v1653_v43  ;;  %v1467_v40 = vmul.f32 %v6395_v55, %v39_v39  ;;  %v1663_v41 = vpack.c.bf16 %v1470_v34, %v1469_v7  ;;  %v38_v43 = vld [vmem:[%s9908_s1 + $0x88] sm:$0xff]  ;;  %v331_v55 = vld [vmem:[%s9906_s2 + $0x350] sm:$0xff]  ;;  %v1465_v48 = vmul.f32 %v6377_v46, %v37_v44 }
  0xbc   :  { %v1668_v53 = vpack.c.bf16 %v1480_v49, %v1479_v50  ;;  %3166 = vmatprep.subr.bf16.mxu0 %v6060_v0  ;;  %5640 = vmatprep.subr.bf16.mxu1 %v6060_v0  ;;  %v1466_v47 = vmul.f32 %v6375_v45, %v38_v43  ;;  %v333_v45 = vld [vmem:[%s9906_s2 + $0x360] sm:$0xff]  ;;  %v5674_v7 = vld [vmem:[%s9907_s0 + $0x3a8] ss:$52 sps:$4 sm:$0xff]  }
  0xbd   :  { %v6517_v58 = vpop.permute.xlu1 %596  ;;  %v6519_v59 = vpop.permute.xlu0 %591  ;;  %v1662_v4 = vpack.c.bf16 %v1468_v3, %v1467_v40  ;;  %v5675_v39 = vld [vmem:[%s9907_s0 + $0x414] ss:$52 sps:$4 sm:$0xff]  }
  0xbe   :  { %906 = vperm.xlu1 %5668, %v320_v51   ;;  %901 = vperm.xlu0 %5667, %v319_v52   ;;  %v68_v51 = vld [vmem:[%s9908_s1 + $0x178] sm:$0xff]  ;;  %v67_v52 = vld [vmem:[%s9908_s1 + $0x170] sm:$0xff]  ;;  %v1661_v46 = vpack.c.bf16 %v1466_v47, %v1465_v48 }
  0xbf   :  { %3167 = vmatpush2.bf16.msra.mxu0 %v1668_v53  ;;  %5656 = vmatpush2.bf16.msra.mxu1 %v1668_v53  ;;  %v334_v53 = vld [vmem:[%s9906_s2 + $0x368] sm:$0xff] }
  0xc0   :  { %3168 = vmatprep.subr.bf16.mxu0 %v6060_v0  ;;  %5641 = vmatprep.subr.bf16.mxu1 %v6060_v0  ;;  %v5704_v43 = vld [vmem:[%s9907_s0 + $0x68] ss:$52 sps:$4 sm:$0xff]  }
  0xc1   :  { %v6535_v10 = vpop.permute.xlu1 %606  ;;  %v6537_v13 = vpop.permute.xlu0 %601  ;;  %v5705_v44 = vld [vmem:[%s9907_s0 + $0xd4] ss:$52 sps:$4 sm:$0xff]  }
  0xc2   :  { %916 = vperm.xlu1 %5668, %v322_v62   ;;  %911 = vperm.xlu0 %5667, %v321_v2  }
  0xc3   :  { %3169 = vmatpush2.bf16.msra.mxu0 %v1667_v9  ;;  %5657 = vmatpush2.bf16.msra.mxu1 %v1667_v9  ;;  %v64_v9 = vld [vmem:[%s9908_s1 + $0x158] sm:$0xff] }
  0xc4   :  { %3170 = vmatprep.subr.bf16.mxu0 %v6060_v0  ;;  %5642 = vmatprep.subr.bf16.mxu1 %v6060_v0 }
  0xc5   :  { %v6555_v23 = vpop.permute.xlu1 %616  ;;  %v6557_v26 = vpop.permute.xlu0 %611 }
  0xc6   :  { %926 = vperm.xlu1 %5668, %v324_v20   ;;  %921 = vperm.xlu0 %5667, %v323_v15   ;;  %v335_v20 = vld [vmem:[%s9906_s2 + $0x370] sm:$0xff]  ;;  %v5672_v15 = vld [vmem:[%s9907_s0 + $0x3ac] ss:$52 sps:$4 sm:$0xff]  }
  0xc7   :  { %3171 = vmatpush2.bf16.msra.mxu0 %v1666_v22  ;;  %5658 = vmatpush2.bf16.msra.mxu1 %v1666_v22 }
  0xc8   :  { %3172 = vmatprep.subr.bf16.mxu0 %v6060_v0  ;;  %5643 = vmatprep.subr.bf16.mxu1 %v6060_v0 }
  0xc9   :  { %v6575_v30 = vpop.permute.xlu1 %626  ;;  %v6577_v31 = vpop.permute.xlu0 %621 }
  0xca   :  { %936 = vperm.xlu1 %5668, %v326_v24   ;;  %931 = vperm.xlu0 %5667, %v325_v25   ;;  %v338_v24 = vld [vmem:[%s9906_s2 + $0x388] sm:$0xff]  ;;  %v337_v25 = vld [vmem:[%s9906_s2 + $0x380] sm:$0xff] }
  0xcb   :  { %3173 = vmatpush2.bf16.msra.mxu0 %v1665_v29  ;;  %5659 = vmatpush2.bf16.msra.mxu1 %v1665_v29  ;;  %v61_v29 = vld [vmem:[%s9908_s1 + $0x140] sm:$0xff] }
  0xcc   :  { %3174 = vmatprep.subr.bf16.mxu0 %v6060_v0  ;;  %5644 = vmatprep.subr.bf16.mxu1 %v6060_v0 }
  0xcd   :  { %v6595_v36 = vpop.permute.xlu1 %636  ;;  %v6597_v37 = vpop.permute.xlu0 %631 }
  0xce   :  { %946 = vperm.xlu1 %5668, %v328_v17   ;;  %941 = vperm.xlu0 %5667, %v327_v18   ;;  %v1490_v3 = vmul.f32 %v6595_v36, %v62_v28  ;;  %v1489_v40 = vmul.f32 %v6597_v37, %v61_v29  ;;  %v342_v36 = vld [vmem:[%s9906_s2 + $0x3a8] sm:$0xff]  ;;  %v341_v37 = vld [vmem:[%s9906_s2 + $0x3a0] sm:$0xff] }
  0xcf   :  { %3175 = vmatpush2.bf16.msra.mxu0 %v1664_v35  ;;  %5660 = vmatpush2.bf16.msra.mxu1 %v1664_v35  ;;  %v340_v35 = vld [vmem:[%s9906_s2 + $0x398] sm:$0xff] }
  0xd0   :  { %3176 = vmatprep.subr.bf16.mxu0 %v6060_v0  ;;  %5645 = vmatprep.subr.bf16.mxu1 %v6060_v0  ;;  %v5715_v29 = vld [vmem:[%s9907_s0 + $0x138] ss:$52 sps:$4 sm:$0xff]  }
  0xd1   :  { %v6615_v42 = vpop.permute.xlu1 %646  ;;  %v6617_v8 = vpop.permute.xlu0 %641 }
  0xd2   :  { %956 = vperm.xlu1 %5668, %v330_v63   ;;  %951 = vperm.xlu0 %5667, %v329_v1   ;;  %v1492_v32 = vmul.f32 %v6615_v42, %v64_v9  ;;  %v1491_v33 = vmul.f32 %v6617_v8, %v63_v14  ;;  %v60_v63 = vld [vmem:[%s9908_s1 + $0x138] sm:$0xff]  ;;  %v59_v1 = vld [vmem:[%s9908_s1 + $0x130] sm:$0xff] }
  0xd3   :  { %3177 = vmatpush2.bf16.msra.mxu0 %v1663_v41  ;;  %5661 = vmatpush2.bf16.msra.mxu1 %v1663_v41  ;;  %v1488_v47 = vmul.f32 %v6575_v30, %v60_v63  ;;  %v1487_v48 = vmul.f32 %v6577_v31, %v59_v1  ;;  %v344_v30 = vld [vmem:[%s9906_s2 + $0x3b8] sm:$0xff]  ;;  %v343_v31 = vld [vmem:[%s9906_s2 + $0x3b0] sm:$0xff]  ;;  %v81_v63 = vld [vmem:[%s9908_s1 + $0x1e0] sm:$0xff] }
  0xd4   :  { %3178 = vmatprep.subr.bf16.mxu0 %v6060_v0  ;;  %5646 = vmatprep.subr.bf16.mxu1 %v6060_v0  ;;  %v1674_v41 = vpack.c.bf16 %v1492_v32, %v1491_v33  ;;  %v5717_v32 = vld [vmem:[%s9907_s0 + $0x1a4] ss:$52 sps:$4 sm:$0xff]  }
  0xd5   :  { %v657_v49 = vpop.permute.xlu1 %656  ;;  %v652_v50 = vpop.permute.xlu0 %651  ;;  %v365_v33 = vld [vmem:[%s9906_s2 + $0x460] sm:$0xff] }
  0xd6   :  { %966 = vperm.xlu1 %5668, %v332_v54   ;;  %961 = vperm.xlu0 %5667, %v331_v55   ;;  %v1494_v16 = vmul.f32 %v657_v49, %v66_v60  ;;  %v1493_v21 = vmul.f32 %v652_v50, %v65_v61  ;;  %v58_v54 = vld [vmem:[%s9908_s1 + $0x128] sm:$0xff]  ;;  %v57_v55 = vld [vmem:[%s9908_s1 + $0x120] sm:$0xff] }
  0xd7   :  { %3179 = vmatpush2.bf16.msra.mxu0 %v1662_v4  ;;  %5662 = vmatpush2.bf16.msra.mxu1 %v1662_v4  ;;  %v1673_v4 = vpack.c.bf16 %v1490_v3, %v1489_v40  ;;  %v5683_v40 = vld [vmem:[%s9907_s0 + $0x4e0] ss:$52 sps:$4 sm:$0xff]  }
  0xd8   :  { %3180 = vmatprep.subr.bf16.mxu0 %v6060_v0  ;;  %5647 = vmatprep.subr.bf16.mxu1 %v6060_v0  ;;  %v1675_v17 = vpack.c.bf16 %v1494_v16, %v1493_v21  ;;  %v347_v16 = vld [vmem:[%s9906_s2 + $0x3d0] sm:$0xff]  ;;  %v5681_v21 = vld [vmem:[%s9907_s0 + $0x4e4] ss:$52 sps:$4 sm:$0xff]  }
  0xd9   :  { %v667_v56 = vpop.permute.xlu1 %666  ;;  %v662_v57 = vpop.permute.xlu0 %661 }
  0xda   :  { %v1496_v62 = vmul.f32 %v667_v56, %v68_v51  ;;  %v1495_v2 = vmul.f32 %v662_v57, %v67_v52  ;;  %976 = vperm.xlu1 %5668, %v334_v53   ;;  %971 = vperm.xlu0 %5667, %v333_v45   ;;  %v5677_v51 = vld [vmem:[%s9907_s0 + $0x410] ss:$52 sps:$4 sm:$0xff]   ;;  %v56_v53 = vld [vmem:[%s9908_s1 + $0x118] sm:$0xff]  ;;  %v1485_v56 = vmul.f32 %v6557_v26, %v57_v55 }
  0xdb   :  { %3181 = vmatpush2.bf16.msra.mxu0 %v1661_v46  ;;  %5663 = vmatpush2.bf16.msra.mxu1 %v1661_v46  ;;  %v5678_v52 = vld [vmem:[%s9907_s0 + $0x47c] ss:$52 sps:$4 sm:$0xff]   ;;  %v1486_v46 = vmul.f32 %v6555_v23, %v58_v54  ;;  %v1672_v57 = vpack.c.bf16 %v1488_v47, %v1487_v48  ;;  %v346_v23 = vld [vmem:[%s9906_s2 + $0x3c8] sm:$0xff]  ;;  %v345_v26 = vld [vmem:[%s9906_s2 + $0x3c0] sm:$0xff] }
  0xdc   :  { %v1676_v19 = vpack.c.bf16 %v1496_v62, %v1495_v2  ;;  %3319 = vmatprep.subr.bf16.mxu1 %v6060_v0  ;;  %3488 = vmatprep.subr.bf16.mxu0 %v6060_v0  ;;  %v55_v45 = vld [vmem:[%s9908_s1 + $0x110] sm:$0xff] }
  0xdd   :  { %v6675_v22 = vpop.permute.xlu1 %676  ;;  %v6677_v27 = vpop.permute.xlu0 %671  ;;  %v5709_v62 = vld [vmem:[%s9907_s0 + $0xd0] ss:$52 sps:$4 sm:$0xff]   ;;  %v1671_v9 = vpack.c.bf16 %v1486_v46, %v1485_v56  ;;  %v5721_v48 = vld [vmem:[%s9907_s0 + $0x1a0] ss:$52 sps:$4 sm:$0xff]  }
  0xde   :  { %3247 = vmatmul.mubr.bf16.vlgmr.msra.gmra.mxu1 %v5669_v5  ;;  %986 = vperm.xlu1 %5668, %v336_v6   ;;  %v5711_v2 = vld [vmem:[%s9907_s0 + $0x13c] ss:$52 sps:$4 sm:$0xff]   ;;  %v1484_v5 = vmul.f32 %v6535_v10, %v56_v53  ;;  %v1483_v6 = vmul.f32 %v6537_v13, %v55_v45  ;;  %v5680_v10 = vld [vmem:[%s9907_s0 + $0x478] ss:$52 sps:$4 sm:$0xff]  }
  0xdf   :  { %981 = vperm.xlu0 %5667, %v335_v20   ;;  %3320 = vmatpush1.bf16.msra.mxu1 %v1676_v19  ;;  %v54_v20 = vld [vmem:[%s9908_s1 + $0x108] sm:$0xff]  ;;  %v367_v13 = vld [vmem:[%s9906_s2 + $0x470] sm:$0xff] }
  0xe0   :  { %3321 = vmatprep.subr.bf16.mxu1 %v6060_v0  ;;  %3254 = vmatprep.mubr.bf16.mxu1 %v5672_v15  ;;  %v53_v15 = vld [vmem:[%s9908_s1 + $0x100] sm:$0xff] }
  0xe1   :  { %v6700_v18 = vpop.permute.xlu1 %686  ;;  %v6702_v34 = vpop.permute.xlu0 %681  ;;  %3183 = vmatmul.mubr.bf16.vlgmr.msra.gmra.mxu0 %v5693_v11  ;;  %v1482_v11 = vmul.f32 %v6517_v58, %v54_v20  ;;  %v84_v58 = vld [vmem:[%s9908_s1 + $0x1f8] sm:$0xff] }
  0xe2   :  { %996 = vperm.xlu1 %5668, %v338_v24   ;;  %3190 = vmatprep.mubr.bf16.mxu0 %v5699_v12  ;;  %v1481_v24 = vmul.f32 %v6519_v59, %v53_v15  ;;  %v83_v59 = vld [vmem:[%s9908_s1 + $0x1f0] sm:$0xff] }
  0xe3   :  { %991 = vperm.xlu0 %5667, %v337_v25   ;;  %3322 = vmatpush1.bf16.msra.mxu1 %v1675_v17  ;;  %v1670_v25 = vpack.c.bf16 %v1484_v5, %v1483_v6  ;;  %v368_v17 = vld [vmem:[%s9906_s2 + $0x478] sm:$0xff]  ;;  %v362_v5 = vld [vmem:[%s9906_s2 + $0x448] sm:$0xff] }
  0xe4   :  { %3323 = vmatprep.subr.bf16.mxu1 %v6060_v0  ;;  %v5687_v6 = vld [vmem:[%s9907_s0 + $0x5b4] ss:$52 sps:$4 sm:$0xff]  }
  0xe5   :  { %v6725_v42 = vpop.permute.xlu1 %696  ;;  %v6727_v8 = vpop.permute.xlu0 %691 }
  0xe6   :  { %3255 = vmatmul.mubr.bf16.gmra.mxu1 %v5674_v7  ;;  %1006 = vperm.xlu1 %5668, %v340_v35   ;;  %v1669_v7 = vpack.c.bf16 %v1482_v11, %v1481_v24 }
  0xe7   :  { %1001 = vperm.xlu0 %5667, %v339_v38   ;;  %3324 = vmatpush1.bf16.msra.mxu1 %v1674_v41  ;;  %v363_v41 = vld [vmem:[%s9906_s2 + $0x450] sm:$0xff] }
  0xe8   :  { %3325 = vmatprep.subr.bf16.mxu1 %v6060_v0  ;;  %3262 = vmatprep.mubr.bf16.mxu1 %v5675_v39  ;;  %v82_v39 = vld [vmem:[%s9908_s1 + $0x1e8] sm:$0xff] }
  0xe9   :  { %v6750_v49 = vpop.permute.xlu1 %706  ;;  %v6752_v50 = vpop.permute.xlu0 %701  ;;  %3191 = vmatmul.mubr.bf16.gmra.mxu0 %v5704_v43 }
  0xea   :  { %1016 = vperm.xlu1 %5668, %v342_v36   ;;  %3198 = vmatprep.mubr.bf16.mxu0 %v5705_v44  ;;  %v366_v44 = vld [vmem:[%s9906_s2 + $0x468] sm:$0xff] }
  0xeb   :  { %1011 = vperm.xlu0 %5667, %v341_v37   ;;  %3326 = vmatpush1.bf16.msra.mxu1 %v1673_v4  ;;  %v5684_v36 = vld [vmem:[%s9907_s0 + $0x54c] ss:$52 sps:$4 sm:$0xff]   ;;  %v80_v4 = vld [vmem:[%s9908_s1 + $0x1d8] sm:$0xff] }
  0xec   :  { %3327 = vmatprep.subr.bf16.mxu1 %v6060_v0 }
  0xed   :  { %v6775_v60 = vpop.permute.xlu1 %716  ;;  %v6777_v61 = vpop.permute.xlu0 %711 }
  0xee   :  { %3263 = vmatmul.mubr.bf16.gmra.mxu1 %v5677_v51  ;;  %1026 = vperm.xlu1 %5668, %v344_v30   ;;  %v79_v51 = vld [vmem:[%s9908_s1 + $0x1d0] sm:$0xff]  ;;  %v5723_v30 = vld [vmem:[%s9907_s0 + $0x20c] ss:$52 sps:$4 sm:$0xff]  }
  0xef   :  { %1021 = vperm.xlu0 %5667, %v343_v31   ;;  %3328 = vmatpush1.bf16.msra.mxu1 %v1672_v57  ;;  %v361_v31 = vld [vmem:[%s9906_s2 + $0x440] sm:$0xff] }
  0xf0   :  { %3329 = vmatprep.subr.bf16.mxu1 %v6060_v0  ;;  %3270 = vmatprep.mubr.bf16.mxu1 %v5678_v52  ;;  %v364_v52 = vld [vmem:[%s9906_s2 + $0x458] sm:$0xff] }
  0xf1   :  { %v6794_v14 = vpop.permute.xlu1 %726  ;;  %v6796_v19 = vpop.permute.xlu0 %721  ;;  %3199 = vmatmul.mubr.bf16.gmra.mxu0 %v5709_v62  ;;  %v78_v62 = vld [vmem:[%s9908_s1 + $0x1c8] sm:$0xff] }
  0xf2   :  { %1036 = vperm.xlu1 %5668, %v346_v23   ;;  %3206 = vmatprep.mubr.bf16.mxu0 %v5711_v2  ;;  %v1508_v53 = vmul.f32 %v6794_v14, %v80_v4  ;;  %v1507_v45 = vmul.f32 %v6796_v19, %v79_v51  ;;  %v77_v2 = vld [vmem:[%s9908_s1 + $0x1c0] sm:$0xff]  ;;  %v5686_v23 = vld [vmem:[%s9907_s0 + $0x548] ss:$52 sps:$4 sm:$0xff]  }
  0xf3   :  { %1031 = vperm.xlu0 %5667, %v345_v26   ;;  %3330 = vmatpush1.bf16.msra.mxu1 %v1671_v9  ;;  %v359_v26 = vld [vmem:[%s9906_s2 + $0x430] sm:$0xff]  ;;  %v1506_v9 = vmul.f32 %v6775_v60, %v78_v62  ;;  %v1505_v14 = vmul.f32 %v6777_v61, %v77_v2  ;;  %v357_v61 = vld [vmem:[%s9906_s2 + $0x420] sm:$0xff]  ;;  %v352_v2 = vld [vmem:[%s9906_s2 + $0x3f8] sm:$0xff] }
  0xf4   :  { %3331 = vmatprep.subr.bf16.mxu1 %v6060_v0  ;;  %v1682_v19 = vpack.c.bf16 %v1508_v53, %v1507_v45  ;;  %v5729_v60 = vld [vmem:[%s9907_s0 + $0x274] ss:$52 sps:$4 sm:$0xff]   ;;  %v5696_v4 = vld [vmem:[%s9907_s0 + $0x684] ss:$52 sps:$4 sm:$0xff]  }
  0xf5   :  { %v737_v12 = vpop.permute.xlu1 %736  ;;  %v732_v28 = vpop.permute.xlu0 %731  ;;  %v5739_v45 = vld [vmem:[%s9907_s0 + $0x2d8] ss:$52 sps:$4 sm:$0xff]   ;;  %v383_v62 = vld [vmem:[%s9906_s2 + $0x4f0] sm:$0xff] }
  0xf6   :  { %3271 = vmatmul.mubr.bf16.gmra.mxu1 %v5680_v10  ;;  %1141 = vperm.xlu1 %5668, %v367_v13   ;;  %v1510_v37 = vmul.f32 %v737_v12, %v82_v39  ;;  %v1509_v54 = vmul.f32 %v732_v28, %v81_v63  ;;  %v5727_v10 = vld [vmem:[%s9907_s0 + $0x208] ss:$52 sps:$4 sm:$0xff]   ;;  %v5733_v39 = vld [vmem:[%s9907_s0 + $0x270] ss:$52 sps:$4 sm:$0xff]  }
  0xf7   :  { %1041 = vperm.xlu0 %5667, %v347_v16   ;;  %3332 = vmatpush1.bf16.msra.mxu1 %v1670_v25  ;;  %v76_v13 = vld [vmem:[%s9908_s1 + $0x1b8] sm:$0xff]  ;;  %v75_v16 = vld [vmem:[%s9908_s1 + $0x1b0] sm:$0xff]  ;;  %v1681_v25 = vpack.c.bf16 %v1506_v9, %v1505_v14  ;;  %v97_v9 = vld [vmem:[%s9908_s1 + $0x260] sm:$0xff] }
  0xf8   :  { %3333 = vmatprep.subr.bf16.mxu1 %v6060_v0  ;;  %3278 = vmatprep.mubr.bf16.mxu1 %v5681_v21  ;;  %v1683_v46 = vpack.c.bf16 %v1510_v37, %v1509_v54  ;;  %v360_v21 = vld [vmem:[%s9906_s2 + $0x438] sm:$0xff]  ;;  %v1504_v11 = vmul.f32 %v6750_v49, %v76_v13  ;;  %v1503_v24 = vmul.f32 %v6752_v50, %v75_v16  ;;  %v5689_v49 = vld [vmem:[%s9907_s0 + $0x5b0] ss:$52 sps:$4 sm:$0xff]   ;;  %v70_v37 = vld [vmem:[%s9908_s1 + $0x188] sm:$0xff] }
  0xf9   :  { %v747_v35 = vpop.permute.xlu1 %746  ;;  %v742_v38 = vpop.permute.xlu0 %741  ;;  %3207 = vmatmul.mubr.bf16.gmra.mxu0 %v5715_v29  ;;  %v74_v29 = vld [vmem:[%s9908_s1 + $0x1a8] sm:$0xff]  ;;  %v355_v50 = vld [vmem:[%s9906_s2 + $0x410] sm:$0xff]  ;;  %v72_v63 = vld [vmem:[%s9908_s1 + $0x198] sm:$0xff]  ;;  %v1498_v51 = vmul.f32 %v6675_v22, %v70_v37 }
  0xfa   :  { %v1512_v1 = vmul.f32 %v747_v35, %v84_v58  ;;  %v1511_v3 = vmul.f32 %v742_v38, %v83_v59  ;;  %1131 = vperm.xlu1 %5668, %v365_v33   ;;  %3214 = vmatprep.mubr.bf16.mxu0 %v5717_v32  ;;  %v73_v32 = vld [vmem:[%s9908_s1 + $0x1a0] sm:$0xff]  ;;  %v358_v58 = vld [vmem:[%s9906_s2 + $0x428] sm:$0xff]  ;;  %v5690_v59 = vld [vmem:[%s9907_s0 + $0x61c] ss:$52 sps:$4 sm:$0xff]   ;;  %v1502_v33 = vmul.f32 %v6725_v42, %v74_v29 }
  0xfb   :  { %1146 = vperm.xlu0 %5667, %v368_v17   ;;  %3334 = vmatpush1.bf16.msra.mxu1 %v1669_v7  ;;  %v1501_v17 = vmul.f32 %v6727_v8, %v73_v32  ;;  %v1680_v7 = vpack.c.bf16 %v1504_v11, %v1503_v24  ;;  %v5735_v42 = vld [vmem:[%s9907_s0 + $0x2dc] ss:$52 sps:$4 sm:$0xff]   ;;  %v353_v8 = vld [vmem:[%s9906_s2 + $0x400] sm:$0xff] }
  0xfc   :  { %v1684_v43 = vpack.c.bf16 %v1512_v1, %v1511_v3  ;;  %3335 = vmatprep.subr.bf16.mxu1 %v6060_v0  ;;  %v71_v1 = vld [vmem:[%s9908_s1 + $0x190] sm:$0xff]  ;;  %v356_v3 = vld [vmem:[%s9906_s2 + $0x418] sm:$0xff]  ;;  %v69_v54 = vld [vmem:[%s9908_s1 + $0x180] sm:$0xff] }
  0xfd   :  { %v6857_v55 = vpop.permute.xlu1 %756  ;;  %v6859_v47 = vpop.permute.xlu0 %751  ;;  %v100_v22 = vld [vmem:[%s9908_s1 + $0x278] sm:$0xff]  ;;  %v349_v13 = vld [vmem:[%s9906_s2 + $0x3e0] sm:$0xff]  ;;  %v95_v32 = vld [vmem:[%s9908_s1 + $0x250] sm:$0xff] }
  0xfe   :  { %3279 = vmatmul.mubr.bf16.gmra.mxu1 %v5683_v40  ;;  %1121 = vperm.xlu1 %5668, %v363_v41   ;;  %v1500_v40 = vmul.f32 %v6700_v18, %v72_v63  ;;  %v1499_v41 = vmul.f32 %v6702_v34, %v71_v1  ;;  %v5692_v18 = vld [vmem:[%s9907_s0 + $0x618] ss:$52 sps:$4 sm:$0xff]   ;;  %v351_v34 = vld [vmem:[%s9906_s2 + $0x3f0] sm:$0xff]  ;;  %v93_v63 = vld [vmem:[%s9908_s1 + $0x240] sm:$0xff] }
  0xff   :  { %1136 = vperm.xlu0 %5667, %v366_v44   ;;  %3336 = vmatpush2.bf16.msra.mxu1 %v1684_v43  ;;  %v1679_v43 = vpack.c.bf16 %v1502_v33, %v1501_v17  ;;  %v96_v29 = vld [vmem:[%s9908_s1 + $0x258] sm:$0xff] }
 0x100   :  { %3337 = vmatprep.subr.bf16.mxu1 %v6060_v0  ;;  %3286 = vmatprep.mubr.bf16.mxu1 %v5684_v36  ;;  %v5701_v1 = vld [vmem:[%s9907_s0 + $0x8] ss:$52 sps:$4 sm:$0xff]  }
 0x101   :  { %v6882_v56 = vpop.permute.xlu1 %766  ;;  %v6884_v57 = vpop.permute.xlu0 %761  ;;  %3215 = vmatmul.mubr.bf16.gmra.mxu0 %v5721_v48  ;;  %v354_v48 = vld [vmem:[%s9906_s2 + $0x408] sm:$0xff]  ;;  %v92_v37 = vld [vmem:[%s9908_s1 + $0x238] sm:$0xff] }
 0x102   :  { %1111 = vperm.xlu1 %5668, %v361_v31   ;;  %3222 = vmatprep.mubr.bf16.mxu0 %v5723_v30  ;;  %v1497_v30 = vmul.f32 %v6677_v27, %v69_v54  ;;  %v1678_v31 = vpack.c.bf16 %v1500_v40, %v1499_v41  ;;  %v99_v27 = vld [vmem:[%s9908_s1 + $0x270] sm:$0xff] }
 0x103   :  { %1126 = vperm.xlu0 %5667, %v364_v52   ;;  %3338 = vmatpush2.bf16.msra.mxu1 %v1683_v46  ;;  %v5745_v46 = vld [vmem:[%s9907_s0 + $0x14] ss:$52 sps:$4 sm:$0xff]  }
 0x104   :  { %3339 = vmatprep.subr.bf16.mxu1 %v6060_v0  ;;  %v91_v54 = vld [vmem:[%s9908_s1 + $0x230] sm:$0xff] }
 0x105   :  { %v6907_v20 = vpop.permute.xlu1 %776  ;;  %v6909_v15 = vpop.permute.xlu0 %771 }
 0x106   :  { %3287 = vmatmul.mubr.bf16.gmra.mxu1 %v5686_v23  ;;  %1101 = vperm.xlu1 %5668, %v359_v26   ;;  %v1677_v23 = vpack.c.bf16 %v1498_v51, %v1497_v30  ;;  %v90_v30 = vld [vmem:[%s9908_s1 + $0x228] sm:$0xff] }
 0x107   :  { %1116 = vperm.xlu0 %5667, %v362_v5   ;;  %3340 = vmatpush2.bf16.msra.mxu1 %v1682_v19 }
 0x108   :  { %3341 = vmatprep.subr.bf16.mxu1 %v6060_v0  ;;  %3294 = vmatprep.mubr.bf16.mxu1 %v5687_v6  ;;  %v98_v6 = vld [vmem:[%s9908_s1 + $0x268] sm:$0xff] }
 0x109   :  { %v6932_v12 = vpop.permute.xlu1 %786  ;;  %v6934_v28 = vpop.permute.xlu0 %781  ;;  %3223 = vmatmul.mubr.bf16.gmra.mxu0 %v5727_v10  ;;  %v5698_v10 = vld [vmem:[%s9907_s0 + $0x680] ss:$52 sps:$4 sm:$0xff]  }
 0x10a   :  { %1091 = vperm.xlu1 %5668, %v357_v61   ;;  %3230 = vmatprep.mubr.bf16.mxu0 %v5729_v60  ;;  %v384_v60 = vld [vmem:[%s9906_s2 + $0x4f8] sm:$0xff]  ;;  %v5703_v61 = vld [vmem:[%s9907_s0 + $0xc] ss:$52 sps:$4 sm:$0xff]  }
 0x10b   :  { %1106 = vperm.xlu0 %5667, %v360_v21   ;;  %3342 = vmatpush2.bf16.msra.mxu1 %v1681_v25 }
 0x10c   :  { %3343 = vmatprep.subr.bf16.mxu1 %v6060_v0 }
 0x10d   :  { %v6957_v35 = vpop.permute.xlu1 %796  ;;  %v6959_v38 = vpop.permute.xlu0 %791 }
 0x10e   :  { %3295 = vmatmul.mubr.bf16.gmra.mxu1 %v5689_v49  ;;  %1081 = vperm.xlu1 %5668, %v355_v50   ;;  %v381_v49 = vld [vmem:[%s9906_s2 + $0x4e0] sm:$0xff]  ;;  %v350_v50 = vld [vmem:[%s9906_s2 + $0x3e8] sm:$0xff]  ;;  %v1521_v41 = vmul.f32 %v6959_v38, %v93_v63  ;;  %v379_v38 = vld [vmem:[%s9906_s2 + $0x4d0] sm:$0xff] }
 0x10f   :  { %1096 = vperm.xlu0 %5667, %v358_v58   ;;  %3344 = vmatpush2.bf16.msra.mxu1 %v1680_v7 }
 0x110   :  { %3345 = vmatprep.subr.bf16.mxu1 %v6060_v0  ;;  %3302 = vmatprep.mubr.bf16.mxu1 %v5690_v59 }
 0x111   :  { %v6982_v44 = vpop.permute.xlu1 %806  ;;  %v6984_v36 = vpop.permute.xlu0 %801  ;;  %3231 = vmatmul.mubr.bf16.gmra.mxu0 %v5733_v39  ;;  %v94_v39 = vld [vmem:[%s9908_s1 + $0x248] sm:$0xff] }
 0x112   :  { %1071 = vperm.xlu1 %5668, %v353_v8   ;;  %3238 = vmatprep.mubr.bf16.mxu0 %v5735_v42  ;;  %v1524_v58 = vmul.f32 %v6982_v44, %v96_v29  ;;  %v1523_v59 = vmul.f32 %v6984_v36, %v95_v32  ;;  %v348_v42 = vld [vmem:[%s9906_s2 + $0x3d8] sm:$0xff]  ;;  %v382_v8 = vld [vmem:[%s9906_s2 + $0x4e8] sm:$0xff]  ;;  %v1522_v40 = vmul.f32 %v6957_v35, %v94_v39  ;;  %v113_v39 = vld [vmem:[%s9908_s1 + $0x2e0] sm:$0xff] }
 0x113   :  { %1086 = vperm.xlu0 %5667, %v356_v3   ;;  %3346 = vmatpush2.bf16.msra.mxu1 %v1679_v43  ;;  %v5707_v3 = vld [vmem:[%s9907_s0 + $0x74] ss:$52 sps:$4 sm:$0xff]   ;;  %v380_v35 = vld [vmem:[%s9906_s2 + $0x4d8] sm:$0xff] }
 0x114   :  { %3347 = vmatprep.subr.bf16.mxu1 %v6060_v0  ;;  %v1690_v43 = vpack.c.bf16 %v1524_v58, %v1523_v59  ;;  %v116_v32 = vld [vmem:[%s9908_s1 + $0x2f8] sm:$0xff] }
 0x115   :  { %v817_v52 = vpop.permute.xlu1 %816  ;;  %v812_v53 = vpop.permute.xlu0 %811 }
 0x116   :  { %3303 = vmatmul.mubr.bf16.gmra.mxu1 %v5692_v18  ;;  %1061 = vperm.xlu1 %5668, %v351_v34   ;;  %v1526_v21 = vmul.f32 %v817_v52, %v98_v6  ;;  %v1525_v11 = vmul.f32 %v812_v53, %v97_v9  ;;  %v1520_v18 = vmul.f32 %v6932_v12, %v92_v37  ;;  %v5710_v12 = vld [vmem:[%s9907_s0 + $0x70] ss:$52 sps:$4 sm:$0xff]  }
 0x117   :  { %1076 = vperm.xlu0 %5667, %v354_v48   ;;  %3348 = vmatpush2.bf16.msra.mxu1 %v1678_v31  ;;  %v1519_v34 = vmul.f32 %v6934_v28, %v91_v54  ;;  %v1689_v48 = vpack.c.bf16 %v1522_v40, %v1521_v41  ;;  %v89_v31 = vld [vmem:[%s9908_s1 + $0x220] sm:$0xff]  ;;  %v378_v28 = vld [vmem:[%s9906_s2 + $0x4c8] sm:$0xff]  ;;  %v5713_v53 = vld [vmem:[%s9907_s0 + $0xdc] ss:$52 sps:$4 sm:$0xff]  }
 0x118   :  { %3349 = vmatprep.subr.bf16.mxu1 %v6060_v0  ;;  %3310 = vmatprep.mubr.bf16.mxu1 %v5696_v4  ;;  %v1691_v33 = vpack.c.bf16 %v1526_v21, %v1525_v11  ;;  %v377_v52 = vld [vmem:[%s9906_s2 + $0x4c0] sm:$0xff] }
 0x119   :  { %v827_v26 = vpop.permute.xlu1 %826  ;;  %v822_v5 = vpop.permute.xlu0 %821  ;;  %3239 = vmatmul.mubr.bf16.gmra.mxu0 %v5739_v45  ;;  %v1518_v45 = vmul.f32 %v6907_v20, %v90_v30  ;;  %v376_v20 = vld [vmem:[%s9906_s2 + $0x4b8] sm:$0xff]  ;;  %v369_v40 = vld [vmem:[%s9906_s2 + $0x480] sm:$0xff] }
 0x11a   :  { %v1528_v14 = vmul.f32 %v827_v26, %v100_v22  ;;  %v1527_v19 = vmul.f32 %v822_v5, %v99_v27  ;;  %1221 = vperm.xlu1 %5668, %v383_v62   ;;  %3520 = vmatprep.mubr.bf16.mxu0 %v5745_v46  ;;  %v1517_v46 = vmul.f32 %v6909_v15, %v89_v31  ;;  %v375_v15 = vld [vmem:[%s9906_s2 + $0x4b0] sm:$0xff]  ;;  %v5725_v41 = vld [vmem:[%s9907_s0 + $0x1ac] ss:$52 sps:$4 sm:$0xff]  }
 0x11b   :  { %1066 = vperm.xlu0 %5667, %v352_v2   ;;  %3350 = vmatpush2.bf16.msra.mxu1 %v1677_v23  ;;  %v1688_v22 = vpack.c.bf16 %v1520_v18, %v1519_v34  ;;  %v88_v2 = vld [vmem:[%s9908_s1 + $0x218] sm:$0xff]  ;;  %v87_v23 = vld [vmem:[%s9908_s1 + $0x210] sm:$0xff] }
 0x11c   :  { %v1692_v16 = vpack.c.bf16 %v1528_v14, %v1527_v19  ;;  %3657 = vmatprep.subr.bf16.mxu1 %v6060_v0  ;;  %v1516_v26 = vmul.f32 %v6882_v56, %v88_v2  ;;  %v1515_v5 = vmul.f32 %v6884_v57, %v87_v23  ;;  %v1687_v6 = vpack.c.bf16 %v1518_v45, %v1517_v46  ;;  %v86_v19 = vld [vmem:[%s9908_s1 + $0x208] sm:$0xff]  ;;  %v373_v57 = vld [vmem:[%s9906_s2 + $0x4a0] sm:$0xff]  ;;  %v111_v18 = vld [vmem:[%s9908_s1 + $0x2d0] sm:$0xff] }
 0x11d   :  { %v7045_v24 = vpop.permute.xlu1 %836  ;;  %v7047_v25 = vpop.permute.xlu0 %831  ;;  %v374_v56 = vld [vmem:[%s9906_s2 + $0x4a8] sm:$0xff]  ;;  %v400_v34 = vld [vmem:[%s9906_s2 + $0x578] sm:$0xff]  ;;  %v109_v45 = vld [vmem:[%s9908_s1 + $0x2c0] sm:$0xff] }
 0x11e   :  { %3311 = vmatmul.mubr.bf16.gmra.mxu1 %v5698_v10  ;;  %1051 = vperm.xlu1 %5668, %v349_v13   ;;  %v85_v10 = vld [vmem:[%s9908_s1 + $0x200] sm:$0xff]  ;;  %v5716_v13 = vld [vmem:[%s9907_s0 + $0xd8] ss:$52 sps:$4 sm:$0xff]   ;;  %v1686_v21 = vpack.c.bf16 %v1516_v26, %v1515_v5  ;;  %v5728_v46 = vld [vmem:[%s9907_s0 + $0x1a8] ss:$52 sps:$4 sm:$0xff]  }
 0x11f   :  { %1226 = vperm.xlu0 %5667, %v384_v60   ;;  %3489 = vmatpush1.bf16.msra.mxu0 %v1692_v16  ;;  %v5719_v16 = vld [vmem:[%s9907_s0 + $0x144] ss:$52 sps:$4 sm:$0xff]   ;;  %v1514_v60 = vmul.f32 %v6857_v55, %v86_v19  ;;  %v5731_v23 = vld [vmem:[%s9907_s0 + $0x214] ss:$52 sps:$4 sm:$0xff]  }
 0x120   :  { %3490 = vmatprep.subr.bf16.mxu0 %v6060_v0  ;;  %3351 = vmatprep.mubr.bf16.mxu1 %v5703_v61  ;;  %v1513_v61 = vmul.f32 %v6859_v47, %v85_v10  ;;  %v372_v55 = vld [vmem:[%s9906_s2 + $0x498] sm:$0xff]  ;;  %v371_v47 = vld [vmem:[%s9906_s2 + $0x490] sm:$0xff]  ;;  %v397_v2 = vld [vmem:[%s9906_s2 + $0x560] sm:$0xff] }
 0x121   :  { %v7064_v17 = vpop.permute.xlu1 %846  ;;  %v7066_v7 = vpop.permute.xlu0 %841 }
 0x122   :  { %1211 = vperm.xlu1 %5668, %v381_v49   ;;  %v115_v49 = vld [vmem:[%s9908_s1 + $0x2f0] sm:$0xff] }
 0x123   :  { %1056 = vperm.xlu0 %5667, %v350_v50   ;;  %3491 = vmatpush1.bf16.msra.mxu0 %v1691_v33  ;;  %v1685_v50 = vpack.c.bf16 %v1514_v60, %v1513_v61  ;;  %v114_v33 = vld [vmem:[%s9908_s1 + $0x2e8] sm:$0xff]  ;;  %v105_v60 = vld [vmem:[%s9908_s1 + $0x2a0] sm:$0xff] }
 0x124   :  { %3492 = vmatprep.subr.bf16.mxu0 %v6060_v0  ;;  %v393_v61 = vld [vmem:[%s9906_s2 + $0x540] sm:$0xff] }
 0x125   :  { %v7089_v44 = vpop.permute.xlu1 %856  ;;  %v7091_v36 = vpop.permute.xlu0 %851 }
 0x126   :  { %3352 = vmatmul.mubr.bf16.vlgmr.msra.gmra.mxu1 %v5701_v1  ;;  %1046 = vperm.xlu1 %5668, %v348_v42   ;;  %v5722_v42 = vld [vmem:[%s9907_s0 + $0x140] ss:$52 sps:$4 sm:$0xff]  }
 0x127   :  { %1216 = vperm.xlu0 %5667, %v382_v8   ;;  %3493 = vmatpush1.bf16.msra.mxu0 %v1690_v43  ;;  %v370_v8 = vld [vmem:[%s9906_s2 + $0x488] sm:$0xff] }
 0x128   :  { %3494 = vmatprep.subr.bf16.mxu0 %v6060_v0  ;;  %3359 = vmatprep.mubr.bf16.mxu1 %v5707_v3 }
 0x129   :  { %v7108_v4 = vpop.permute.xlu1 %866  ;;  %v7110_v51 = vpop.permute.xlu0 %861 }
 0x12a   :  { %1206 = vperm.xlu1 %5668, %v380_v35  }
 0x12b   :  { %1201 = vperm.xlu0 %5667, %v379_v38   ;;  %3495 = vmatpush1.bf16.msra.mxu0 %v1689_v48  ;;  %v112_v38 = vld [vmem:[%s9908_s1 + $0x2d8] sm:$0xff]  ;;  %v399_v48 = vld [vmem:[%s9906_s2 + $0x570] sm:$0xff] }
 0x12c   :  { %3496 = vmatprep.subr.bf16.mxu0 %v6060_v0 }
 0x12d   :  { %v7133_v27 = vpop.permute.xlu1 %876  ;;  %v7135_v62 = vpop.permute.xlu0 %871 }
 0x12e   :  { %3360 = vmatmul.mubr.bf16.gmra.mxu1 %v5710_v12  ;;  %1196 = vperm.xlu1 %5668, %v378_v28  }
 0x12f   :  { %1191 = vperm.xlu0 %5667, %v377_v52   ;;  %3497 = vmatpush1.bf16.msra.mxu0 %v1688_v22  ;;  %v398_v22 = vld [vmem:[%s9906_s2 + $0x568] sm:$0xff] }
 0x130   :  { %3498 = vmatprep.subr.bf16.mxu0 %v6060_v0  ;;  %3367 = vmatprep.mubr.bf16.mxu1 %v5713_v53  ;;  %v110_v53 = vld [vmem:[%s9908_s1 + $0x2c8] sm:$0xff] }
 0x131   :  { %v887_v9 = vpop.permute.xlu1 %886  ;;  %v882_v14 = vpop.permute.xlu0 %881 }
 0x132   :  { %1186 = vperm.xlu1 %5668, %v376_v20   ;;  %v1540_v30 = vmul.f32 %v887_v9, %v112_v38  ;;  %v1539_v31 = vmul.f32 %v882_v14, %v111_v18  ;;  %v1538_v20 = vmul.f32 %v7133_v27, %v110_v53  ;;  %v108_v9 = vld [vmem:[%s9908_s1 + $0x2b8] sm:$0xff]  ;;  %v107_v14 = vld [vmem:[%s9908_s1 + $0x2b0] sm:$0xff] }
 0x133   :  { %1181 = vperm.xlu0 %5667, %v375_v15   ;;  %3499 = vmatpush1.bf16.msra.mxu0 %v1687_v6  ;;  %v1537_v15 = vmul.f32 %v7135_v62, %v109_v45  ;;  %v396_v27 = vld [vmem:[%s9906_s2 + $0x558] sm:$0xff]  ;;  %v395_v62 = vld [vmem:[%s9906_s2 + $0x550] sm:$0xff]  ;;  %v1536_v19 = vmul.f32 %v7108_v4, %v108_v9  ;;  %v1535_v10 = vmul.f32 %v7110_v51, %v107_v14  ;;  %v394_v51 = vld [vmem:[%s9906_s2 + $0x548] sm:$0xff] }
 0x134   :  { %3500 = vmatprep.subr.bf16.mxu0 %v6060_v0  ;;  %v1698_v26 = vpack.c.bf16 %v1540_v30, %v1539_v31  ;;  %v5734_v4 = vld [vmem:[%s9907_s0 + $0x210] ss:$52 sps:$4 sm:$0xff]   ;;  %v132_v18 = vld [vmem:[%s9908_s1 + $0x378] sm:$0xff]  ;;  %v5746_v45 = vld [vmem:[%s9907_s0 + $0x2e0] ss:$52 sps:$4 sm:$0xff]  }
 0x135   :  { %v897_v11 = vpop.permute.xlu1 %896  ;;  %v892_v29 = vpop.permute.xlu0 %891  ;;  %v5743_v53 = vld [vmem:[%s9907_s0 + $0x10] ss:$52 sps:$4 sm:$0xff]  }
 0x136   :  { %3368 = vmatmul.mubr.bf16.gmra.mxu1 %v5716_v13  ;;  %1176 = vperm.xlu1 %5668, %v374_v56   ;;  %v1542_v43 = vmul.f32 %v897_v11, %v114_v33  ;;  %v1541_v37 = vmul.f32 %v892_v29, %v113_v39  ;;  %v1697_v13 = vpack.c.bf16 %v1538_v20, %v1537_v15  ;;  %v385_v20 = vld [vmem:[%s9906_s2 + $0x500] sm:$0xff]  ;;  %v5749_v14 = vld [vmem:[%s9907_s0 + $0x7c] ss:$52 sps:$4 sm:$0xff]  }
 0x137   :  { %1171 = vperm.xlu0 %5667, %v373_v57   ;;  %3501 = vmatpush1.bf16.msra.mxu0 %v1686_v21  ;;  %v5737_v21 = vld [vmem:[%s9907_s0 + $0x27c] ss:$52 sps:$4 sm:$0xff]   ;;  %v1533_v29 = vmul.f32 %v7091_v36, %v105_v60  ;;  %v5747_v15 = vld [vmem:[%s9907_s0 + $0x34c] ss:$52 sps:$4 sm:$0xff]  }
 0x138   :  { %3502 = vmatprep.subr.bf16.mxu0 %v6060_v0  ;;  %3375 = vmatprep.mubr.bf16.mxu1 %v5719_v16  ;;  %v1699_v12 = vpack.c.bf16 %v1542_v43, %v1541_v37  ;;  %v106_v16 = vld [vmem:[%s9908_s1 + $0x2a8] sm:$0xff]  ;;  %v391_v36 = vld [vmem:[%s9906_s2 + $0x530] sm:$0xff] }
 0x139   :  { %v907_v58 = vpop.permute.xlu1 %906  ;;  %v902_v59 = vpop.permute.xlu0 %901  ;;  %v1534_v11 = vmul.f32 %v7089_v44, %v106_v16  ;;  %v392_v44 = vld [vmem:[%s9906_s2 + $0x538] sm:$0xff]  ;;  %v415_v60 = vld [vmem:[%s9906_s2 + $0x5f0] sm:$0xff] }
 0x13a   :  { %v1544_v63 = vmul.f32 %v907_v58, %v116_v32  ;;  %v1543_v1 = vmul.f32 %v902_v59, %v115_v49  ;;  %1166 = vperm.xlu1 %5668, %v372_v55   ;;  %v1696_v32 = vpack.c.bf16 %v1536_v19, %v1535_v10  ;;  %v128_v10 = vld [vmem:[%s9908_s1 + $0x358] sm:$0xff] }
 0x13b   :  { %1161 = vperm.xlu0 %5667, %v371_v47   ;;  %3503 = vmatpush1.bf16.msra.mxu0 %v1685_v50  ;;  %v104_v47 = vld [vmem:[%s9908_s1 + $0x298] sm:$0xff]  ;;  %v103_v50 = vld [vmem:[%s9908_s1 + $0x290] sm:$0xff]  ;;  %v1695_v33 = vpack.c.bf16 %v1534_v11, %v1533_v29 }
 0x13c   :  { %v1700_v3 = vpack.c.bf16 %v1544_v63, %v1543_v1  ;;  %3504 = vmatprep.subr.bf16.mxu0 %v6060_v0  ;;  %v1532_v58 = vmul.f32 %v7064_v17, %v104_v47  ;;  %v1531_v59 = vmul.f32 %v7066_v7, %v103_v50  ;;  %v102_v1 = vld [vmem:[%s9908_s1 + $0x288] sm:$0xff]  ;;  %v389_v7 = vld [vmem:[%s9906_s2 + $0x520] sm:$0xff]  ;;  %v416_v16 = vld [vmem:[%s9906_s2 + $0x5f8] sm:$0xff] }
 0x13d   :  { %v7205_v54 = vpop.permute.xlu1 %916  ;;  %v7207_v35 = vpop.permute.xlu0 %911  ;;  %v390_v17 = vld [vmem:[%s9906_s2 + $0x528] sm:$0xff]  ;;  %v125_v50 = vld [vmem:[%s9908_s1 + $0x340] sm:$0xff] }
 0x13e   :  { %3376 = vmatmul.mubr.bf16.gmra.mxu1 %v5722_v42  ;;  %1156 = vperm.xlu1 %5668, %v370_v8   ;;  %v101_v42 = vld [vmem:[%s9908_s1 + $0x280] sm:$0xff]  ;;  %v5740_v8 = vld [vmem:[%s9907_s0 + $0x278] ss:$52 sps:$4 sm:$0xff]   ;;  %v1694_v43 = vpack.c.bf16 %v1532_v58, %v1531_v59  ;;  %v5751_v29 = vld [vmem:[%s9907_s0 + $0x348] ss:$52 sps:$4 sm:$0xff]  }
 0x13f   :  { %1151 = vperm.xlu0 %5667, %v369_v40   ;;  %3505 = vmatpush2.bf16.msra.mxu0 %v1700_v3  ;;  %v5741_v3 = vld [vmem:[%s9907_s0 + $0x2e4] ss:$52 sps:$4 sm:$0xff]   ;;  %v1530_v40 = vmul.f32 %v7045_v24, %v102_v1  ;;  %v131_v24 = vld [vmem:[%s9908_s1 + $0x370] sm:$0xff]  ;;  %v126_v47 = vld [vmem:[%s9908_s1 + $0x348] sm:$0xff] }
 0x140   :  { %3506 = vmatprep.subr.bf16.mxu0 %v6060_v0  ;;  %3383 = vmatprep.mubr.bf16.mxu1 %v5725_v41  ;;  %v1529_v41 = vmul.f32 %v7047_v25, %v101_v42  ;;  %v387_v25 = vld [vmem:[%s9906_s2 + $0x510] sm:$0xff] }
 0x141   :  { %v7222_v28 = vpop.permute.xlu1 %926  ;;  %v7224_v52 = vpop.permute.xlu0 %921  ;;  %v5753_v58 = vld [vmem:[%s9907_s0 + $0x3b4] ss:$52 sps:$4 sm:$0xff]  }
 0x142   :  { %1306 = vperm.xlu1 %5668, %v400_v34   ;;  %v388_v34 = vld [vmem:[%s9906_s2 + $0x518] sm:$0xff] }
 0x143   :  { %1301 = vperm.xlu0 %5667, %v399_v48   ;;  %3507 = vmatpush2.bf16.msra.mxu0 %v1699_v12  ;;  %v1693_v48 = vpack.c.bf16 %v1530_v40, %v1529_v41 }
 0x144   :  { %3508 = vmatprep.subr.bf16.mxu0 %v6060_v0 }
 0x145   :  { %v7247_v5 = vpop.permute.xlu1 %936  ;;  %v7249_v6 = vpop.permute.xlu0 %931 }
 0x146   :  { %3384 = vmatmul.mubr.bf16.gmra.mxu1 %v5728_v46  ;;  %1296 = vperm.xlu1 %5668, %v398_v22   ;;  %v130_v46 = vld [vmem:[%s9908_s1 + $0x368] sm:$0xff]  ;;  %v129_v22 = vld [vmem:[%s9908_s1 + $0x360] sm:$0xff] }
 0x147   :  { %1291 = vperm.xlu0 %5667, %v397_v2   ;;  %3509 = vmatpush2.bf16.msra.mxu0 %v1698_v26 }
 0x148   :  { %3510 = vmatprep.subr.bf16.mxu0 %v6060_v0  ;;  %3391 = vmatprep.mubr.bf16.mxu1 %v5731_v23  ;;  %v386_v23 = vld [vmem:[%s9906_s2 + $0x508] sm:$0xff] }
 0x149   :  { %v7266_v56 = vpop.permute.xlu1 %946  ;;  %v7268_v57 = vpop.permute.xlu0 %941 }
 0x14a   :  { %1286 = vperm.xlu1 %5668, %v396_v27  }
 0x14b   :  { %1281 = vperm.xlu0 %5667, %v395_v62   ;;  %3511 = vmatpush2.bf16.msra.mxu0 %v1697_v13  ;;  %v127_v13 = vld [vmem:[%s9908_s1 + $0x350] sm:$0xff] }
 0x14c   :  { %3512 = vmatprep.subr.bf16.mxu0 %v6060_v0 }
 0x14d   :  { %v7291_v49 = vpop.permute.xlu1 %956  ;;  %v7293_v55 = vpop.permute.xlu0 %951 }
 0x14e   :  { %3392 = vmatmul.mubr.bf16.gmra.mxu1 %v5734_v4  ;;  %1276 = vperm.xlu1 %5668, %v394_v51  }
 0x14f   :  { %1271 = vperm.xlu0 %5667, %v393_v61   ;;  %3513 = vmatpush2.bf16.msra.mxu0 %v1696_v32  ;;  %v5752_v32 = vld [vmem:[%s9907_s0 + $0x78] ss:$52 sps:$4 sm:$0xff]  }
 0x150   :  { %3514 = vmatprep.subr.bf16.mxu0 %v6060_v0  ;;  %3399 = vmatprep.mubr.bf16.mxu1 %v5737_v21 }
 0x151   :  { %v967_v39 = vpop.permute.xlu1 %966  ;;  %v962_v63 = vpop.permute.xlu0 %961 }
 0x152   :  { %1266 = vperm.xlu1 %5668, %v392_v44   ;;  %v1556_v51 = vmul.f32 %v967_v39, %v128_v10  ;;  %v1555_v61 = vmul.f32 %v962_v63, %v127_v13  ;;  %v414_v44 = vld [vmem:[%s9906_s2 + $0x5e8] sm:$0xff]  ;;  %v1554_v39 = vmul.f32 %v7291_v49, %v126_v47  ;;  %v1553_v63 = vmul.f32 %v7293_v55, %v125_v50  ;;  %v412_v49 = vld [vmem:[%s9906_s2 + $0x5d8] sm:$0xff]  ;;  %v411_v55 = vld [vmem:[%s9906_s2 + $0x5d0] sm:$0xff] }
 0x153   :  { %1261 = vperm.xlu0 %5667, %v391_v36   ;;  %3515 = vmatpush2.bf16.msra.mxu0 %v1695_v33  ;;  %v413_v36 = vld [vmem:[%s9906_s2 + $0x5e0] sm:$0xff]  ;;  %v426_v10 = vld [vmem:[%s9906_s2 + $0x648] sm:$0xff] }
 0x154   :  { %3516 = vmatprep.subr.bf16.mxu0 %v6060_v0  ;;  %v5755_v33 = vld [vmem:[%s9907_s0 + $0xe4] ss:$52 sps:$4 sm:$0xff]   ;;  %v1706_v1 = vpack.c.bf16 %v1556_v51, %v1555_v61  ;;  %v1705_v41 = vpack.c.bf16 %v1554_v39, %v1553_v63  ;;  %v5767_v51 = vld [vmem:[%s9907_s0 + $0x1b4] ss:$52 sps:$4 sm:$0xff]  }
 0x155   :  { %v977_v37 = vpop.permute.xlu1 %976  ;;  %v972_v38 = vpop.permute.xlu0 %971  ;;  %v425_v13 = vld [vmem:[%s9906_s2 + $0x640] sm:$0xff] }
 0x156   :  { %3400 = vmatmul.mubr.bf16.gmra.mxu1 %v5740_v8  ;;  %1256 = vperm.xlu1 %5668, %v390_v17   ;;  %v1558_v27 = vmul.f32 %v977_v37, %v130_v46  ;;  %v1557_v62 = vmul.f32 %v972_v38, %v129_v22  ;;  %v124_v8 = vld [vmem:[%s9908_s1 + $0x338] sm:$0xff]  ;;  %v123_v17 = vld [vmem:[%s9908_s1 + $0x330] sm:$0xff]  ;;  %v161_v50 = vld [vmem:[%s9908_s1 + $0x460] sm:$0xff] }
 0x157   :  { %1251 = vperm.xlu0 %5667, %v389_v7   ;;  %3517 = vmatpush2.bf16.msra.mxu0 %v1694_v43  ;;  %v1551_v40 = vmul.f32 %v7268_v57, %v123_v17  ;;  %v5757_v37 = vld [vmem:[%s9907_s0 + $0x3b0] ss:$52 sps:$4 sm:$0xff]   ;;  %v5758_v38 = vld [vmem:[%s9907_s0 + $0xe0] ss:$52 sps:$4 sm:$0xff]   ;;  %v428_v57 = vld [vmem:[%s9906_s2 + $0x658] sm:$0xff] }
 0x158   :  { %3518 = vmatprep.subr.bf16.mxu0 %v6060_v0  ;;  %3407 = vmatprep.mubr.bf16.mxu1 %v5741_v3  ;;  %v1707_v21 = vpack.c.bf16 %v1558_v27, %v1557_v62  ;;  %v1552_v3 = vmul.f32 %v7266_v56, %v124_v8  ;;  %v121_v56 = vld [vmem:[%s9908_s1 + $0x320] sm:$0xff]  ;;  %v119_v46 = vld [vmem:[%s9908_s1 + $0x310] sm:$0xff]  ;;  %v5764_v27 = vld [vmem:[%s9907_s0 + $0x148] ss:$52 sps:$4 sm:$0xff]  }
 0x159   :  { %v987_v30 = vpop.permute.xlu1 %986  ;;  %v117_v62 = vld [vmem:[%s9908_s1 + $0x300] sm:$0xff] }
 0x15a   :  { %v1560_v31 = vmul.f32 %v987_v30, %v132_v18  ;;  %v982_v12 = vpop.permute.xlu0 %981  ;;  %1246 = vperm.xlu1 %5668, %v388_v34   ;;  %v122_v18 = vld [vmem:[%s9908_s1 + $0x328] sm:$0xff]  ;;  %v427_v34 = vld [vmem:[%s9906_s2 + $0x650] sm:$0xff] }
 0x15b   :  { %v1559_v2 = vmul.f32 %v982_v12, %v131_v24  ;;  %1241 = vperm.xlu0 %5667, %v387_v25   ;;  %3519 = vmatpush2.bf16.msra.mxu0 %v1693_v48  ;;  %v5759_v24 = vld [vmem:[%s9907_s0 + $0x41c] ss:$52 sps:$4 sm:$0xff]   ;;  %v5761_v48 = vld [vmem:[%s9907_s0 + $0x14c] ss:$52 sps:$4 sm:$0xff]   ;;  %v1550_v30 = vmul.f32 %v7247_v5, %v122_v18  ;;  %v1704_v12 = vpack.c.bf16 %v1552_v3, %v1551_v40 }
 0x15c   :  { %3826 = vmatprep.subr.bf16.mxu0 %v6060_v0  ;;  %v410_v5 = vld [vmem:[%s9906_s2 + $0x5c8] sm:$0xff]  ;;  %v5770_v8 = vld [vmem:[%s9907_s0 + $0x1b0] ss:$52 sps:$4 sm:$0xff]   ;;  %v160_v3 = vld [vmem:[%s9908_s1 + $0x458] sm:$0xff] }
 0x15d   :  { %v1708_v26 = vpack.c.bf16 %v1560_v31, %v1559_v2  ;;  %v7366_v9 = vpop.permute.xlu1 %996  ;;  %v1549_v31 = vmul.f32 %v7249_v6, %v121_v56  ;;  %v409_v6 = vld [vmem:[%s9906_s2 + $0x5c0] sm:$0xff]  ;;  %v118_v2 = vld [vmem:[%s9908_s1 + $0x308] sm:$0xff]  ;;  %v424_v40 = vld [vmem:[%s9906_s2 + $0x638] sm:$0xff] }
 0x15e   :  { %v7371_v19 = vpop.permute.xlu0 %991  ;;  %3408 = vmatmul.mubr.bf16.gmra.mxu1 %v5746_v45  ;;  %3521 = vmatmul.mubr.bf16.vlgmr.msra.gmra.mxu0 %v5743_v53  ;;  %v120_v45 = vld [vmem:[%s9908_s1 + $0x318] sm:$0xff]  ;;  %v1546_v61 = vmul.f32 %v7205_v54, %v118_v2 }
 0x15f   :  { %1236 = vperm.xlu1 %5668, %v386_v23   ;;  %1231 = vperm.xlu0 %5667, %v385_v20   ;;  %v1548_v23 = vmul.f32 %v7222_v28, %v120_v45  ;;  %v1547_v20 = vmul.f32 %v7224_v52, %v119_v46  ;;  %v163_v28 = vld [vmem:[%s9908_s1 + $0x470] sm:$0xff]  ;;  %v164_v52 = vld [vmem:[%s9908_s1 + $0x478] sm:$0xff] }
 0x160   :  { %3658 = vmatpush1.bf16.msra.mxu1 %v1708_v26  ;;  %3415 = vmatprep.mubr.bf16.mxu1 %v5747_v15  ;;  %v1703_v15 = vpack.c.bf16 %v1550_v30, %v1549_v31  ;;  %v408_v54 = vld [vmem:[%s9906_s2 + $0x5b8] sm:$0xff]  ;;  %v158_v30 = vld [vmem:[%s9908_s1 + $0x448] sm:$0xff] }
 0x161   :  { %v7385_v4 = vpop.permute.xlu1 %1006  ;;  %3659 = vmatprep.subr.bf16.mxu1 %v6060_v0  ;;  %3528 = vmatprep.mubr.bf16.mxu0 %v5749_v14  ;;  %v5763_v14 = vld [vmem:[%s9907_s0 + $0x418] ss:$52 sps:$4 sm:$0xff]   ;;  %v5773_v56 = vld [vmem:[%s9907_s0 + $0x21c] ss:$52 sps:$4 sm:$0xff]  }
 0x162   :  { %v7388_v11 = vpop.permute.xlu0 %1001  ;;  %v406_v31 = vld [vmem:[%s9906_s2 + $0x5a8] sm:$0xff] }
 0x163   :  { %1386 = vperm.xlu1 %5668, %v416_v16   ;;  %1381 = vperm.xlu0 %5667, %v415_v60   ;;  %v5765_v16 = vld [vmem:[%s9907_s0 + $0x484] ss:$52 sps:$4 sm:$0xff]  }
 0x164   :  { %3660 = vmatpush1.bf16.msra.mxu1 %v1707_v21  ;;  %v1545_v21 = vmul.f32 %v7207_v35, %v117_v62  ;;  %v407_v35 = vld [vmem:[%s9906_s2 + $0x5b0] sm:$0xff] }
 0x165   :  { %v7411_v59 = vpop.permute.xlu1 %1016  ;;  %3661 = vmatprep.subr.bf16.mxu1 %v6060_v0  ;;  %v5777_v62 = vld [vmem:[%s9907_s0 + $0x554] ss:$52 sps:$4 sm:$0xff]  }
 0x166   :  { %v7419_v42 = vpop.permute.xlu0 %1011  ;;  %3416 = vmatmul.mubr.bf16.gmra.mxu1 %v5751_v29  ;;  %3529 = vmatmul.mubr.bf16.gmra.mxu0 %v5752_v32  ;;  %v1702_v29 = vpack.c.bf16 %v1548_v23, %v1547_v20  ;;  %v1701_v39 = vpack.c.bf16 %v1546_v61, %v1545_v21  ;;  %v155_v23 = vld [vmem:[%s9908_s1 + $0x430] sm:$0xff]  ;;  %v154_v61 = vld [vmem:[%s9908_s1 + $0x428] sm:$0xff]  ;;  %v404_v21 = vld [vmem:[%s9906_s2 + $0x598] sm:$0xff] }
 0x167   :  { %1376 = vperm.xlu1 %5668, %v414_v44   ;;  %1371 = vperm.xlu0 %5667, %v413_v36   ;;  %v162_v36 = vld [vmem:[%s9908_s1 + $0x468] sm:$0xff] }
 0x168   :  { %3662 = vmatpush1.bf16.msra.mxu1 %v1706_v1  ;;  %3423 = vmatprep.mubr.bf16.mxu1 %v5753_v58  ;;  %v5769_v1 = vld [vmem:[%s9907_s0 + $0x480] ss:$52 sps:$4 sm:$0xff]  }
 0x169   :  { %v7433_v7 = vpop.permute.xlu1 %1026  ;;  %3663 = vmatprep.subr.bf16.mxu1 %v6060_v0  ;;  %3536 = vmatprep.mubr.bf16.mxu0 %v5755_v33 }
 0x16a   :  { %v7438_v43 = vpop.permute.xlu0 %1021 }
 0x16b   :  { %1366 = vperm.xlu1 %5668, %v412_v49   ;;  %1361 = vperm.xlu0 %5667, %v411_v55   ;;  %v159_v49 = vld [vmem:[%s9908_s1 + $0x450] sm:$0xff] }
 0x16c   :  { %3664 = vmatpush1.bf16.msra.mxu1 %v1705_v41  ;;  %v423_v41 = vld [vmem:[%s9906_s2 + $0x630] sm:$0xff] }
 0x16d   :  { %v7461_v25 = vpop.permute.xlu1 %1036  ;;  %3665 = vmatprep.subr.bf16.mxu1 %v6060_v0 }
 0x16e   :  { %v7469_v53 = vpop.permute.xlu0 %1031  ;;  %3424 = vmatmul.mubr.bf16.gmra.mxu1 %v5757_v37  ;;  %3537 = vmatmul.mubr.bf16.gmra.mxu0 %v5758_v38  ;;  %v5771_v37 = vld [vmem:[%s9907_s0 + $0x4ec] ss:$52 sps:$4 sm:$0xff]  }
 0x16f   :  { %1446 = vperm.xlu1 %5668, %v428_v57   ;;  %1441 = vperm.xlu0 %5667, %v427_v34  }
 0x170   :  { %3666 = vmatpush1.bf16.msra.mxu1 %v1704_v12  ;;  %3431 = vmatprep.mubr.bf16.mxu1 %v5759_v24  ;;  %v157_v24 = vld [vmem:[%s9908_s1 + $0x440] sm:$0xff] }
 0x171   :  { %v1142_v22 = vpop.permute.xlu1 %1141  ;;  %3667 = vmatprep.subr.bf16.mxu1 %v6060_v0  ;;  %3544 = vmatprep.mubr.bf16.mxu0 %v5761_v48  ;;  %v405_v12 = vld [vmem:[%s9906_s2 + $0x5a0] sm:$0xff] }
 0x172   :  { %v7489_v26 = vpop.permute.xlu0 %1041  ;;  %v1591_v47 = vmul.f32 %v1142_v22, %v163_v28  ;;  %v5776_v22 = vld [vmem:[%s9907_s0 + $0x218] ss:$52 sps:$4 sm:$0xff]  }
 0x173   :  { %1356 = vperm.xlu1 %5668, %v410_v5   ;;  %1351 = vperm.xlu0 %5667, %v409_v6   ;;  %v5775_v6 = vld [vmem:[%s9907_s0 + $0x4e8] ss:$52 sps:$4 sm:$0xff]  }
 0x174   :  { %3668 = vmatpush1.bf16.msra.mxu1 %v1703_v15  ;;  %v156_v15 = vld [vmem:[%s9908_s1 + $0x438] sm:$0xff] }
 0x175   :  { %v1132_v60 = vpop.permute.xlu1 %1131  ;;  %3669 = vmatprep.subr.bf16.mxu1 %v6060_v0 }
 0x176   :  { %v1147_v32 = vpop.permute.xlu0 %1146  ;;  %3432 = vmatmul.mubr.bf16.gmra.mxu1 %v5763_v14  ;;  %3545 = vmatmul.mubr.bf16.gmra.mxu0 %v5764_v27  ;;  %v1589_v17 = vmul.f32 %v1132_v60, %v161_v50  ;;  %v422_v14 = vld [vmem:[%s9906_s2 + $0x628] sm:$0xff]  ;;  %v421_v27 = vld [vmem:[%s9906_s2 + $0x620] sm:$0xff] }
 0x177   :  { %v1592_v44 = vmul.f32 %v1147_v32, %v164_v52  ;;  %1436 = vperm.xlu1 %5668, %v426_v10   ;;  %1431 = vperm.xlu0 %5667, %v425_v13   ;;  %v5779_v10 = vld [vmem:[%s9907_s0 + $0x284] ss:$52 sps:$4 sm:$0xff]  }
 0x178   :  { %3670 = vmatpush1.bf16.msra.mxu1 %v1702_v29  ;;  %3439 = vmatprep.mubr.bf16.mxu1 %v5765_v16  ;;  %v153_v60 = vld [vmem:[%s9908_s1 + $0x420] sm:$0xff]  ;;  %v403_v29 = vld [vmem:[%s9906_s2 + $0x590] sm:$0xff] }
 0x179   :  { %v1724_v58 = vpack.c.bf16 %v1592_v44, %v1591_v47  ;;  %v1122_v33 = vpop.permute.xlu1 %1121  ;;  %3671 = vmatprep.subr.bf16.mxu1 %v6060_v0  ;;  %3552 = vmatprep.mubr.bf16.mxu0 %v5767_v51  ;;  %v5781_v44 = vld [vmem:[%s9907_s0 + $0x550] ss:$52 sps:$4 sm:$0xff]  }
 0x17a   :  { %v1137_v63 = vpop.permute.xlu0 %1136  ;;  %v1587_v34 = vmul.f32 %v1122_v33, %v159_v49  ;;  %v152_v33 = vld [vmem:[%s9908_s1 + $0x418] sm:$0xff]  ;;  %v5785_v49 = vld [vmem:[%s9907_s0 + $0x2ec] ss:$52 sps:$4 sm:$0xff]  }
 0x17b   :  { %v1590_v55 = vmul.f32 %v1137_v63, %v162_v36  ;;  %1346 = vperm.xlu1 %5668, %v408_v54   ;;  %1341 = vperm.xlu0 %5667, %v407_v35   ;;  %v5782_v36 = vld [vmem:[%s9907_s0 + $0x280] ss:$52 sps:$4 sm:$0xff]  }
 0x17c   :  { %3672 = vmatpush1.bf16.msra.mxu1 %v1701_v39  ;;  %3827 = vmatpush1.bf16.msra.mxu0 %v1724_v58  ;;  %v151_v35 = vld [vmem:[%s9908_s1 + $0x410] sm:$0xff]  ;;  %v420_v39 = vld [vmem:[%s9906_s2 + $0x618] sm:$0xff] }
 0x17d   :  { %v1723_v38 = vpack.c.bf16 %v1590_v55, %v1589_v17  ;;  %v1112_v18 = vpop.permute.xlu1 %1111  ;;  %3828 = vmatprep.subr.bf16.mxu0 %v6060_v0  ;;  %3673 = vmatprep.subr.bf16.mxu1 %v6060_v0  ;;  %v419_v63 = vld [vmem:[%s9906_s2 + $0x610] sm:$0xff] }
 0x17e   :  { %v1127_v57 = vpop.permute.xlu0 %1126  ;;  %3440 = vmatmul.mubr.bf16.gmra.mxu1 %v5769_v1  ;;  %3553 = vmatmul.mubr.bf16.gmra.mxu0 %v5770_v8  ;;  %v1585_v2 = vmul.f32 %v1112_v18, %v157_v24  ;;  %v5783_v1 = vld [vmem:[%s9907_s0 + $0x5bc] ss:$52 sps:$4 sm:$0xff]   ;;  %v401_v18 = vld [vmem:[%s9906_s2 + $0x580] sm:$0xff]  ;;  %v5787_v24 = vld [vmem:[%s9907_s0 + $0x5b8] ss:$52 sps:$4 sm:$0xff]  }
 0x17f   :  { %v1588_v48 = vmul.f32 %v1127_v57, %v160_v3  ;;  %1426 = vperm.xlu1 %5668, %v424_v40   ;;  %1421 = vperm.xlu0 %5667, %v423_v41   ;;  %v149_v40 = vld [vmem:[%s9908_s1 + $0x400] sm:$0xff] }
 0x180   :  { %3829 = vmatpush1.bf16.msra.mxu0 %v1723_v38  ;;  %3447 = vmatprep.mubr.bf16.mxu1 %v5771_v37  ;;  %v150_v37 = vld [vmem:[%s9908_s1 + $0x408] sm:$0xff] }
 0x181   :  { %v1722_v45 = vpack.c.bf16 %v1588_v48, %v1587_v34  ;;  %v1102_v46 = vpop.permute.xlu1 %1101  ;;  %3830 = vmatprep.subr.bf16.mxu0 %v6060_v0  ;;  %3560 = vmatprep.mubr.bf16.mxu0 %v5773_v56  ;;  %v402_v38 = vld [vmem:[%s9906_s2 + $0x588] sm:$0xff] }
 0x182   :  { %v1117_v5 = vpop.permute.xlu0 %1116  ;;  %v1583_v16 = vmul.f32 %v1102_v46, %v155_v23  ;;  %v5788_v48 = vld [vmem:[%s9907_s0 + $0x2e8] ss:$52 sps:$4 sm:$0xff]  }
 0x183   :  { %v1586_v20 = vmul.f32 %v1117_v5, %v158_v30  ;;  %1336 = vperm.xlu1 %5668, %v406_v31   ;;  %1331 = vperm.xlu0 %5667, %v405_v12   ;;  %v147_v31 = vld [vmem:[%s9908_s1 + $0x3f0] sm:$0xff]  ;;  %v418_v46 = vld [vmem:[%s9906_s2 + $0x608] sm:$0xff]  ;;  %v417_v5 = vld [vmem:[%s9906_s2 + $0x600] sm:$0xff] }
 0x184   :  { %3831 = vmatpush1.bf16.msra.mxu0 %v1722_v45  ;;  %v148_v45 = vld [vmem:[%s9908_s1 + $0x3f8] sm:$0xff]  ;;  %v5791_v23 = vld [vmem:[%s9907_s0 + $0x354] ss:$52 sps:$4 sm:$0xff]  }
 0x185   :  { %v1721_v28 = vpack.c.bf16 %v1586_v20, %v1585_v2  ;;  %v1092_v52 = vpop.permute.xlu1 %1091  ;;  %3832 = vmatprep.subr.bf16.mxu0 %v6060_v0 }
 0x186   :  { %v1107_v13 = vpop.permute.xlu0 %1106  ;;  %3448 = vmatmul.mubr.bf16.gmra.mxu1 %v5775_v6  ;;  %3561 = vmatmul.mubr.bf16.gmra.mxu0 %v5776_v22  ;;  %v1581_v54 = vmul.f32 %v1092_v52, %v153_v60  ;;  %v5789_v6 = vld [vmem:[%s9907_s0 + $0x624] ss:$52 sps:$4 sm:$0xff]   ;;  %v4778_v52 = vld [vmem:[%s9909_s3 + $0x8] sm:$0xff]  ;;  %v5793_v60 = vld [vmem:[%s9907_s0 + $0x620] ss:$52 sps:$4 sm:$0xff]  }
 0x187   :  { %v1584_v51 = vmul.f32 %v1107_v13, %v156_v15  ;;  %1416 = vperm.xlu1 %5668, %v422_v14   ;;  %1411 = vperm.xlu0 %5667, %v421_v27   ;;  %v179_v14 = vld [vmem:[%s9908_s1 + $0x4f0] sm:$0xff] }
 0x188   :  { %3833 = vmatpush1.bf16.msra.mxu0 %v1721_v28  ;;  %3455 = vmatprep.mubr.bf16.mxu1 %v5777_v62  ;;  %v180_v62 = vld [vmem:[%s9908_s1 + $0x4f8] sm:$0xff]  ;;  %v4777_v28 = vld [vmem:[%s9909_s3] sm:$0xff] }
 0x189   :  { %v1720_v32 = vpack.c.bf16 %v1584_v51, %v1583_v16  ;;  %v1082_v47 = vpop.permute.xlu1 %1081  ;;  %3834 = vmatprep.subr.bf16.mxu0 %v6060_v0  ;;  %3568 = vmatprep.mubr.bf16.mxu0 %v5779_v10  ;;  %v5794_v51 = vld [vmem:[%s9907_s0 + $0x350] ss:$52 sps:$4 sm:$0xff]  }
 0x18a   :  { %v1097_v50 = vpop.permute.xlu0 %1096  ;;  %v1579_v3 = vmul.f32 %v1082_v47, %v151_v35  ;;  %v4779_v47 = vld [vmem:[%s9909_s3 + $0x10] sm:$0xff] }
 0x18b   :  { %v1582_v58 = vmul.f32 %v1097_v50, %v154_v61  ;;  %1326 = vperm.xlu1 %5668, %v404_v21   ;;  %1321 = vperm.xlu0 %5667, %v403_v29   ;;  %v145_v21 = vld [vmem:[%s9908_s1 + $0x3e0] sm:$0xff]  ;;  %v5797_v35 = vld [vmem:[%s9907_s0 + $0x3bc] ss:$52 sps:$4 sm:$0xff]  }
 0x18c   :  { %3835 = vmatpush1.bf16.msra.mxu0 %v1720_v32  ;;  %v146_v32 = vld [vmem:[%s9908_s1 + $0x3e8] sm:$0xff]  ;;  %v4781_v50 = vld [vmem:[%s9909_s3 + $0x20] sm:$0xff] }
 0x18d   :  { %v1719_v8 = vpack.c.bf16 %v1582_v58, %v1581_v54  ;;  %v1072_v17 = vpop.permute.xlu1 %1071  ;;  %3836 = vmatprep.subr.bf16.mxu0 %v6060_v0 }
 0x18e   :  { %v1087_v55 = vpop.permute.xlu0 %1086  ;;  %3456 = vmatmul.mubr.bf16.gmra.mxu1 %v5781_v44  ;;  %3569 = vmatmul.mubr.bf16.gmra.mxu0 %v5782_v36  ;;  %v1577_v30 = vmul.f32 %v1072_v17, %v149_v40  ;;  %v5795_v44 = vld [vmem:[%s9907_s0 + $0x68c] ss:$52 sps:$4 sm:$0xff]   ;;  %v144_v17 = vld [vmem:[%s9908_s1 + $0x3d8] sm:$0xff]  ;;  %v4783_v40 = vld [vmem:[%s9909_s3 + $0x30] sm:$0xff] }
 0x18f   :  { %v1580_v41 = vmul.f32 %v1087_v55, %v152_v33  ;;  %1406 = vperm.xlu1 %5668, %v420_v39   ;;  %1401 = vperm.xlu0 %5667, %v419_v63   ;;  %v143_v39 = vld [vmem:[%s9908_s1 + $0x3d0] sm:$0xff]  ;;  %v178_v55 = vld [vmem:[%s9908_s1 + $0x4e8] sm:$0xff] }
 0x190   :  { %3837 = vmatpush1.bf16.msra.mxu0 %v1719_v8  ;;  %3463 = vmatprep.mubr.bf16.mxu1 %v5783_v1  ;;  %v177_v1 = vld [vmem:[%s9908_s1 + $0x4e0] sm:$0xff] }
 0x191   :  { %v1718_v56 = vpack.c.bf16 %v1580_v41, %v1579_v3  ;;  %v1062_v57 = vpop.permute.xlu1 %1061  ;;  %3838 = vmatprep.subr.bf16.mxu0 %v6060_v0  ;;  %3576 = vmatprep.mubr.bf16.mxu0 %v5785_v49  ;;  %v4780_v3 = vld [vmem:[%s9909_s3 + $0x18] sm:$0xff] }
 0x192   :  { %v1077_v34 = vpop.permute.xlu0 %1076  ;;  %v1575_v15 = vmul.f32 %v1062_v57, %v147_v31 }
 0x193   :  { %v1578_v12 = vmul.f32 %v1077_v34, %v150_v37  ;;  %1316 = vperm.xlu1 %5668, %v402_v38   ;;  %1311 = vperm.xlu0 %5667, %v401_v18   ;;  %v1571_v18 = vmul.f32 %v7489_v26, %v143_v39  ;;  %v141_v26 = vld [vmem:[%s9908_s1 + $0x3c0] sm:$0xff] }
 0x194   :  { %3839 = vmatpush1.bf16.msra.mxu0 %v1718_v56 }
 0x195   :  { %v1717_v22 = vpack.c.bf16 %v1578_v12, %v1577_v30  ;;  %v1222_v2 = vpop.permute.xlu1 %1221  ;;  %3840 = vmatprep.subr.bf16.mxu0 %v6060_v0  ;;  %v142_v30 = vld [vmem:[%s9908_s1 + $0x3c8] sm:$0xff] }
 0x196   :  { %v1067_v20 = vpop.permute.xlu0 %1066  ;;  %3464 = vmatmul.mubr.bf16.gmra.mxu1 %v5787_v24  ;;  %3577 = vmatmul.mubr.bf16.gmra.mxu0 %v5788_v48  ;;  %v1607_v61 = vmul.f32 %v1222_v2, %v179_v14  ;;  %v5799_v24 = vld [vmem:[%s9907_s0 + $0x688] ss:$52 sps:$4 sm:$0xff]   ;;  %v5800_v48 = vld [vmem:[%s9907_s0 + $0x3b8] ss:$52 sps:$4 sm:$0xff]  }
 0x197   :  { %v1576_v27 = vmul.f32 %v1067_v20, %v148_v45  ;;  %1396 = vperm.xlu1 %5668, %v418_v46   ;;  %1391 = vperm.xlu0 %5667, %v417_v5   ;;  %v176_v45 = vld [vmem:[%s9908_s1 + $0x4d8] sm:$0xff]  ;;  %v4782_v2 = vld [vmem:[%s9909_s3 + $0x28] sm:$0xff] }
 0x198   :  { %3841 = vmatpush1.bf16.msra.mxu0 %v1717_v22  ;;  %3471 = vmatprep.mubr.bf16.mxu1 %v5789_v6  ;;  %v175_v22 = vld [vmem:[%s9908_s1 + $0x4d0] sm:$0xff] }
 0x199   :  { %v1716_v10 = vpack.c.bf16 %v1576_v27, %v1575_v15  ;;  %v1052_v13 = vpop.permute.xlu1 %1051  ;;  %3584 = vmatprep.mubr.bf16.mxu0 %v5791_v23  ;;  %3842 = vmatprep.subr.bf16.mxu0 %v6060_v0  ;;  %v4785_v23 = vld [vmem:[%s9909_s3 + $0x40] sm:$0xff]  ;;  %v140_v27 = vld [vmem:[%s9908_s1 + $0x3b8] sm:$0xff] }
 0x19a   :  { %v1227_v16 = vpop.permute.xlu0 %1226  ;;  %v1573_v63 = vmul.f32 %v1052_v13, %v145_v21 }
 0x19b   :  { %v1608_v29 = vmul.f32 %v1227_v16, %v180_v62  ;;  %4813 = vperm.xlu1 %5668, %v4777_v28   ;;  %4818 = vperm.xlu0 %5667, %v4778_v52   ;;  %v1570_v62 = vmul.f32 %v7461_v25, %v142_v30  ;;  %v1569_v28 = vmul.f32 %v7469_v53, %v141_v26  ;;  %v5801_v16 = vld [vmem:[%s9907_s0 + $0x424] ss:$52 sps:$4 sm:$0xff]   ;;  %v139_v25 = vld [vmem:[%s9908_s1 + $0x3b0] sm:$0xff]  ;;  %v174_v53 = vld [vmem:[%s9908_s1 + $0x4c8] sm:$0xff] }
 0x19c   :  { %3674 = vmatpush2.bf16.msra.mxu1 %v1716_v10 }
 0x19d   :  { %v1732_v36 = vpack.c.bf16 %v1608_v29, %v1607_v61  ;;  %v1212_v54 = vpop.permute.xlu1 %1211  ;;  %3675 = vmatprep.subr.bf16.mxu1 %v6060_v0  ;;  %v173_v29 = vld [vmem:[%s9908_s1 + $0x4c0] sm:$0xff] }
 0x19e   :  { %v1057_v58 = vpop.permute.xlu0 %1056  ;;  %v7712_v33 = vpop.f32.mrf.mxu1  ;;  %3472 = vmatmul.mubr.bf16.gmra.mxu1 %v5793_v60  ;;  %3585 = vmatmul.mubr.bf16.gmra.mxu0 %v5794_v51  ;;  %v1605_v31 = vmul.f32 %v1212_v54, %v177_v1  ;;  %v5811_v60 = vld [vmem:[%s9907_s0 + $0x1c] ss:$52 sps:$4 sm:$0xff]  }
 0x19f   :  { %v1574_v8 = vmul.f32 %v1057_v58, %v146_v32  ;;  %4823 = vperm.xlu1 %5668, %v4779_v47   ;;  %4833 = vperm.xlu0 %5667, %v4781_v50   ;;  %v4784_v32 = vld [vmem:[%s9909_s3 + $0x38] sm:$0xff]  ;;  %v4787_v47 = vld [vmem:[%s9909_s3 + $0x50] sm:$0xff]  ;;  %v1568_v50 = vmul.f32 %v7433_v7, %v140_v27  ;;  %v1713_v58 = vpack.c.bf16 %v1570_v62, %v1569_v28 }
 0x1a0   :  { %3843 = vmatpush2.bf16.msra.mxu0 %v1732_v36  ;;  %v3250_v49 = vpop.f32.mrf.mxu1  ;;  %3479 = vmatprep.mubr.bf16.mxu1 %v5795_v44  ;;  %v5803_v7 = vld [vmem:[%s9907_s0 + $0x420] ss:$52 sps:$4 sm:$0xff]  }
 0x1a1   :  { %v1715_v41 = vpack.c.bf16 %v1574_v8, %v1573_v63  ;;  %v1047_v37 = vpop.permute.xlu1 %1046  ;;  %3592 = vmatprep.mubr.bf16.mxu0 %v5797_v35  ;;  %3844 = vmatprep.subr.bf16.mxu0 %v6060_v0  ;;  %v7733_v38 = vpop.f32.mrf.mxu0  ;;  %v1567_v35 = vmul.f32 %v7438_v43, %v139_v25  ;;  %v138_v8 = vld [vmem:[%s9908_s1 + $0x3a8] sm:$0xff]  ;;  %v172_v49 = vld [vmem:[%s9908_s1 + $0x4b8] sm:$0xff] }
 0x1a2   :  { %v1572_v56 = vmul.f32 %v1047_v37, %v144_v17  ;;  %v1217_v57 = vpop.permute.xlu0 %1216  ;;  %v7736_v34 = vpop.f32.mrf.mxu1  ;;  %v137_v17 = vld [vmem:[%s9908_s1 + $0x3a0] sm:$0xff] }
 0x1a3   :  { %v1606_v12 = vmul.f32 %v1217_v57, %v178_v55  ;;  %4828 = vperm.xlu1 %5668, %v4780_v3   ;;  %4843 = vperm.xlu0 %5667, %v4783_v40   ;;  %v3186_v46 = vpop.f32.mrf.mxu0  ;;  %v171_v40 = vld [vmem:[%s9908_s1 + $0x4b0] sm:$0xff]  ;;  %v4789_v37 = vld [vmem:[%s9909_s3 + $0x60] sm:$0xff]  ;;  %v1712_v30 = vpack.c.bf16 %v1568_v50, %v1567_v35 }
 0x1a4   :  { %v1714_v5 = vpack.c.bf16 %v1572_v56, %v1571_v18  ;;  %3676 = vmatpush2.bf16.msra.mxu1 %v1715_v41  ;;  %v3253_v6 = vpop.f32.mrf.mxu1  ;;  %v4786_v41 = vld [vmem:[%s9909_s3 + $0x48] sm:$0xff]  ;;  %v136_v46 = vld [vmem:[%s9908_s1 + $0x398] sm:$0xff]  ;;  %v4793_v50 = vld [vmem:[%s9909_s3 + $0x80] sm:$0xff] }
 0x1a5   :  { %v1731_v20 = vpack.c.bf16 %v1606_v12, %v1605_v31  ;;  %v1207_v15 = vpop.permute.xlu1 %1206  ;;  %3677 = vmatprep.subr.bf16.mxu1 %v6060_v0  ;;  %v7763_v14 = vpop.f32.mrf.mxu0  ;;  %v1564_v28 = vmul.f32 %v7385_v4, %v136_v46  ;;  %v133_v4 = vld [vmem:[%s9908_s1 + $0x380] sm:$0xff]  ;;  %v5809_v46 = vld [vmem:[%s9907_s0 + $0x18] ss:$52 sps:$4 sm:$0xff]  }
 0x1a6   :  { %v1604_v52 = vmul.f32 %v1207_v15, %v176_v45  ;;  %v1202_v10 = vpop.permute.xlu0 %1201  ;;  %v7770_v13 = vpop.f32.mrf.mxu1  ;;  %3480 = vmatmul.mubr.bf16.gmra.mxu1 %v5799_v24  ;;  %3593 = vmatmul.mubr.bf16.gmra.mxu0 %v5800_v48  ;;  %v1566_v24 = vmul.f32 %v7411_v59, %v138_v8  ;;  %v1565_v48 = vmul.f32 %v7419_v42, %v137_v17  ;;  %v5804_v45 = vld [vmem:[%s9907_s0 + $0x48c] ss:$52 sps:$4 sm:$0xff]   ;;  %v135_v59 = vld [vmem:[%s9908_s1 + $0x390] sm:$0xff] }
 0x1a7   :  { %v1603_v51 = vmul.f32 %v1202_v10, %v175_v22  ;;  %4838 = vperm.xlu1 %5668, %v4782_v2   ;;  %4853 = vperm.xlu0 %5667, %v4785_v23   ;;  %v3189_v61 = vpop.f32.mrf.mxu0  ;;  %v170_v42 = vld [vmem:[%s9908_s1 + $0x4a8] sm:$0xff]  ;;  %v169_v2 = vld [vmem:[%s9908_s1 + $0x4a0] sm:$0xff]  ;;  %v4788_v23 = vld [vmem:[%s9909_s3 + $0x58] sm:$0xff] }
 0x1a8   :  { %3678 = vmatpush2.bf16.msra.mxu1 %v1714_v5  ;;  %3845 = vmatpush2.bf16.msra.mxu0 %v1731_v20  ;;  %v3258_v21 = vpop.f32.mrf.mxu1  ;;  %v4791_v20 = vld [vmem:[%s9909_s3 + $0x70] sm:$0xff]  ;;  %v1711_v10 = vpack.c.bf16 %v1566_v24, %v1565_v48 }
 0x1a9   :  { %v1730_v44 = vpack.c.bf16 %v1604_v52, %v1603_v51  ;;  %v1197_v36 = vpop.permute.xlu1 %1196  ;;  %3679 = vmatprep.subr.bf16.mxu1 %v6060_v0  ;;  %3846 = vmatprep.subr.bf16.mxu0 %v6060_v0  ;;  %v7796_v54 = vpop.f32.mrf.mxu0  ;;  %v1563_v52 = vmul.f32 %v7388_v11, %v135_v59  ;;  %v5806_v51 = vld [vmem:[%s9907_s0 + $0x488] ss:$52 sps:$4 sm:$0xff]  }
 0x1aa   :  { %v1602_v39 = vmul.f32 %v1197_v36, %v174_v53  ;;  %v1192_v63 = vpop.permute.xlu0 %1191  ;;  %v7799_v1 = vpop.f32.mrf.mxu1  ;;  %3600 = vmatprep.mubr.bf16.mxu0 %v5801_v16  ;;  %3689 = vmatprep.mubr.bf16.mxu1 %v5811_v60  ;;  %v134_v53 = vld [vmem:[%s9908_s1 + $0x388] sm:$0xff]  ;;  %v168_v11 = vld [vmem:[%s9908_s1 + $0x498] sm:$0xff] }
 0x1ab   :  { %v1601_v43 = vmul.f32 %v1192_v63, %v173_v29  ;;  %4848 = vperm.xlu1 %5668, %v4784_v32   ;;  %4863 = vperm.xlu0 %5667, %v4787_v47   ;;  %v3194_v55 = vpop.f32.mrf.mxu0  ;;  %v167_v32 = vld [vmem:[%s9908_s1 + $0x490] sm:$0xff]  ;;  %v4790_v47 = vld [vmem:[%s9909_s3 + $0x68] sm:$0xff]  ;;  %v1710_v63 = vpack.c.bf16 %v1564_v28, %v1563_v52  ;;  %v196_v59 = vld [vmem:[%s9908_s1 + $0x578] sm:$0xff] }
 0x1ac   :  { %3680 = vmatpush2.bf16.msra.mxu1 %v1713_v58  ;;  %3847 = vmatpush2.bf16.msra.mxu0 %v1730_v44  ;;  %v3261_v3 = vpop.f32.mrf.mxu1  ;;  %v1562_v58 = vmul.f32 %v7366_v9, %v134_v53  ;;  %v166_v55 = vld [vmem:[%s9908_s1 + $0x488] sm:$0xff] }
 0x1ad   :  { %v1729_v18 = vpack.c.bf16 %v1602_v39, %v1601_v43  ;;  %v1187_v56 = vpop.permute.xlu1 %1186  ;;  %3681 = vmatprep.subr.bf16.mxu1 %v6060_v0  ;;  %3848 = vmatprep.subr.bf16.mxu0 %v6060_v0  ;;  %v7824_v57 = vpop.f32.mrf.mxu0  ;;  %v1561_v39 = vmul.f32 %v7371_v19, %v133_v4  ;;  %v5807_v43 = vld [vmem:[%s9907_s0 + $0x4f4] ss:$52 sps:$4 sm:$0xff]   ;;  %v165_v3 = vld [vmem:[%s9908_s1 + $0x480] sm:$0xff] }
 0x1ae   :  { %v1600_v26 = vmul.f32 %v1187_v56, %v172_v49  ;;  %v1182_v31 = vpop.permute.xlu0 %1181  ;;  %v7828_v12 = vpop.f32.mrf.mxu1  ;;  %3601 = vmatmul.mubr.bf16.gmra.mxu0 %v5803_v7 }
 0x1af   :  { %v1599_v5 = vmul.f32 %v1182_v31, %v171_v40  ;;  %4858 = vperm.xlu1 %5668, %v4786_v41   ;;  %4873 = vperm.xlu0 %5667, %v4789_v37   ;;  %v3197_v6 = vpop.f32.mrf.mxu0  ;;  %v4792_v40 = vld [vmem:[%s9909_s3 + $0x78] sm:$0xff]  ;;  %v4795_v41 = vld [vmem:[%s9909_s3 + $0x90] sm:$0xff]  ;;  %v1709_v24 = vpack.c.bf16 %v1562_v58, %v1561_v39  ;;  %v6061_v39 = vmov 0.0  }
 0x1b0   :  { %3682 = vmatpush2.bf16.msra.mxu1 %v1712_v30  ;;  %3849 = vmatpush2.bf16.msra.mxu0 %v1729_v18  ;;  %v3266_v22 = vpop.f32.mrf.mxu1  ;;  %v5812_v31 = vld [vmem:[%s9907_s0 + $0x4f0] ss:$52 sps:$4 sm:$0xff]   ;;  %v5817_v58 = vld [vmem:[%s9907_s0 + $0x558] ss:$52 sps:$4 sm:$0xff]  }
 0x1b1   :  { %v1728_v15 = vpack.c.bf16 %v1600_v26, %v1599_v5  ;;  %v1177_v27 = vpop.permute.xlu1 %1176  ;;  %3683 = vmatprep.subr.bf16.mxu1 %v6060_v0  ;;  %3850 = vmatprep.subr.bf16.mxu0 %v6060_v0  ;;  %v7853_v62 = vpop.f32.mrf.mxu0  ;;  %v195_v6 = vld [vmem:[%s9908_s1 + $0x570] sm:$0xff]  ;;  %v4794_v22 = vld [vmem:[%s9909_s3 + $0x88] sm:$0xff] }
 0x1b2   :  { %v1598_v16 = vmul.f32 %v1177_v27, %v170_v42  ;;  %v1172_v60 = vpop.permute.xlu0 %1171  ;;  %v7857_v25 = vpop.f32.mrf.mxu1  ;;  %3608 = vmatprep.mubr.bf16.mxu0 %v5804_v45  ;;  %v5815_v27 = vld [vmem:[%s9907_s0 + $0x84] ss:$52 sps:$4 sm:$0xff]  }
 0x1b3   :  { %v1597_v61 = vmul.f32 %v1172_v60, %v169_v2  ;;  %4868 = vperm.xlu1 %5668, %v4788_v23   ;;  %4883 = vperm.xlu0 %5667, %v4791_v20   ;;  %v3202_v21 = vpop.f32.mrf.mxu0  ;;  %v4797_v20 = vld [vmem:[%s9909_s3 + $0xa0] sm:$0xff] }
 0x1b4   :  { %3684 = vmatpush2.bf16.msra.mxu1 %v1711_v10  ;;  %3851 = vmatpush2.bf16.msra.mxu0 %v1728_v15  ;;  %v3269_v29 = vpop.f32.mrf.mxu1  ;;  %v5813_v15 = vld [vmem:[%s9907_s0 + $0x55c] ss:$52 sps:$4 sm:$0xff]  }
 0x1b5   :  { %v1727_v44 = vpack.c.bf16 %v1598_v16, %v1597_v61  ;;  %v1167_v36 = vpop.permute.xlu1 %1166  ;;  %3685 = vmatprep.subr.bf16.mxu1 %v6060_v0  ;;  %3852 = vmatprep.subr.bf16.mxu0 %v6060_v0  ;;  %v7882_v35 = vpop.f32.mrf.mxu0  ;;  %v193_v61 = vld [vmem:[%s9908_s1 + $0x560] sm:$0xff] }
 0x1b6   :  { %v1596_v7 = vmul.f32 %v1167_v36, %v168_v11  ;;  %v1162_v8 = vpop.permute.xlu0 %1161  ;;  %v7886_v17 = vpop.f32.mrf.mxu1  ;;  %3609 = vmatmul.mubr.bf16.gmra.mxu0 %v5806_v51  ;;  %v194_v51 = vld [vmem:[%s9908_s1 + $0x568] sm:$0xff]  ;;  %v4796_v11 = vld [vmem:[%s9909_s3 + $0x98] sm:$0xff] }
 0x1b7   :  { %v1595_v49 = vmul.f32 %v1162_v8, %v167_v32  ;;  %4878 = vperm.xlu1 %5668, %v4790_v47   ;;  %4893 = vperm.xlu0 %5667, %v4793_v50   ;;  %v3205_v9 = vpop.f32.mrf.mxu0  ;;  %v4799_v32 = vld [vmem:[%s9909_s3 + $0xb0] sm:$0xff] }
 0x1b8   :  { %3686 = vmatpush2.bf16.msra.mxu1 %v1710_v63  ;;  %3853 = vmatpush2.bf16.msra.mxu0 %v1727_v44  ;;  %v3274_v19 = vpop.f32.mrf.mxu1  ;;  %v5818_v8 = vld [vmem:[%s9907_s0 + $0x80] ss:$52 sps:$4 sm:$0xff]   ;;  %v4798_v9 = vld [vmem:[%s9909_s3 + $0xa8] sm:$0xff] }
 0x1b9   :  { %v1726_v37 = vpack.c.bf16 %v1596_v7, %v1595_v49  ;;  %v1157_v18 = vpop.permute.xlu1 %1156  ;;  %3687 = vmatprep.subr.bf16.mxu1 %v6060_v0  ;;  %3854 = vmatprep.subr.bf16.mxu0 %v6060_v0  ;;  %v7905_v56 = vpop.f32.mrf.mxu0  ;;  %v192_v7 = vld [vmem:[%s9908_s1 + $0x558] sm:$0xff] }
 0x1ba   :  { %v1594_v48 = vmul.f32 %v1157_v18, %v166_v55  ;;  %v1152_v30 = vpop.permute.xlu0 %1151  ;;  %v7907_v26 = vpop.f32.mrf.mxu1  ;;  %3616 = vmatprep.mubr.bf16.mxu0 %v5807_v43  ;;  %v191_v55 = vld [vmem:[%s9908_s1 + $0x550] sm:$0xff] }
 0x1bb   :  { %v1593_v45 = vmul.f32 %v1152_v30, %v165_v3  ;;  %4888 = vperm.xlu1 %5668, %v4792_v40   ;;  %4903 = vperm.xlu0 %5667, %v4795_v41   ;;  %v3210_v5 = vpop.f32.mrf.mxu0  ;;  %v4801_v40 = vld [vmem:[%s9909_s3 + $0xc0] sm:$0xff] }
 0x1bc   :  { %3688 = vmatpush2.bf16.msra.mxu1 %v1709_v24  ;;  %3855 = vmatpush2.bf16.msra.mxu0 %v1726_v37  ;;  %v3277_v42 = vpop.f32.mrf.mxu1  ;;  %v5819_v41 = vld [vmem:[%s9907_s0 + $0x5c4] ss:$52 sps:$4 sm:$0xff]   ;;  %v5823_v30 = vld [vmem:[%s9907_s0 + $0xec] ss:$52 sps:$4 sm:$0xff]  }
 0x1bd   :  { %v1725_v2 = vpack.c.bf16 %v1594_v48, %v1593_v45  ;;  %v1307_v23 = vpop.permute.xlu1 %1306  ;;  %3856 = vmatprep.subr.bf16.mxu0 %v6060_v0  ;;  %3995 = vmatprep.subr.bf16.mxu1 %v6060_v0  ;;  %v7935_v28 = vpop.f32.mrf.mxu0  ;;  %v190_v45 = vld [vmem:[%s9908_s1 + $0x548] sm:$0xff]  ;;  %v189_v5 = vld [vmem:[%s9908_s1 + $0x540] sm:$0xff]  ;;  %v4800_v42 = vld [vmem:[%s9909_s3 + $0xb8] sm:$0xff] }
 0x1be   :  { %v1624_v52 = vmul.f32 %v1307_v23, %v196_v59  ;;  %v1302_v10 = vpop.permute.xlu0 %1301  ;;  %v7937_v16 = vpop.f32.mrf.mxu1  ;;  %3617 = vmatmul.mubr.bf16.gmra.mxu0 %v5812_v31 }
 0x1bf   :  { %v1623_v60 = vmul.f32 %v1302_v10, %v195_v6  ;;  %3690 = vmatmul.mubr.bf16.vlgmr.msra.gmra.mxu1 %v5809_v46  ;;  %4898 = vperm.xlu1 %5668, %v4794_v22   ;;  %v3213_v53 = vpop.f32.mrf.mxu0 }
 0x1c0   :  { %4913 = vperm.xlu0 %5667, %v4797_v20   ;;  %3857 = vmatpush2.bf16.msra.mxu0 %v1725_v2  ;;  %v3282_v4 = vpop.f32.mrf.mxu1  ;;  %v4803_v2 = vld [vmem:[%s9909_s3 + $0xd0] sm:$0xff] }
 0x1c1   :  { %v1740_v21 = vpack.c.bf16 %v1624_v52, %v1623_v60  ;;  %v1297_v29 = vpop.permute.xlu1 %1296  ;;  %3624 = vmatprep.mubr.bf16.mxu0 %v5813_v15  ;;  %3697 = vmatprep.mubr.bf16.mxu1 %v5815_v27  ;;  %v7951_v47 = vpop.f32.mrf.mxu0  ;;  %v5824_v52 = vld [vmem:[%s9907_s0 + $0x5c0] ss:$52 sps:$4 sm:$0xff]   ;;  %v5821_v60 = vld [vmem:[%s9907_s0 + $0xe8] ss:$52 sps:$4 sm:$0xff]  }
 0x1c2   :  { %v1622_v50 = vmul.f32 %v1297_v29, %v194_v51  ;;  %v1292_v44 = vpop.permute.xlu0 %1291  ;;  %v7953_v36 = vpop.f32.mrf.mxu1  ;;  %5552 = vmatprep.subr.bf16.mxu0 %v6061_v39  ;;  %v188_v51 = vld [vmem:[%s9908_s1 + $0x538] sm:$0xff] }
 0x1c3   :  { %v1621_v63 = vmul.f32 %v1292_v44, %v193_v61  ;;  %4908 = vperm.xlu1 %5668, %v4796_v11   ;;  %3996 = vmatpush1.bf16.msra.mxu1 %v1740_v21  ;;  %v3218_v43 = vpop.f32.mrf.mxu0  ;;  %v187_v61 = vld [vmem:[%s9908_s1 + $0x530] sm:$0xff]  ;;  %v4802_v11 = vld [vmem:[%s9909_s3 + $0xc8] sm:$0xff] }
 0x1c4   :  { %4923 = vperm.xlu0 %5667, %v4799_v32   ;;  %v3285_v49 = vpop.f32.mrf.mxu1  ;;  %3997 = vmatprep.subr.bf16.mxu1 %v6060_v0  ;;  %v4805_v32 = vld [vmem:[%s9909_s3 + $0xe0] sm:$0xff] }
 0x1c5   :  { %v1739_v19 = vpack.c.bf16 %v1622_v50, %v1621_v63  ;;  %v1287_v3 = vpop.permute.xlu1 %1286  ;;  %v7978_v37 = vpop.f32.mrf.mxu0  ;;  %v5825_v50 = vld [vmem:[%s9907_s0 + $0x62c] ss:$52 sps:$4 sm:$0xff]  }
 0x1c6   :  { %v1620_v18 = vmul.f32 %v1287_v3, %v192_v7  ;;  %v1282_v24 = vpop.permute.xlu0 %1281  ;;  %v7980_v48 = vpop.f32.mrf.mxu1  ;;  %3625 = vmatmul.mubr.bf16.gmra.mxu0 %v5817_v58  ;;  %v186_v49 = vld [vmem:[%s9908_s1 + $0x528] sm:$0xff]  ;;  %v4804_v3 = vld [vmem:[%s9909_s3 + $0xd8] sm:$0xff] }
 0x1c7   :  { %v1619_v31 = vmul.f32 %v1282_v24, %v191_v55  ;;  %3698 = vmatmul.mubr.bf16.gmra.mxu1 %v5818_v8  ;;  %4918 = vperm.xlu1 %5668, %v4798_v9   ;;  %v3221_v46 = vpop.f32.mrf.mxu0  ;;  %v5829_v8 = vld [vmem:[%s9907_s0 + $0x154] ss:$52 sps:$4 sm:$0xff]  }
 0x1c8   :  { %4933 = vperm.xlu0 %5667, %v4801_v40   ;;  %3998 = vmatpush1.bf16.msra.mxu1 %v1739_v19  ;;  %v3290_v59 = vpop.f32.mrf.mxu1  ;;  %v185_v19 = vld [vmem:[%s9908_s1 + $0x520] sm:$0xff]  ;;  %v5830_v46 = vld [vmem:[%s9907_s0 + $0x628] ss:$52 sps:$4 sm:$0xff]  }
 0x1c9   :  { %v1738_v6 = vpack.c.bf16 %v1620_v18, %v1619_v31  ;;  %v1277_v22 = vpop.permute.xlu1 %1276  ;;  %3999 = vmatprep.subr.bf16.mxu1 %v6060_v0  ;;  %3632 = vmatprep.mubr.bf16.mxu0 %v5819_v41  ;;  %v7998_v23 = vpop.f32.mrf.mxu0  ;;  %v4807_v18 = vld [vmem:[%s9909_s3 + $0xf0] sm:$0xff] }
 0x1ca   :  { %v1618_v20 = vmul.f32 %v1277_v22, %v190_v45  ;;  %v1272_v15 = vpop.permute.xlu0 %1271  ;;  %v8000_v27 = vpop.f32.mrf.mxu1  ;;  %3705 = vmatprep.mubr.bf16.mxu1 %v5823_v30 }
 0x1cb   :  { %v1617_v10 = vmul.f32 %v1272_v15, %v189_v5  ;;  %4928 = vperm.xlu1 %5668, %v4800_v42   ;;  %v3226_v53 = vpop.f32.mrf.mxu0  ;;  %v5827_v5 = vld [vmem:[%s9907_s0 + $0x150] ss:$52 sps:$4 sm:$0xff]   ;;  %v184_v42 = vld [vmem:[%s9908_s1 + $0x518] sm:$0xff] }
 0x1cc   :  { %4943 = vperm.xlu0 %5667, %v4803_v2   ;;  %4000 = vmatpush1.bf16.msra.mxu1 %v1738_v6  ;;  %v3293_v4 = vpop.f32.mrf.mxu1  ;;  %v183_v2 = vld [vmem:[%s9908_s1 + $0x510] sm:$0xff] }
 0x1cd   :  { %v1737_v21 = vpack.c.bf16 %v1618_v20, %v1617_v10  ;;  %v1267_v29 = vpop.permute.xlu1 %1266  ;;  %4001 = vmatprep.subr.bf16.mxu1 %v6060_v0  ;;  %v8024_v44 = vpop.f32.mrf.mxu0  ;;  %v4806_v20 = vld [vmem:[%s9909_s3 + $0xe8] sm:$0xff]  ;;  %v4809_v10 = vld [vmem:[%s9909_s3 + $0x100] sm:$0xff] }
 0x1ce   :  { %v1616_v58 = vmul.f32 %v1267_v29, %v188_v51  ;;  %v1262_v63 = vpop.permute.xlu0 %1261  ;;  %v8026_v7 = vpop.f32.mrf.mxu1  ;;  %3633 = vmatmul.mubr.bf16.gmra.mxu0 %v5824_v52 }
 0x1cf   :  { %v1615_v43 = vmul.f32 %v1262_v63, %v187_v61  ;;  %3706 = vmatmul.mubr.bf16.gmra.mxu1 %v5821_v60  ;;  %4938 = vperm.xlu1 %5668, %v4802_v11   ;;  %v3229_v55 = vpop.f32.mrf.mxu0  ;;  %v5831_v60 = vld [vmem:[%s9907_s0 + $0x694] ss:$52 sps:$4 sm:$0xff]   ;;  %v5835_v11 = vld [vmem:[%s9907_s0 + $0x1bc] ss:$52 sps:$4 sm:$0xff]  }
 0x1d0   :  { %4953 = vperm.xlu0 %5667, %v4805_v32   ;;  %4002 = vmatpush1.bf16.msra.mxu1 %v1737_v21  ;;  %v3298_v9 = vpop.f32.mrf.mxu1  ;;  %v4808_v63 = vld [vmem:[%s9909_s3 + $0xf8] sm:$0xff] }
 0x1d1   :  { %v1736_v40 = vpack.c.bf16 %v1616_v58, %v1615_v43  ;;  %v1257_v41 = vpop.permute.xlu1 %1256  ;;  %4003 = vmatprep.subr.bf16.mxu1 %v6060_v0  ;;  %3640 = vmatprep.mubr.bf16.mxu0 %v5825_v50  ;;  %v8044_v24 = vpop.f32.mrf.mxu0  ;;  %v182_v50 = vld [vmem:[%s9908_s1 + $0x508] sm:$0xff]  ;;  %v181_v58 = vld [vmem:[%s9908_s1 + $0x500] sm:$0xff] }
 0x1d2   :  { %v1614_v30 = vmul.f32 %v1257_v41, %v186_v49  ;;  %v1252_v31 = vpop.permute.xlu0 %1251  ;;  %v8046_v45 = vpop.f32.mrf.mxu1  ;;  %3713 = vmatprep.mubr.bf16.mxu1 %v5829_v8  ;;  %v5015_v43 = vld [vmem:[%s9910_s4] sm:$0xff] }
 0x1d3   :  { %v1613_v59 = vmul.f32 %v1252_v31, %v185_v19  ;;  %4948 = vperm.xlu1 %5668, %v4804_v3   ;;  %v3234_v6 = vpop.f32.mrf.mxu0  ;;  %v5836_v19 = vld [vmem:[%s9907_s0 + $0x690] ss:$52 sps:$4 sm:$0xff]   ;;  %v212_v31 = vld [vmem:[%s9908_s1 + $0x5f8] sm:$0xff] }
 0x1d4   :  { %4963 = vperm.xlu0 %5667, %v4807_v18   ;;  %4004 = vmatpush1.bf16.msra.mxu1 %v1736_v40  ;;  %v3301_v22 = vpop.f32.mrf.mxu1  ;;  %v5833_v18 = vld [vmem:[%s9907_s0 + $0x1b8] ss:$52 sps:$4 sm:$0xff]   ;;  %v5017_v6 = vld [vmem:[%s9910_s4 + $0x10] sm:$0xff] }
 0x1d5   :  { %v1735_v15 = vpack.c.bf16 %v1614_v30, %v1613_v59  ;;  %v1247_v52 = vpop.permute.xlu1 %1246  ;;  %4005 = vmatprep.subr.bf16.mxu1 %v6060_v0  ;;  %v8070_v51 = vpop.f32.mrf.mxu0  ;;  %v4810_v59 = vld [vmem:[%s9909_s3 + $0x108] sm:$0xff]  ;;  %v5839_v22 = vld [vmem:[%s9907_s0 + $0x224] ss:$52 sps:$4 sm:$0xff]  }
 0x1d6   :  { %v1612_v53 = vmul.f32 %v1247_v52, %v184_v42  ;;  %v1242_v4 = vpop.permute.xlu0 %1241  ;;  %v8072_v61 = vpop.f32.mrf.mxu1  ;;  %3641 = vmatmul.mubr.bf16.gmra.mxu0 %v5830_v46  ;;  %v211_v46 = vld [vmem:[%s9908_s1 + $0x5f0] sm:$0xff]  ;;  %v5842_v52 = vld [vmem:[%s9907_s0 + $0x24] ss:$52 sps:$4 sm:$0xff]  }
 0x1d7   :  { %v1611_v21 = vmul.f32 %v1242_v4, %v183_v2  ;;  %3714 = vmatmul.mubr.bf16.gmra.mxu1 %v5827_v5  ;;  %4958 = vperm.xlu1 %5668, %v4806_v20   ;;  %v3237_v29 = vpop.f32.mrf.mxu0 }
 0x1d8   :  { %4973 = vperm.xlu0 %5667, %v4809_v10   ;;  %4006 = vmatpush1.bf16.msra.mxu1 %v1735_v15  ;;  %v3306_v32 = vpop.f32.mrf.mxu1  ;;  %v5016_v29 = vld [vmem:[%s9910_s4 + $0x8] sm:$0xff] }
 0x1d9   :  { %v1734_v8 = vpack.c.bf16 %v1612_v53, %v1611_v21  ;;  %4007 = vmatprep.subr.bf16.mxu1 %v6060_v0  ;;  %3648 = vmatprep.mubr.bf16.mxu0 %v5831_v60  ;;  %v8090_v49 = vpop.f32.mrf.mxu0  ;;  %v209_v21 = vld [vmem:[%s9908_s1 + $0x5e0] sm:$0xff] }
 0x1da   :  { %v1237_v55 = vpop.permute.xlu1 %1236  ;;  %v1232_v9 = vpop.permute.xlu0 %1231  ;;  %3721 = vmatprep.mubr.bf16.mxu1 %v5835_v11  ;;  %v210_v11 = vld [vmem:[%s9908_s1 + $0x5e8] sm:$0xff] }
 0x1db   :  { %v1610_v3 = vmul.f32 %v1237_v55, %v182_v50  ;;  %v1609_v40 = vmul.f32 %v1232_v9, %v181_v58  ;;  %v8095_v41 = vpop.f32.mrf.mxu1  ;;  %4968 = vperm.xlu1 %5668, %v4808_v63   ;;  %v3242_v30 = vpop.f32.mrf.mxu0  ;;  %v5019_v58 = vld [vmem:[%s9910_s4 + $0x20] sm:$0xff] }
 0x1dc   :  { %5051 = vperm.xlu0 %5667, %v5015_v43   ;;  %4008 = vmatpush1.bf16.msra.mxu1 %v1734_v8  ;;  %v5840_v43 = vld [vmem:[%s9907_s0 + $0x20] ss:$52 sps:$4 sm:$0xff]   ;;  %v5018_v30 = vld [vmem:[%s9910_s4 + $0x18] sm:$0xff] }
 0x1dd   :  { %v1733_v5 = vpack.c.bf16 %v1610_v3, %v1609_v40  ;;  %v3309_v42 = vpop.f32.mrf.mxu1  ;;  %4009 = vmatprep.subr.bf16.mxu1 %v6060_v0  ;;  %v8116_v2 = vpop.f32.mrf.mxu0  ;;  %v5837_v3 = vld [vmem:[%s9907_s0 + $0x220] ss:$52 sps:$4 sm:$0xff]   ;;  %v208_v40 = vld [vmem:[%s9908_s1 + $0x5d8] sm:$0xff] }
 0x1de   :  { %v1387_v20 = vpop.permute.xlu1 %1386  ;;  %v1382_v15 = vpop.permute.xlu0 %1381  ;;  %3649 = vmatmul.mubr.bf16.gmra.mxu0 %v5836_v19 }
 0x1df   :  { %v1640_v10 = vmul.f32 %v1387_v20, %v212_v31  ;;  %v1639_v60 = vmul.f32 %v1382_v15, %v211_v46  ;;  %v8121_v53 = vpop.f32.mrf.mxu1  ;;  %3722 = vmatmul.mubr.bf16.gmra.mxu1 %v5833_v18  ;;  %4978 = vperm.xlu1 %5668, %v4810_v59   ;;  %v3245_v4 = vpop.f32.mrf.mxu0  ;;  %v207_v18 = vld [vmem:[%s9908_s1 + $0x5d0] sm:$0xff] }
 0x1e0   :  { %5061 = vperm.xlu0 %5667, %v5017_v6   ;;  %4010 = vmatpush1.bf16.msra.mxu1 %v1733_v5  ;;  %v5021_v59 = vld [vmem:[%s9910_s4 + $0x30] sm:$0xff]  ;;  %v5845_v5 = vld [vmem:[%s9907_s0 + $0x28c] ss:$52 sps:$4 sm:$0xff]  }
 0x1e1   :  { %v1748_v32 = vpack.c.bf16 %v1640_v10, %v1639_v60  ;;  %v3314_v50 = vpop.f32.mrf.mxu1  ;;  %4011 = vmatprep.subr.bf16.mxu1 %v6060_v0  ;;  %3729 = vmatprep.mubr.bf16.mxu1 %v5839_v22  ;;  %v5846_v22 = vld [vmem:[%s9907_s0 + $0x8c] ss:$52 sps:$4 sm:$0xff]   ;;  %v224_v10 = vld [vmem:[%s9908_s1 + $0x658] sm:$0xff]  ;;  %v223_v60 = vld [vmem:[%s9908_s1 + $0x650] sm:$0xff] }
 0x1e2   :  { %v1377_v63 = vpop.permute.xlu1 %1376  ;;  %v1372_v8 = vpop.permute.xlu0 %1371  ;;  %3858 = vmatprep.mubr.bf16.mxu0 %v5842_v52  ;;  %v5020_v4 = vld [vmem:[%s9910_s4 + $0x28] sm:$0xff] }
 0x1e3   :  { %v1638_v55 = vmul.f32 %v1377_v63, %v210_v11  ;;  %v1637_v9 = vmul.f32 %v1372_v8, %v209_v21  ;;  %v8139_v19 = vpop.f32.mrf.mxu1  ;;  %5056 = vperm.xlu1 %5668, %v5016_v29   ;;  %v5023_v29 = vld [vmem:[%s9910_s4 + $0x40] sm:$0xff] }
 0x1e4   :  { %5071 = vperm.xlu0 %5667, %v5019_v58   ;;  %4012 = vmatpush2.bf16.msra.mxu1 %v1748_v32  ;;  %v5848_v58 = vld [vmem:[%s9907_s0 + $0x88] ss:$52 sps:$4 sm:$0xff]  }
 0x1e5   :  { %v1747_v31 = vpack.c.bf16 %v1638_v55, %v1637_v9  ;;  %v3317_v46 = vpop.f32.mrf.mxu1  ;;  %4013 = vmatprep.subr.bf16.mxu1 %v6060_v0  ;;  %v5843_v55 = vld [vmem:[%s9907_s0 + $0x288] ss:$52 sps:$4 sm:$0xff]  }
 0x1e6   :  { %v1367_v42 = vpop.permute.xlu1 %1366  ;;  %v1362_v6 = vpop.permute.xlu0 %1361  ;;  %3859 = vmatmul.mubr.bf16.vlgmr.msra.gmra.mxu0 %v5840_v43  ;;  %v206_v9 = vld [vmem:[%s9908_s1 + $0x5c8] sm:$0xff] }
 0x1e7   :  { %v1636_v20 = vmul.f32 %v1367_v42, %v208_v40  ;;  %v1635_v15 = vmul.f32 %v1362_v6, %v207_v18  ;;  %v8163_v52 = vpop.f32.mrf.mxu1  ;;  %3730 = vmatmul.mubr.bf16.gmra.mxu1 %v5837_v3  ;;  %5066 = vperm.xlu1 %5668, %v5018_v30   ;;  %v205_v3 = vld [vmem:[%s9908_s1 + $0x5c0] sm:$0xff]  ;;  %v5022_v40 = vld [vmem:[%s9910_s4 + $0x38] sm:$0xff]  ;;  %v5851_v46 = vld [vmem:[%s9907_s0 + $0x2f4] ss:$52 sps:$4 sm:$0xff]  }
 0x1e8   :  { %5081 = vperm.xlu0 %5667, %v5021_v59   ;;  %4014 = vmatpush2.bf16.msra.mxu1 %v1747_v31  ;;  %v5025_v31 = vld [vmem:[%s9910_s4 + $0x50] sm:$0xff] }
 0x1e9   :  { %v1746_v11 = vpack.c.bf16 %v1636_v20, %v1635_v15  ;;  %v3355_v21 = vpop.f32.mrf.mxu1  ;;  %4015 = vmatprep.subr.bf16.mxu1 %v6060_v0  ;;  %3737 = vmatprep.mubr.bf16.mxu1 %v5845_v5  ;;  %v5852_v59 = vld [vmem:[%s9907_s0 + $0xf4] ss:$52 sps:$4 sm:$0xff]  }
 0x1ea   :  { %v1447_v32 = vpop.permute.xlu1 %1446  ;;  %v1442_v50 = vpop.permute.xlu0 %1441  ;;  %3866 = vmatprep.mubr.bf16.mxu0 %v5846_v22  ;;  %v222_v15 = vld [vmem:[%s9908_s1 + $0x648] sm:$0xff]  ;;  %v5027_v21 = vld [vmem:[%s9910_s4 + $0x60] sm:$0xff] }
 0x1eb   :  { %v1652_v63 = vmul.f32 %v1447_v32, %v224_v10  ;;  %v1651_v8 = vmul.f32 %v1442_v50, %v223_v60  ;;  %v8181_v43 = vpop.f32.mrf.mxu1  ;;  %5076 = vperm.xlu1 %5668, %v5020_v4   ;;  %v221_v10 = vld [vmem:[%s9908_s1 + $0x640] sm:$0xff]  ;;  %v5024_v60 = vld [vmem:[%s9910_s4 + $0x48] sm:$0xff] }
 0x1ec   :  { %5091 = vperm.xlu0 %5667, %v5023_v29   ;;  %4016 = vmatpush2.bf16.msra.mxu1 %v1746_v11  ;;  %v5854_v50 = vld [vmem:[%s9907_s0 + $0xf0] ss:$52 sps:$4 sm:$0xff]  }
 0x1ed   :  { %v1754_v18 = vpack.c.bf16 %v1652_v63, %v1651_v8  ;;  %v3358_v30 = vpop.f32.mrf.mxu1  ;;  %4017 = vmatprep.subr.bf16.mxu1 %v6060_v0 }
 0x1ee   :  { %v1357_v5 = vpop.permute.xlu1 %1356  ;;  %v1352_v42 = vpop.permute.xlu0 %1351  ;;  %3867 = vmatmul.mubr.bf16.gmra.mxu0 %v5848_v58 }
 0x1ef   :  { %v1634_v6 = vmul.f32 %v1357_v5, %v206_v9  ;;  %v1633_v22 = vmul.f32 %v1352_v42, %v205_v3  ;;  %v8205_v20 = vpop.f32.mrf.mxu1  ;;  %3738 = vmatmul.mubr.bf16.gmra.mxu1 %v5843_v55  ;;  %5086 = vperm.xlu1 %5668, %v5022_v40   ;;  %v5849_v55 = vld [vmem:[%s9907_s0 + $0x2f0] ss:$52 sps:$4 sm:$0xff]   ;;  %v204_v9 = vld [vmem:[%s9908_s1 + $0x5b8] sm:$0xff] }
 0x1f0   :  { %5101 = vperm.xlu0 %5667, %v5025_v31   ;;  %5553 = vmatpush3.bf16.msra.mxu0 %v1754_v18  ;;  %v203_v3 = vld [vmem:[%s9908_s1 + $0x5b0] sm:$0xff]  ;;  %v5026_v40 = vld [vmem:[%s9910_s4 + $0x58] sm:$0xff] }
 0x1f1   :  { %v1745_v4 = vpack.c.bf16 %v1634_v6, %v1633_v22  ;;  %v3363_v11 = vpop.f32.mrf.mxu1  ;;  %3745 = vmatprep.mubr.bf16.mxu1 %v5851_v46  ;;  %3874 = vmatprep.mubr.bf16.mxu0 %v5852_v59  ;;  %v5029_v31 = vld [vmem:[%s9910_s4 + $0x70] sm:$0xff] }
 0x1f2   :  { %v1437_v29 = vpop.permute.xlu1 %1436  ;;  %v1432_v32 = vpop.permute.xlu0 %1431  ;;  %5554 = vmatprep.subr.bf16.mxu0 %v6061_v39  ;;  %v5857_v46 = vld [vmem:[%s9907_s0 + $0x35c] ss:$52 sps:$4 sm:$0xff]  }
 0x1f3   :  { %v1650_v58 = vmul.f32 %v1437_v29, %v222_v15  ;;  %v1649_v63 = vmul.f32 %v1432_v32, %v221_v10  ;;  %v8223_v8 = vpop.f32.mrf.mxu1  ;;  %5096 = vperm.xlu1 %5668, %v5024_v60   ;;  %4018 = vmatpush2.bf16.msra.mxu1 %v1745_v4  ;;  %v5860_v59 = vld [vmem:[%s9907_s0 + $0x15c] ss:$52 sps:$4 sm:$0xff]   ;;  %v5028_v4 = vld [vmem:[%s9910_s4 + $0x68] sm:$0xff]  ;;  %v5031_v29 = vld [vmem:[%s9910_s4 + $0x80] sm:$0xff] }
 0x1f4   :  { %5111 = vperm.xlu0 %5667, %v5027_v21   ;;  %4019 = vmatprep.subr.bf16.mxu1 %v6060_v0  ;;  %v220_v10 = vld [vmem:[%s9908_s1 + $0x638] sm:$0xff]  ;;  %v219_v60 = vld [vmem:[%s9908_s1 + $0x630] sm:$0xff] }
 0x1f5   :  { %v1753_v18 = vpack.c.bf16 %v1650_v58, %v1649_v63  ;;  %v3366_v30 = vpop.f32.mrf.mxu1  ;;  %v5858_v58 = vld [vmem:[%s9907_s0 + $0x158] ss:$52 sps:$4 sm:$0xff]  }
 0x1f6   :  { %v1347_v5 = vpop.permute.xlu1 %1346  ;;  %v1342_v42 = vpop.permute.xlu0 %1341  ;;  %3875 = vmatmul.mubr.bf16.gmra.mxu0 %v5854_v50  ;;  %v5030_v30 = vld [vmem:[%s9910_s4 + $0x78] sm:$0xff] }
 0x1f7   :  { %v1632_v6 = vmul.f32 %v1347_v5, %v204_v9  ;;  %v1631_v22 = vmul.f32 %v1342_v42, %v203_v3  ;;  %v8247_v15 = vpop.f32.mrf.mxu1  ;;  %3746 = vmatmul.mubr.bf16.gmra.mxu1 %v5849_v55  ;;  %5106 = vperm.xlu1 %5668, %v5026_v40   ;;  %v5855_v3 = vld [vmem:[%s9907_s0 + $0x358] ss:$52 sps:$4 sm:$0xff]  }
 0x1f8   :  { %5121 = vperm.xlu0 %5667, %v5029_v31   ;;  %5555 = vmatpush3.bf16.msra.mxu0 %v1753_v18  ;;  %v202_v40 = vld [vmem:[%s9908_s1 + $0x5a8] sm:$0xff]  ;;  %v201_v18 = vld [vmem:[%s9908_s1 + $0x5a0] sm:$0xff] }
 0x1f9   :  { %v1744_v11 = vpack.c.bf16 %v1632_v6, %v1631_v22  ;;  %v3371_v21 = vpop.f32.mrf.mxu1  ;;  %3753 = vmatprep.mubr.bf16.mxu1 %v5857_v46  ;;  %3882 = vmatprep.mubr.bf16.mxu0 %v5860_v59  ;;  %v5033_v59 = vld [vmem:[%s9910_s4 + $0x90] sm:$0xff]  ;;  %v5863_v5 = vld [vmem:[%s9907_s0 + $0x3c4] ss:$52 sps:$4 sm:$0xff]  }
 0x1fa   :  { %v1427_v32 = vpop.permute.xlu1 %1426  ;;  %v1422_v50 = vpop.permute.xlu0 %1421  ;;  %5556 = vmatprep.subr.bf16.mxu0 %v6061_v39  ;;  %v5866_v42 = vld [vmem:[%s9907_s0 + $0x1c4] ss:$52 sps:$4 sm:$0xff]  }
 0x1fb   :  { %v1648_v63 = vmul.f32 %v1427_v32, %v220_v10  ;;  %v1647_v55 = vmul.f32 %v1422_v50, %v219_v60  ;;  %v8265_v9 = vpop.f32.mrf.mxu1  ;;  %5116 = vperm.xlu1 %5668, %v5028_v4   ;;  %4020 = vmatpush2.bf16.msra.mxu1 %v1744_v11  ;;  %v218_v11 = vld [vmem:[%s9908_s1 + $0x628] sm:$0xff]  ;;  %v217_v21 = vld [vmem:[%s9908_s1 + $0x620] sm:$0xff] }
 0x1fc   :  { %5131 = vperm.xlu0 %5667, %v5031_v29   ;;  %4021 = vmatprep.subr.bf16.mxu1 %v6060_v0  ;;  %v5032_v29 = vld [vmem:[%s9910_s4 + $0x88] sm:$0xff] }
 0x1fd   :  { %v1752_v31 = vpack.c.bf16 %v1648_v63, %v1647_v55  ;;  %v3374_v46 = vpop.f32.mrf.mxu1 }
 0x1fe   :  { %v1337_v6 = vpop.permute.xlu1 %1336  ;;  %v1332_v22 = vpop.permute.xlu0 %1331  ;;  %3883 = vmatmul.mubr.bf16.gmra.mxu0 %v5858_v58  ;;  %v5035_v58 = vld [vmem:[%s9910_s4 + $0xa0] sm:$0xff]  ;;  %v200_v46 = vld [vmem:[%s9908_s1 + $0x598] sm:$0xff] }
 0x1ff   :  { %v1630_v10 = vmul.f32 %v1337_v6, %v202_v40  ;;  %v1629_v60 = vmul.f32 %v1332_v22, %v201_v18  ;;  %v8289_v4 = vpop.f32.mrf.mxu1  ;;  %3754 = vmatmul.mubr.bf16.gmra.mxu1 %v5855_v3  ;;  %5126 = vperm.xlu1 %5668, %v5030_v30   ;;  %v5864_v3 = vld [vmem:[%s9907_s0 + $0x1c0] ss:$52 sps:$4 sm:$0xff]  }
 0x200   :  { %5141 = vperm.xlu0 %5667, %v5033_v59   ;;  %5557 = vmatpush3.bf16.msra.mxu0 %v1752_v31  ;;  %v5861_v31 = vld [vmem:[%s9907_s0 + $0x3c0] ss:$52 sps:$4 sm:$0xff]  }
 0x201   :  { %v1743_v32 = vpack.c.bf16 %v1630_v10, %v1629_v60  ;;  %v3379_v50 = vpop.f32.mrf.mxu1  ;;  %3761 = vmatprep.mubr.bf16.mxu1 %v5863_v5  ;;  %3890 = vmatprep.mubr.bf16.mxu0 %v5866_v42  ;;  %v199_v59 = vld [vmem:[%s9908_s1 + $0x590] sm:$0xff]  ;;  %v5034_v5 = vld [vmem:[%s9910_s4 + $0x98] sm:$0xff]  ;;  %v5869_v10 = vld [vmem:[%s9907_s0 + $0x42c] ss:$52 sps:$4 sm:$0xff]  }
 0x202   :  { %v1417_v63 = vpop.permute.xlu1 %1416  ;;  %v1412_v55 = vpop.permute.xlu0 %1411  ;;  %5558 = vmatprep.subr.bf16.mxu0 %v6061_v39  ;;  %v5037_v22 = vld [vmem:[%s9910_s4 + $0xb0] sm:$0xff]  ;;  %v5872_v60 = vld [vmem:[%s9907_s0 + $0x22c] ss:$52 sps:$4 sm:$0xff]  }
 0x203   :  { %v1646_v40 = vmul.f32 %v1417_v63, %v218_v11  ;;  %v1645_v18 = vmul.f32 %v1412_v55, %v217_v21  ;;  %v8307_v30 = vpop.f32.mrf.mxu1  ;;  %5136 = vperm.xlu1 %5668, %v5032_v29   ;;  %4022 = vmatpush2.bf16.msra.mxu1 %v1743_v32  ;;  %v215_v63 = vld [vmem:[%s9908_s1 + $0x610] sm:$0xff]  ;;  %v5036_v55 = vld [vmem:[%s9910_s4 + $0xa8] sm:$0xff] }
 0x204   :  { %5151 = vperm.xlu0 %5667, %v5035_v58   ;;  %4023 = vmatprep.subr.bf16.mxu1 %v6060_v0  ;;  %v216_v58 = vld [vmem:[%s9908_s1 + $0x618] sm:$0xff] }
 0x205   :  { %v1751_v42 = vpack.c.bf16 %v1646_v40, %v1645_v18  ;;  %v3382_v6 = vpop.f32.mrf.mxu1  ;;  %v5039_v18 = vld [vmem:[%s9910_s4 + $0xc0] sm:$0xff] }
 0x206   :  { %v1327_v11 = vpop.permute.xlu1 %1326  ;;  %v1322_v21 = vpop.permute.xlu0 %1321  ;;  %3891 = vmatmul.mubr.bf16.gmra.mxu0 %v5864_v3 }
 0x207   :  { %v1628_v29 = vmul.f32 %v1327_v11, %v200_v46  ;;  %v1627_v32 = vmul.f32 %v1322_v21, %v199_v59  ;;  %v8331_v50 = vpop.f32.mrf.mxu1  ;;  %3762 = vmatmul.mubr.bf16.gmra.mxu1 %v5861_v31  ;;  %5146 = vperm.xlu1 %5668, %v5034_v5   ;;  %v5870_v59 = vld [vmem:[%s9907_s0 + $0x228] ss:$52 sps:$4 sm:$0xff]  }
 0x208   :  { %5161 = vperm.xlu0 %5667, %v5037_v22   ;;  %5559 = vmatpush3.bf16.msra.mxu0 %v1751_v42  ;;  %v5867_v22 = vld [vmem:[%s9907_s0 + $0x428] ss:$52 sps:$4 sm:$0xff]  }
 0x209   :  { %v1742_v3 = vpack.c.bf16 %v1628_v29, %v1627_v32  ;;  %v3387_v40 = vpop.f32.mrf.mxu1  ;;  %3769 = vmatprep.mubr.bf16.mxu1 %v5869_v10  ;;  %3898 = vmatprep.mubr.bf16.mxu0 %v5872_v60  ;;  %v198_v10 = vld [vmem:[%s9908_s1 + $0x588] sm:$0xff]  ;;  %v197_v60 = vld [vmem:[%s9908_s1 + $0x580] sm:$0xff]  ;;  %v5038_v11 = vld [vmem:[%s9910_s4 + $0xb8] sm:$0xff] }
 0x20a   :  { %v1407_v31 = vpop.permute.xlu1 %1406  ;;  %v1402_v46 = vpop.permute.xlu0 %1401  ;;  %5560 = vmatprep.subr.bf16.mxu0 %v6061_v39  ;;  %v5041_v32 = vld [vmem:[%s9910_s4 + $0xd0] sm:$0xff] }
 0x20b   :  { %v1644_v5 = vmul.f32 %v1407_v31, %v216_v58  ;;  %v1643_v42 = vmul.f32 %v1402_v46, %v215_v63  ;;  %v8349_v6 = vpop.f32.mrf.mxu1  ;;  %5156 = vperm.xlu1 %5668, %v5036_v55   ;;  %4024 = vmatpush2.bf16.msra.mxu1 %v1742_v3  ;;  %v5875_v58 = vld [vmem:[%s9907_s0 + $0x494] ss:$52 sps:$4 sm:$0xff]   ;;  %v213_v46 = vld [vmem:[%s9908_s1 + $0x600] sm:$0xff] }
 0x20c   :  { %5171 = vperm.xlu0 %5667, %v5039_v18   ;;  %4025 = vmatprep.subr.bf16.mxu1 %v6060_v0  ;;  %v5878_v63 = vld [vmem:[%s9907_s0 + $0x294] ss:$52 sps:$4 sm:$0xff]  }
 0x20d   :  { %v1750_v21 = vpack.c.bf16 %v1644_v5, %v1643_v42  ;;  %v3390_v29 = vpop.f32.mrf.mxu1  ;;  %v214_v31 = vld [vmem:[%s9908_s1 + $0x608] sm:$0xff] }
 0x20e   :  { %v1317_v55 = vpop.permute.xlu1 %1316  ;;  %v1312_v3 = vpop.permute.xlu0 %1311  ;;  %3899 = vmatmul.mubr.bf16.gmra.mxu0 %v5870_v59  ;;  %v5040_v59 = vld [vmem:[%s9910_s4 + $0xc8] sm:$0xff] }
 0x20f   :  { %v1626_v40 = vmul.f32 %v1317_v55, %v198_v10  ;;  %v1625_v18 = vmul.f32 %v1312_v3, %v197_v60  ;;  %v8373_v0 = vpop.f32.mrf.mxu1  ;;  %3770 = vmatmul.mubr.bf16.gmra.mxu1 %v5867_v22  ;;  %5166 = vperm.xlu1 %5668, %v5038_v11   ;;  %v5043_v22 = vld [vmem:[%s9910_s4 + $0xe0] sm:$0xff] }
 0x210   :  { %5181 = vperm.xlu0 %5667, %v5041_v32   ;;  %5561 = vmatpush3.bf16.msra.mxu0 %v1750_v21  ;;  %v5876_v11 = vld [vmem:[%s9907_s0 + $0x290] ss:$52 sps:$4 sm:$0xff]  }
 0x211   :  { %v1741_v5 = vpack.c.bf16 %v1626_v40, %v1625_v18  ;;  %v3395_v42 = vpop.f32.mrf.mxu1  ;;  %3777 = vmatprep.mubr.bf16.mxu1 %v5875_v58  ;;  %3906 = vmatprep.mubr.bf16.mxu0 %v5878_v63  ;;  %v5873_v55 = vld [vmem:[%s9907_s0 + $0x490] ss:$52 sps:$4 sm:$0xff]   ;;  %v5042_v58 = vld [vmem:[%s9910_s4 + $0xd8] sm:$0xff] }
 0x212   :  { %v1397_v10 = vpop.permute.xlu1 %1396  ;;  %v1392_v60 = vpop.permute.xlu0 %1391  ;;  %5562 = vmatprep.subr.bf16.mxu0 %v6061_v39  ;;  %v5881_v63 = vld [vmem:[%s9907_s0 + $0x4fc] ss:$52 sps:$4 sm:$0xff]  }
 0x213   :  { %v1642_v21 = vmul.f32 %v1397_v10, %v214_v31  ;;  %v1641_v29 = vmul.f32 %v1392_v60, %v213_v46  ;;  %v8391_v32 = vpop.f32.mrf.mxu1  ;;  %5176 = vperm.xlu1 %5668, %v5040_v59   ;;  %4026 = vmatpush2.bf16.msra.mxu1 %v1741_v5  ;;  %v5884_v18 = vld [vmem:[%s9907_s0 + $0x2fc] ss:$52 sps:$4 sm:$0xff]   ;;  %v5044_v46 = vld [vmem:[%s9910_s4 + $0xe8] sm:$0xff]  ;;  %v5890_v10 = vld [vmem:[%s9907_s0 + $0x364] ss:$52 sps:$4 sm:$0xff]  }
 0x214   :  { %5191 = vperm.xlu0 %5667, %v5043_v22   ;;  %v5882_v5 = vld [vmem:[%s9907_s0 + $0x2f8] ss:$52 sps:$4 sm:$0xff]  }
 0x215   :  { %v1749_v3 = vpack.c.bf16 %v1642_v21, %v1641_v29  ;;  %v3398_v40 = vpop.f32.mrf.mxu1  ;;  %v5879_v22 = vld [vmem:[%s9907_s0 + $0x4f8] ss:$52 sps:$4 sm:$0xff]   ;;  %v3354_v21 = vadd.f32 %v8163_v52, %v7733_v38  ;;  %v5885_v52 = vld [vmem:[%s9907_s0 + $0x560] ss:$52 sps:$4 sm:$0xff]  }
 0x216   :  { %3907 = vmatmul.mubr.bf16.gmra.mxu0 %v5876_v11  ;;  %v5887_v60 = vld [vmem:[%s9907_s0 + $0x564] ss:$52 sps:$4 sm:$0xff]   ;;  %v3357_v40 = vadd.f32 %v8181_v43, %v7763_v14  ;;  %v5893_v14 = vld [vmem:[%s9907_s0 + $0x5cc] ss:$52 sps:$4 sm:$0xff]  }
 0x217   :  { %v8405_v31 = vpop.f32.mrf.mxu1  ;;  %3778 = vmatmul.mubr.bf16.gmra.mxu1 %v5873_v55  ;;  %5186 = vperm.xlu1 %5668, %v5042_v58  }
 0x218   :  { %5563 = vmatpush3.bf16.msra.mxu0 %v1749_v3  ;;  %3785 = vmatprep.mubr.bf16.mxu1 %v5881_v63 }
 0x219   :  { %v3403_v59 = vpop.f32.mrf.mxu1  ;;  %3914 = vmatprep.mubr.bf16.mxu0 %v5884_v18  ;;  %v5888_v18 = vld [vmem:[%s9907_s0 + $0x360] ss:$52 sps:$4 sm:$0xff]  }
 0x21a   :  { %v5896_v59 = vld [vmem:[%s9907_s0 + $0x3cc] ss:$52 sps:$4 sm:$0xff]  }
 0x21b   :  { %v8413_v42 = vpop.f32.mrf.mxu1  ;;  %5196 = vperm.xlu1 %5668, %v5044_v46  }
 0x21d   :  { %v3406_v11 = vpop.f32.mrf.mxu1 }
 0x21e   :  { %3915 = vmatmul.mubr.bf16.gmra.mxu0 %v5882_v5  ;;  %v3522_v55 = vpop.f32.mrf.mxu0 }
 0x21f   :  { %v8426_v29 = vpop.f32.mrf.mxu1  ;;  %3786 = vmatmul.mubr.bf16.gmra.mxu1 %v5879_v22  ;;  %3922 = vmatprep.mubr.bf16.mxu0 %v5890_v10  ;;  %v8428_v58 = vadd.f32 %v3522_v55, %v3354_v21  ;;  %v3362_v10 = vadd.f32 %v8205_v20, %v7796_v54  ;;  %v5891_v20 = vld [vmem:[%s9907_s0 + $0x5c8] ss:$52 sps:$4 sm:$0xff]  }
 0x220   :  { %3793 = vmatprep.mubr.bf16.mxu1 %v5887_v60  ;;  %v3524_v3 = vpop.f32.mrf.mxu0 }
 0x221   :  { %v3411_v63 = vpop.f32.mrf.mxu1  ;;  %v3365_v3 = vadd.f32 %v8223_v8, %v7824_v57  ;;  %v5899_v57 = vld [vmem:[%s9907_s0 + $0x634] ss:$52 sps:$4 sm:$0xff]  }
 0x222   :  { %v3525_v38 = vpop.f32.mrf.mxu0 }
 0x223   :  { %v8435_v46 = vpop.f32.mrf.mxu1  ;;  %v8443_v5 = vadd.f32 %v3525_v38, %v3357_v40  ;;  %v5894_v40 = vld [vmem:[%s9907_s0 + $0x3c8] ss:$52 sps:$4 sm:$0xff]  }
 0x224   :  { %v3527_v22 = vpop.f32.mrf.mxu0 }
 0x225   :  { %v3414_v43 = vpop.f32.mrf.mxu1 }
 0x226   :  { %3923 = vmatmul.mubr.bf16.gmra.mxu0 %v5888_v18  ;;  %v3530_v11 = vpop.f32.mrf.mxu0  ;;  %v5902_v18 = vld [vmem:[%s9907_s0 + $0x434] ss:$52 sps:$4 sm:$0xff]  }
 0x227   :  { %v8450_v60 = vpop.f32.mrf.mxu1  ;;  %3794 = vmatmul.mubr.bf16.gmra.mxu1 %v5885_v52  ;;  %3930 = vmatprep.mubr.bf16.mxu0 %v5896_v59  ;;  %v8452_v21 = vadd.f32 %v3530_v11, %v3362_v10 }
 0x228   :  { %3801 = vmatprep.mubr.bf16.mxu1 %v5893_v14  ;;  %v3532_v63 = vpop.f32.mrf.mxu0  ;;  %v3370_v14 = vadd.f32 %v8247_v15, %v7853_v62  ;;  %v5897_v15 = vld [vmem:[%s9907_s0 + $0x630] ss:$52 sps:$4 sm:$0xff]  }
 0x229   :  { %v3419_v55 = vpop.f32.mrf.mxu1  ;;  %v3373_v63 = vadd.f32 %v8265_v9, %v7882_v35  ;;  %v5905_v35 = vld [vmem:[%s9907_s0 + $0x69c] ss:$52 sps:$4 sm:$0xff]  }
 0x22a   :  { %v3533_v54 = vpop.f32.mrf.mxu0 }
 0x22b   :  { %v8459_v38 = vpop.f32.mrf.mxu1  ;;  %v8467_v52 = vadd.f32 %v3533_v54, %v3365_v3  ;;  %v5900_v3 = vld [vmem:[%s9907_s0 + $0x430] ss:$52 sps:$4 sm:$0xff]  }
 0x22c   :  { %v3535_v59 = vpop.f32.mrf.mxu0 }
 0x22d   :  { %v3422_v8 = vpop.f32.mrf.mxu1 }
 0x22e   :  { %3931 = vmatmul.mubr.bf16.gmra.mxu0 %v5894_v40  ;;  %v3538_v22 = vpop.f32.mrf.mxu0  ;;  %v5908_v40 = vld [vmem:[%s9907_s0 + $0x49c] ss:$52 sps:$4 sm:$0xff]  }
 0x22f   :  { %v8474_v43 = vpop.f32.mrf.mxu1  ;;  %3802 = vmatmul.mubr.bf16.gmra.mxu1 %v5891_v20  ;;  %3938 = vmatprep.mubr.bf16.mxu0 %v5902_v18  ;;  %v8476_v10 = vadd.f32 %v3538_v22, %v3370_v14 }
 0x230   :  { %3809 = vmatprep.mubr.bf16.mxu1 %v5899_v57  ;;  %v3540_v55 = vpop.f32.mrf.mxu0  ;;  %v3378_v57 = vadd.f32 %v8289_v4, %v7905_v56  ;;  %v5903_v56 = vld [vmem:[%s9907_s0 + $0x698] ss:$52 sps:$4 sm:$0xff]  }
 0x231   :  { %v3427_v11 = vpop.f32.mrf.mxu1  ;;  %v5906_v55 = vld [vmem:[%s9907_s0 + $0x498] ss:$52 sps:$4 sm:$0xff]  }
 0x232   :  { %v3541_v62 = vpop.f32.mrf.mxu0  ;;  %v5911_v4 = vld [vmem:[%s9907_s0 + $0x504] ss:$52 sps:$4 sm:$0xff]  }
 0x233   :  { %v8483_v54 = vpop.f32.mrf.mxu1  ;;  %v8491_v20 = vadd.f32 %v3541_v62, %v3373_v63  ;;  %v3381_v63 = vadd.f32 %v8307_v30, %v7935_v28  ;;  %v3386_v28 = vadd.f32 %v8331_v50, %v7951_v47  ;;  %v5912_v47 = vld [vmem:[%s9907_s0 + $0x28] ss:$52 sps:$4 sm:$0xff]   ;;  %v5917_v50 = vld [vmem:[%s9907_s0 + $0x56c] ss:$52 sps:$4 sm:$0xff]  }
 0x234   :  { %v3543_v18 = vpop.f32.mrf.mxu0 }
 0x235   :  { %v3430_v9 = vpop.f32.mrf.mxu1 }
 0x236   :  { %3939 = vmatmul.mubr.bf16.gmra.mxu0 %v5900_v3  ;;  %v3546_v59 = vpop.f32.mrf.mxu0 }
 0x237   :  { %v8498_v8 = vpop.f32.mrf.mxu1  ;;  %3810 = vmatmul.mubr.bf16.gmra.mxu1 %v5897_v15  ;;  %3946 = vmatprep.mubr.bf16.mxu0 %v5908_v40  ;;  %v8500_v14 = vadd.f32 %v3546_v59, %v3378_v57  ;;  %v5914_v15 = vld [vmem:[%s9907_s0 + $0x2c] ss:$52 sps:$4 sm:$0xff]  }
 0x238   :  { %3817 = vmatprep.mubr.bf16.mxu1 %v5905_v35  ;;  %v3548_v11 = vpop.f32.mrf.mxu0 }
 0x239   :  { %v3435_v22 = vpop.f32.mrf.mxu1  ;;  %v5909_v11 = vld [vmem:[%s9907_s0 + $0x500] ss:$52 sps:$4 sm:$0xff]  }
 0x23a   :  { %v3549_v3 = vpop.f32.mrf.mxu0 }
 0x23b   :  { %v8507_v62 = vpop.f32.mrf.mxu1  ;;  %v8518_v40 = vadd.f32 %v3549_v3, %v3381_v63 }
 0x23c   :  { %v3551_v9 = vpop.f32.mrf.mxu0 }
 0x23d   :  { %v3438_v35 = vpop.f32.mrf.mxu1 }
 0x23e   :  { %3947 = vmatmul.mubr.bf16.gmra.mxu0 %v5906_v55  ;;  %v3554_v18 = vpop.f32.mrf.mxu0  ;;  %v3389_v55 = vadd.f32 %v8349_v6, %v7978_v37  ;;  %v3394_v37 = vadd.f32 %v8373_v0, %v7998_v23  ;;  %v5918_v23 = vld [vmem:[%s9907_s0 + $0x90] ss:$52 sps:$4 sm:$0xff]   ;;  %v5923_v0 = vld [vmem:[%s9907_s0 + $0x5d4] ss:$52 sps:$4 sm:$0xff]  }
 0x23f   :  { %v8522_v30 = vpop.f32.mrf.mxu1  ;;  %3818 = vmatmul.mubr.bf16.gmra.mxu1 %v5903_v56  ;;  %3954 = vmatprep.mubr.bf16.mxu0 %v5911_v4  ;;  %v8524_v57 = vadd.f32 %v3554_v18, %v3386_v28  ;;  %v5920_v4 = vld [vmem:[%s9907_s0 + $0x94] ss:$52 sps:$4 sm:$0xff]  }
 0x240   :  { %4027 = vmatprep.mubr.bf16.mxu1 %v5914_v15  ;;  %v3556_v22 = vpop.f32.mrf.mxu0 }
 0x241   :  { %v3443_v59 = vpop.f32.mrf.mxu1  ;;  %v5915_v22 = vld [vmem:[%s9907_s0 + $0x568] ss:$52 sps:$4 sm:$0xff]  }
 0x242   :  { %v3557_v56 = vpop.f32.mrf.mxu0 }
 0x243   :  { %v8531_v63 = vpop.f32.mrf.mxu1  ;;  %v8542_v3 = vadd.f32 %v3557_v56, %v3389_v55 }
 0x244   :  { %v3559_v35 = vpop.f32.mrf.mxu0 }
 0x245   :  { %v3446_v15 = vpop.f32.mrf.mxu1 }
 0x246   :  { %3955 = vmatmul.mubr.bf16.gmra.mxu0 %v5909_v11  ;;  %v3562_v9 = vpop.f32.mrf.mxu0  ;;  %v3397_v11 = vadd.f32 %v8391_v32, %v8024_v44  ;;  %v3402_v44 = vadd.f32 %v8405_v31, %v8044_v24  ;;  %v5924_v24 = vld [vmem:[%s9907_s0 + $0xf8] ss:$52 sps:$4 sm:$0xff]   ;;  %v5929_v31 = vld [vmem:[%s9907_s0 + $0x63c] ss:$52 sps:$4 sm:$0xff]  }
 0x247   :  { %v8546_v6 = vpop.f32.mrf.mxu1  ;;  %4028 = vmatmul.mubr.bf16.vlgmr.msra.gmra.mxu1 %v5912_v47  ;;  %3962 = vmatprep.mubr.bf16.mxu0 %v5917_v50  ;;  %v8548_v28 = vadd.f32 %v3562_v9, %v3394_v37  ;;  %v5926_v50 = vld [vmem:[%s9907_s0 + $0xfc] ss:$52 sps:$4 sm:$0xff]  }
 0x248   :  { %4035 = vmatprep.mubr.bf16.mxu1 %v5920_v4  ;;  %v3564_v59 = vpop.f32.mrf.mxu0 }
 0x249   :  { %v3451_v18 = vpop.f32.mrf.mxu1  ;;  %v5921_v59 = vld [vmem:[%s9907_s0 + $0x5d0] ss:$52 sps:$4 sm:$0xff]  }
 0x24a   :  { %v3565_v47 = vpop.f32.mrf.mxu0 }
 0x24b   :  { %v8555_v55 = vpop.f32.mrf.mxu1  ;;  %v8566_v56 = vadd.f32 %v3565_v47, %v3397_v11 }
 0x24c   :  { %v3567_v15 = vpop.f32.mrf.mxu0 }
 0x24d   :  { %v3454_v4 = vpop.f32.mrf.mxu1 }
 0x24e   :  { %3963 = vmatmul.mubr.bf16.gmra.mxu0 %v5915_v22  ;;  %v3570_v35 = vpop.f32.mrf.mxu0  ;;  %v3405_v22 = vadd.f32 %v8413_v42, %v8070_v51  ;;  %v3410_v51 = vadd.f32 %v8426_v29, %v8090_v49  ;;  %v5930_v49 = vld [vmem:[%s9907_s0 + $0x160] ss:$52 sps:$4 sm:$0xff]   ;;  %v5935_v29 = vld [vmem:[%s9907_s0 + $0x6a4] ss:$52 sps:$4 sm:$0xff]  }
 0x24f   :  { %v8570_v32 = vpop.f32.mrf.mxu1  ;;  %4036 = vmatmul.mubr.bf16.gmra.mxu1 %v5918_v23  ;;  %3970 = vmatprep.mubr.bf16.mxu0 %v5923_v0  ;;  %v8572_v37 = vadd.f32 %v3570_v35, %v3402_v44  ;;  %v5932_v0 = vld [vmem:[%s9907_s0 + $0x164] ss:$52 sps:$4 sm:$0xff]  }
 0x250   :  { %4043 = vmatprep.mubr.bf16.mxu1 %v5926_v50  ;;  %v3572_v18 = vpop.f32.mrf.mxu0 }
 0x251   :  { %v3459_v9 = vpop.f32.mrf.mxu1  ;;  %v5927_v18 = vld [vmem:[%s9907_s0 + $0x638] ss:$52 sps:$4 sm:$0xff]  }
 0x252   :  { %v3573_v23 = vpop.f32.mrf.mxu0 }
 0x253   :  { %v8579_v11 = vpop.f32.mrf.mxu1  ;;  %v8590_v47 = vadd.f32 %v3573_v23, %v3405_v22 }
 0x254   :  { %v3575_v4 = vpop.f32.mrf.mxu0 }
 0x255   :  { %v3462_v50 = vpop.f32.mrf.mxu1 }
 0x256   :  { %3971 = vmatmul.mubr.bf16.gmra.mxu0 %v5921_v59  ;;  %v3578_v15 = vpop.f32.mrf.mxu0  ;;  %v3413_v59 = vadd.f32 %v8435_v46, %v8116_v2  ;;  %v3418_v2 = vadd.f32 %v8450_v60, %v7712_v33  ;;  %v5936_v33 = vld [vmem:[%s9907_s0 + $0x1c8] ss:$52 sps:$4 sm:$0xff]  }
 0x257   :  { %v8594_v42 = vpop.f32.mrf.mxu1  ;;  %4044 = vmatmul.mubr.bf16.gmra.mxu1 %v5924_v24  ;;  %3978 = vmatprep.mubr.bf16.mxu0 %v5929_v31  ;;  %v8596_v44 = vadd.f32 %v3578_v15, %v3410_v51  ;;  %v5938_v31 = vld [vmem:[%s9907_s0 + $0x1cc] ss:$52 sps:$4 sm:$0xff]  }
 0x258   :  { %4051 = vmatprep.mubr.bf16.mxu1 %v5932_v0  ;;  %v3580_v9 = vpop.f32.mrf.mxu0 }
 0x259   :  { %v3467_v35 = vpop.f32.mrf.mxu1  ;;  %v5933_v9 = vld [vmem:[%s9907_s0 + $0x6a0] ss:$52 sps:$4 sm:$0xff]  }
 0x25a   :  { %v3581_v24 = vpop.f32.mrf.mxu0 }
 0x25b   :  { %v8603_v22 = vpop.f32.mrf.mxu1  ;;  %v8614_v23 = vadd.f32 %v3581_v24, %v3413_v59 }
 0x25c   :  { %v3583_v50 = vpop.f32.mrf.mxu0 }
 0x25d   :  { %v3470_v0 = vpop.f32.mrf.mxu1 }
 0x25e   :  { %3979 = vmatmul.mubr.bf16.gmra.mxu0 %v5927_v18  ;;  %v3586_v4 = vpop.f32.mrf.mxu0  ;;  %v3421_v18 = vadd.f32 %v8459_v38, %v7736_v34  ;;  %v3426_v0 = vadd.f32 %v8474_v43, %v7770_v13  ;;  %v3429_v13 = vadd.f32 %v8483_v54, %v7799_v1  ;;  %v3434_v1 = vadd.f32 %v8498_v8, %v7828_v12  ;;  %v5943_v12 = vld [vmem:[%s9907_s0 + $0x298] ss:$52 sps:$4 sm:$0xff]  }
 0x25f   :  { %v8618_v46 = vpop.f32.mrf.mxu1  ;;  %4052 = vmatmul.mubr.bf16.gmra.mxu1 %v5930_v49  ;;  %3986 = vmatprep.mubr.bf16.mxu0 %v5935_v29  ;;  %v8620_v51 = vadd.f32 %v3586_v4, %v3418_v2  ;;  %v5941_v49 = vld [vmem:[%s9907_s0 + $0x234] ss:$52 sps:$4 sm:$0xff]  }
 0x260   :  { %4059 = vmatprep.mubr.bf16.mxu1 %v5938_v31  ;;  %v3588_v35 = vpop.f32.mrf.mxu0 }
 0x261   :  { %v3475_v15 = vpop.f32.mrf.mxu1  ;;  %v5939_v35 = vld [vmem:[%s9907_s0 + $0x230] ss:$52 sps:$4 sm:$0xff]  }
 0x262   :  { %v3589_v60 = vpop.f32.mrf.mxu0  ;;  %v5942_v15 = vld [vmem:[%s9907_s0 + $0x30] ss:$52 sps:$4 sm:$0xff]  }
 0x263   :  { %v8627_v59 = vpop.f32.mrf.mxu1  ;;  %v8635_v29 = vadd.f32 %v3589_v60, %v3421_v18  ;;  %v5945_v18 = vld [vmem:[%s9907_s0 + $0x29c] ss:$52 sps:$4 sm:$0xff]  }
 0x264   :  { %v3591_v31 = vpop.f32.mrf.mxu0 }
 0x265   :  { %v3478_v24 = vpop.f32.mrf.mxu1 }
 0x266   :  { %3987 = vmatmul.mubr.bf16.gmra.mxu0 %v5933_v9  ;;  %v3594_v38 = vpop.f32.mrf.mxu0 }
 0x267   :  { %v8639_v34 = vpop.f32.mrf.mxu1  ;;  %4060 = vmatmul.mubr.bf16.gmra.mxu1 %v5936_v33  ;;  %5564 = vmatprep.mubr.msk.bf16.mxu0 %vm6062_vm0, %v6061_v39  ;;  %v8643_v50 = vadd.f32 %v3594_v38, %v3426_v0  ;;  %v5946_v0 = vld [vmem:[%s9907_s0 + $0x98] ss:$52 sps:$4 sm:$0xff]   ;;  %v3437_v38 = vadd.f32 %v8507_v62, %v7857_v25 }
 0x268   :  { %4067 = vmatprep.mubr.bf16.mxu1 %v5941_v49  ;;  %v3596_v4 = vpop.f32.mrf.mxu0 }
 0x269   :  { %v3483_v2 = vpop.f32.mrf.mxu1 }
 0x26a   :  { %v3597_v9 = vpop.f32.mrf.mxu0  ;;  %v5949_v2 = vld [vmem:[%s9907_s0 + $0x304] ss:$52 sps:$4 sm:$0xff]  }
 0x26b   :  { %v8650_v43 = vpop.f32.mrf.mxu1  ;;  %v8658_v33 = vadd.f32 %v3597_v9, %v3429_v13  ;;  %v3442_v13 = vadd.f32 %v8522_v30, %v7886_v17  ;;  %v5950_v9 = vld [vmem:[%s9907_s0 + $0x100] ss:$52 sps:$4 sm:$0xff]  }
 0x26c   :  { %v3599_v49 = vpop.f32.mrf.mxu0  ;;  %v5947_v17 = vld [vmem:[%s9907_s0 + $0x300] ss:$52 sps:$4 sm:$0xff]  }
 0x26d   :  { %v3486_v60 = vpop.f32.mrf.mxu1 }
 0x26e   :  { %5565 = vmatmul.mubr.msk.bf16.vlgmr.msra.gmra.mxu0 %vm3098_vm1, %v5942_v15  ;;  %v3602_v54 = vpop.f32.mrf.mxu0  ;;  %v5953_v60 = vld [vmem:[%s9907_s0 + $0x36c] ss:$52 sps:$4 sm:$0xff]  }
 0x26f   :  { %4068 = vmatmul.mubr.bf16.gmra.mxu1 %v5939_v35  ;;  %5568 = vmatprep.mubr.msk.bf16.mxu0 %vm6062_vm0, %v6061_v39  ;;  %v8665_v24 = vadd.f32 %v3602_v54, %v3434_v1  ;;  %v3450_v54 = vadd.f32 %v8546_v6, %v7937_v16  ;;  %v3453_v16 = vadd.f32 %v8555_v55, %v7953_v36 }
 0x270   :  { %4075 = vmatprep.mubr.bf16.mxu1 %v5945_v18  ;;  %v3604_v31 = vpop.f32.mrf.mxu0  ;;  %v3445_v18 = vadd.f32 %v8531_v63, %v7907_v26  ;;  %v3458_v36 = vadd.f32 %v8570_v32, %v7980_v48  ;;  %v3461_v48 = vadd.f32 %v8579_v11, %v8000_v27  ;;  %v3466_v27 = vadd.f32 %v8594_v42, %v8026_v7 }
 0x271   :  { %v3469_v7 = vadd.f32 %v8603_v22, %v8046_v45  ;;  %v3474_v45 = vadd.f32 %v8618_v46, %v8072_v61  ;;  %v3477_v61 = vadd.f32 %v8627_v59, %v8095_v41  ;;  %v3482_v41 = vadd.f32 %v8639_v34, %v8121_v53 }
 0x272   :  { %v3605_v8 = vpop.f32.mrf.mxu0  ;;  %v3485_v53 = vadd.f32 %v8650_v43, %v8139_v19 }
 0x273   :  { %v8678_v4 = vadd.f32 %v3605_v8, %v3437_v38  ;;  %v5954_v8 = vld [vmem:[%s9907_s0 + $0x168] ss:$52 sps:$4 sm:$0xff]  }
 0x274   :  { %v3607_v15 = vpop.f32.mrf.mxu0 }
 0x276   :  { %5569 = vmatmul.mubr.msk.bf16.gmra.mxu0 %vm3098_vm1, %v5946_v0  ;;  %v3610_v25 = vpop.f32.mrf.mxu0 }
 0x277   :  { %4076 = vmatmul.mubr.bf16.gmra.mxu1 %v5943_v12  ;;  %5572 = vmatprep.mubr.msk.bf16.mxu0 %vm6062_vm0, %v6061_v39  ;;  %v8685_v62 = vadd.f32 %v3610_v25, %v3442_v13  ;;  %v5957_v13 = vld [vmem:[%s9907_s0 + $0x3d4] ss:$52 sps:$4 sm:$0xff]  }
 0x278   :  { %4083 = vmatprep.mubr.bf16.mxu1 %v5949_v2  ;;  %v3612_v35 = vpop.f32.mrf.mxu0  ;;  %v5951_v2 = vld [vmem:[%s9907_s0 + $0x368] ss:$52 sps:$4 sm:$0xff]  }
 0x27a   :  { %v3613_v30 = vpop.f32.mrf.mxu0 }
 0x27b   :  { %v8698_v49 = vadd.f32 %v3613_v30, %v3445_v18 }
 0x27c   :  { %v3615_v1 = vpop.f32.mrf.mxu0 }
 0x27d   :  { %v5958_v1 = vld [vmem:[%s9907_s0 + $0x1d0] ss:$52 sps:$4 sm:$0xff]  }
 0x27e   :  { %5573 = vmatmul.mubr.msk.bf16.gmra.mxu0 %vm3098_vm1, %v5950_v9  ;;  %v3618_v26 = vpop.f32.mrf.mxu0 }
 0x27f   :  { %v3691_v31 = vpop.f32.mrf.mxu1  ;;  %4084 = vmatmul.mubr.bf16.gmra.mxu1 %v5947_v17  ;;  %5576 = vmatprep.mubr.msk.bf16.mxu0 %vm6062_vm0, %v6061_v39  ;;  %v8708_v0 = vadd.f32 %v3618_v26, %v3450_v54  ;;  %v5955_v54 = vld [vmem:[%s9907_s0 + $0x3d0] ss:$52 sps:$4 sm:$0xff]  }
 0x280   :  { %v8706_v63 = vadd.f32 %v3691_v31, %v8428_v58  ;;  %4091 = vmatprep.mubr.bf16.mxu1 %v5953_v60  ;;  %v3620_v12 = vpop.f32.mrf.mxu0  ;;  %v5961_v26 = vld [vmem:[%s9907_s0 + $0x43c] ss:$52 sps:$4 sm:$0xff]  }
 0x281   :  { %v3693_v38 = vpop.f32.mrf.mxu1 }
 0x282   :  { %v3621_v15 = vpop.f32.mrf.mxu0 }
 0x283   :  { %v3694_v6 = vpop.f32.mrf.mxu1  ;;  %v8724_v25 = vadd.f32 %v3621_v15, %v3453_v16 }
 0x284   :  { %v8719_v58 = vadd.f32 %v3694_v6, %v8443_v5  ;;  %v3623_v9 = vpop.f32.mrf.mxu0 }
 0x285   :  { %v3696_v35 = vpop.f32.mrf.mxu1 }
 0x286   :  { %5577 = vmatmul.mubr.msk.bf16.gmra.mxu0 %vm3098_vm1, %v5954_v8  ;;  %v3626_v5 = vpop.f32.mrf.mxu0  ;;  %v5959_v35 = vld [vmem:[%s9907_s0 + $0x438] ss:$52 sps:$4 sm:$0xff]  }
 0x287   :  { %v3699_v55 = vpop.f32.mrf.mxu1  ;;  %4092 = vmatmul.mubr.bf16.gmra.mxu1 %v5951_v2  ;;  %5580 = vmatprep.mubr.msk.bf16.mxu0 %vm6062_vm0, %v6061_v39  ;;  %v8734_v17 = vadd.f32 %v3626_v5, %v3458_v36  ;;  %v5965_v36 = vld [vmem:[%s9907_s0 + $0x4a4] ss:$52 sps:$4 sm:$0xff]  }
 0x288   :  { %v8732_v18 = vadd.f32 %v3699_v55, %v8452_v21  ;;  %4099 = vmatprep.mubr.bf16.mxu1 %v5957_v13  ;;  %v3628_v60 = vpop.f32.mrf.mxu0  ;;  %v5962_v13 = vld [vmem:[%s9907_s0 + $0x238] ss:$52 sps:$4 sm:$0xff]  }
 0x289   :  { %v3701_v30 = vpop.f32.mrf.mxu1 }
 0x28a   :  { %v3629_v31 = vpop.f32.mrf.mxu0 }
 0x28b   :  { %v3702_v32 = vpop.f32.mrf.mxu1  ;;  %v8750_v38 = vadd.f32 %v3629_v31, %v3461_v48  ;;  %v5963_v31 = vld [vmem:[%s9907_s0 + $0x4a0] ss:$52 sps:$4 sm:$0xff]  }
 0x28c   :  { %v8745_v21 = vadd.f32 %v3702_v32, %v8467_v52  ;;  %v3631_v8 = vpop.f32.mrf.mxu0 }
 0x28d   :  { %v3704_v12 = vpop.f32.mrf.mxu1 }
 0x28e   :  { %5581 = vmatmul.mubr.msk.bf16.gmra.mxu0 %vm3098_vm1, %v5958_v1  ;;  %v3634_v52 = vpop.f32.mrf.mxu0  ;;  %v5969_v12 = vld [vmem:[%s9907_s0 + $0x50c] ss:$52 sps:$4 sm:$0xff]  }
 0x28f   :  { %v3707_v11 = vpop.f32.mrf.mxu1  ;;  %4100 = vmatmul.mubr.bf16.gmra.mxu1 %v5955_v54  ;;  %5584 = vmatprep.mubr.msk.bf16.mxu0 %vm6062_vm0, %v6061_v39  ;;  %v8760_v6 = vadd.f32 %v3634_v52, %v3466_v27  ;;  %v5966_v54 = vld [vmem:[%s9907_s0 + $0x2a0] ss:$52 sps:$4 sm:$0xff]  }
 0x290   :  { %v8758_v16 = vadd.f32 %v3707_v11, %v8476_v10  ;;  %4107 = vmatprep.mubr.bf16.mxu1 %v5961_v26  ;;  %v3636_v15 = vpop.f32.mrf.mxu0 }
 0x291   :  { %v3709_v2 = vpop.f32.mrf.mxu1 }
 0x292   :  { %v3637_v9 = vpop.f32.mrf.mxu0 }
 0x293   :  { %v3710_v42 = vpop.f32.mrf.mxu1  ;;  %v8776_v55 = vadd.f32 %v3637_v9, %v3469_v7  ;;  %v5970_v7 = vld [vmem:[%s9907_s0 + $0x308] ss:$52 sps:$4 sm:$0xff]  }
 0x294   :  { %v8771_v10 = vadd.f32 %v3710_v42, %v8491_v20  ;;  %v3639_v30 = vpop.f32.mrf.mxu0  ;;  %v5967_v42 = vld [vmem:[%s9907_s0 + $0x508] ss:$52 sps:$4 sm:$0xff]  }
 0x295   :  { %v3712_v5 = vpop.f32.mrf.mxu1  ;;  %v5973_v9 = vld [vmem:[%s9907_s0 + $0x574] ss:$52 sps:$4 sm:$0xff]  }
 0x296   :  { %5585 = vmatmul.mubr.msk.bf16.gmra.mxu0 %vm3098_vm1, %v5962_v13  ;;  %v3642_v20 = vpop.f32.mrf.mxu0 }
 0x297   :  { %v3715_v22 = vpop.f32.mrf.mxu1  ;;  %4108 = vmatmul.mubr.bf16.gmra.mxu1 %v5959_v35  ;;  %5588 = vmatprep.mubr.msk.bf16.mxu0 %vm6062_vm0, %v6061_v39  ;;  %v8786_v1 = vadd.f32 %v3642_v20, %v3474_v45 }
 0x298   :  { %v8784_v60 = vadd.f32 %v3715_v22, %v8500_v14  ;;  %4115 = vmatprep.mubr.bf16.mxu1 %v5965_v36  ;;  %v3644_v32 = vpop.f32.mrf.mxu0 }
 0x299   :  { %v3717_v48 = vpop.f32.mrf.mxu1 }
 0x29a   :  { %v3645_v26 = vpop.f32.mrf.mxu0  ;;  %v5974_v48 = vld [vmem:[%s9907_s0 + $0x370] ss:$52 sps:$4 sm:$0xff]  }
 0x29b   :  { %v3718_v46 = vpop.f32.mrf.mxu1  ;;  %v8802_v8 = vadd.f32 %v3645_v26, %v3477_v61 }
 0x29c   :  { %v8797_v14 = vadd.f32 %v3718_v46, %v8518_v40  ;;  %v3647_v11 = vpop.f32.mrf.mxu0 }
 0x29d   :  { %v3720_v27 = vpop.f32.mrf.mxu1 }
 0x29e   :  { %5589 = vmatmul.mubr.msk.bf16.gmra.mxu0 %vm3098_vm1, %v5966_v54  ;;  %v3650_v40 = vpop.f32.mrf.mxu0  ;;  %v5971_v54 = vld [vmem:[%s9907_s0 + $0x570] ss:$52 sps:$4 sm:$0xff]  }
 0x29f   :  { %v3723_v59 = vpop.f32.mrf.mxu1  ;;  %4116 = vmatmul.mubr.bf16.gmra.mxu1 %v5963_v31  ;;  %5592 = vmatprep.mubr.msk.bf16.mxu0 %vm6062_vm0, %v6061_v39  ;;  %v8812_v2 = vadd.f32 %v3650_v40, %v3482_v41 }
 0x2a0   :  { %v8810_v52 = vadd.f32 %v3723_v59, %v8524_v57  ;;  %4123 = vmatprep.mubr.bf16.mxu1 %v5969_v12  ;;  %v3652_v13 = vpop.f32.mrf.mxu0  ;;  %v5978_v59 = vld [vmem:[%s9907_s0 + $0x3d8] ss:$52 sps:$4 sm:$0xff]  }
 0x2a1   :  { %v3725_v15 = vpop.f32.mrf.mxu1 }
 0x2a2   :  { %v3653_v35 = vpop.f32.mrf.mxu0  ;;  %v5975_v15 = vld [vmem:[%s9907_s0 + $0x5d8] ss:$52 sps:$4 sm:$0xff]  }
 0x2a3   :  { %v3726_v34 = vpop.f32.mrf.mxu1  ;;  %v8828_v36 = vadd.f32 %v3653_v35, %v3485_v53 }
 0x2a4   :  { %v8823_v57 = vadd.f32 %v3726_v34, %v8542_v3  ;;  %v3655_v30 = vpop.f32.mrf.mxu0 }
 0x2a5   :  { %v3728_v5 = vpop.f32.mrf.mxu1  ;;  %v5982_v30 = vld [vmem:[%s9907_s0 + $0x440] ss:$52 sps:$4 sm:$0xff]  }
 0x2a6   :  { %5593 = vmatmul.mubr.msk.bf16.gmra.mxu0 %vm3098_vm1, %v5970_v7  ;;  %v3860_v3 = vpop.f32.mrf.mxu0 }
 0x2a7   :  { %v3731_v19 = vpop.f32.mrf.mxu1  ;;  %4124 = vmatmul.mubr.bf16.gmra.mxu1 %v5967_v42  ;;  %5596 = vmatprep.mubr.msk.bf16.mxu0 %vm6062_vm0, %v6061_v39  ;;  %v8837_v45 = vadd.f32 %v3860_v3, %v8706_v63  ;;  %v5977_v63 = vld [vmem:[%s9907_s0 + $0x5dc] ss:$52 sps:$4 sm:$0xff]   ;;  %v5979_v3 = vld [vmem:[%s9907_s0 + $0x640] ss:$52 sps:$4 sm:$0xff]  }
 0x2a8   :  { %v8834_v43 = vadd.f32 %v3731_v19, %v8548_v28  ;;  %4131 = vmatprep.mubr.bf16.mxu1 %v5973_v9  ;;  %v3862_v20 = vpop.f32.mrf.mxu0 }
 0x2a9   :  { %v3733_v22 = vpop.f32.mrf.mxu1 }
 0x2aa   :  { %v3863_v28 = vpop.f32.mrf.mxu0 }
 0x2ab   :  { %v3734_v32 = vpop.f32.mrf.mxu1  ;;  %v8852_v46 = vadd.f32 %v3863_v28, %v8719_v58 }
 0x2ac   :  { %v8846_v61 = vadd.f32 %v3734_v32, %v8566_v56  ;;  %v3865_v26 = vpop.f32.mrf.mxu0 }
 0x2ad   :  { %v3736_v31 = vpop.f32.mrf.mxu1  ;;  %v5986_v26 = vld [vmem:[%s9907_s0 + $0x4a8] ss:$52 sps:$4 sm:$0xff]  }
 0x2ae   :  { %5597 = vmatmul.mubr.msk.bf16.gmra.mxu0 %vm3098_vm1, %v5974_v48  ;;  %v3868_v27 = vpop.f32.mrf.mxu0 }
 0x2af   :  { %v3739_v12 = vpop.f32.mrf.mxu1  ;;  %4132 = vmatmul.mubr.bf16.gmra.mxu1 %v5971_v54  ;;  %5600 = vmatprep.mubr.msk.bf16.mxu0 %vm6062_vm0, %v6061_v39  ;;  %v8861_v11 = vadd.f32 %v3868_v27, %v8732_v18  ;;  %v5981_v18 = vld [vmem:[%s9907_s0 + $0x644] ss:$52 sps:$4 sm:$0xff]   ;;  %v5983_v27 = vld [vmem:[%s9907_s0 + $0x6a8] ss:$52 sps:$4 sm:$0xff]  }
 0x2b0   :  { %v8858_v56 = vadd.f32 %v3739_v12, %v8572_v37  ;;  %4139 = vmatprep.mubr.bf16.mxu1 %v5977_v63  ;;  %v3870_v58 = vpop.f32.mrf.mxu0 }
 0x2b1   :  { %v3741_v41 = vpop.f32.mrf.mxu1 }
 0x2b2   :  { %v3871_v37 = vpop.f32.mrf.mxu0 }
 0x2b3   :  { %v3742_v40 = vpop.f32.mrf.mxu1  ;;  %v8876_v7 = vadd.f32 %v3871_v37, %v8745_v21 }
 0x2b4   :  { %v8870_v13 = vadd.f32 %v3742_v40, %v8590_v47  ;;  %v3873_v34 = vpop.f32.mrf.mxu0 }
 0x2b5   :  { %v3744_v53 = vpop.f32.mrf.mxu1 }
 0x2b6   :  { %5601 = vmatmul.mubr.msk.bf16.gmra.mxu0 %vm3098_vm1, %v5978_v59  ;;  %v3876_v35 = vpop.f32.mrf.mxu0 }
 0x2b7   :  { %v3747_v42 = vpop.f32.mrf.mxu1  ;;  %4140 = vmatmul.mubr.bf16.gmra.mxu1 %v5975_v15  ;;  %5604 = vmatprep.mubr.msk.bf16.mxu0 %vm6062_vm0, %v6061_v39  ;;  %v8885_v9 = vadd.f32 %v3876_v35, %v8758_v16  ;;  %v5985_v16 = vld [vmem:[%s9907_s0 + $0x6ac] ss:$52 sps:$4 sm:$0xff]  }
 0x2b8   :  { %v8882_v47 = vadd.f32 %v3747_v42, %v8596_v44  ;;  %4147 = vmatprep.mubr.bf16.mxu1 %v5981_v18  ;;  %v3878_v21 = vpop.f32.mrf.mxu0 }
 0x2b9   :  { %v3749_v5 = vpop.f32.mrf.mxu1 }
 0x2ba   :  { %v3879_v44 = vpop.f32.mrf.mxu0 }
 0x2bb   :  { %v3750_v19 = vpop.f32.mrf.mxu1  ;;  %v8900_v20 = vadd.f32 %v3879_v44, %v8771_v10 }
 0x2bc   :  { %v8894_v22 = vadd.f32 %v3750_v19, %v8614_v23  ;;  %v3881_v32 = vpop.f32.mrf.mxu0 }
 0x2bd   :  { %v3752_v48 = vpop.f32.mrf.mxu1 }
 0x2be   :  { %5605 = vmatmul.mubr.msk.bf16.gmra.mxu0 %vm3098_vm1, %v5982_v30  ;;  %v3884_v28 = vpop.f32.mrf.mxu0 }
 0x2bf   :  { %v3755_v54 = vpop.f32.mrf.mxu1  ;;  %4148 = vmatmul.mubr.bf16.gmra.mxu1 %v5979_v3  ;;  %5608 = vmatprep.mubr.msk.bf16.mxu0 %vm6062_vm0, %v6061_v39  ;;  %v8909_v63 = vadd.f32 %v3884_v28, %v8784_v60 }
 0x2c0   :  { %v8906_v23 = vadd.f32 %v3755_v54, %v8620_v51  ;;  %4155 = vmatprep.mubr.bf16.mxu1 %v5985_v16  ;;  %v3886_v10 = vpop.f32.mrf.mxu0 }
 0x2c1   :  { %v3757_v31 = vpop.f32.mrf.mxu1 }
 0x2c2   :  { %v3887_v51 = vpop.f32.mrf.mxu0 }
 0x2c3   :  { %v3758_v12 = vpop.f32.mrf.mxu1  ;;  %v8921_v58 = vadd.f32 %v3887_v51, %v8797_v14  ;;  %v5987_v14 = vld [vmem:[%s9907_s0 + $0x510] ss:$52 sps:$4 sm:$0xff]  }
 0x2c4   :  { %v8918_v41 = vadd.f32 %v3758_v12, %v8635_v29  ;;  %v3889_v59 = vpop.f32.mrf.mxu0 }
 0x2c5   :  { %v3760_v60 = vpop.f32.mrf.mxu1 }
 0x2c6   :  { %5609 = vmatmul.mubr.msk.bf16.gmra.mxu0 %vm3098_vm1, %v5986_v26  ;;  %v3892_v37 = vpop.f32.mrf.mxu0 }
 0x2c7   :  { %v3763_v40 = vpop.f32.mrf.mxu1  ;;  %4156 = vmatmul.mubr.bf16.gmra.mxu1 %v5983_v27  ;;  %5612 = vmatprep.mubr.msk.bf16.mxu0 %vm6062_vm0, %v6061_v39  ;;  %v8930_v29 = vadd.f32 %v3892_v37, %v8810_v52 }
 0x2c8   :  { %v8927_v15 = vadd.f32 %v3763_v40, %v8643_v50  ;;  %v3894_v53 = vpop.f32.mrf.mxu0 }
 0x2c9   :  { %v3765_v18 = vpop.f32.mrf.mxu1 }
 0x2ca   :  { %v3895_v35 = vpop.f32.mrf.mxu0 }
 0x2cb   :  { %v3766_v34 = vpop.f32.mrf.mxu1  ;;  %v8939_v5 = vadd.f32 %v3895_v35, %v8823_v57  ;;  %v5988_v57 = vld [vmem:[%s9907_s0 + $0x578] ss:$52 sps:$4 sm:$0xff]  }
 0x2cc   :  { %v8936_v42 = vadd.f32 %v3766_v34, %v8658_v33  ;;  %v3897_v21 = vpop.f32.mrf.mxu0 }
 0x2cd   :  { %v3768_v50 = vpop.f32.mrf.mxu1 }
 0x2ce   :  { %5613 = vmatmul.mubr.msk.bf16.gmra.mxu0 %vm3098_vm1, %v5987_v14  ;;  %v3900_v19 = vpop.f32.mrf.mxu0 }
 0x2cf   :  { %v3771_v52 = vpop.f32.mrf.mxu1  ;;  %5616 = vmatprep.mubr.msk.bf16.mxu0 %vm6062_vm0, %v6061_v39  ;;  %v8948_v3 = vadd.f32 %v3900_v19, %v8834_v43 }
 0x2d0   :  { %v8945_v30 = vadd.f32 %v3771_v52, %v8665_v24  ;;  %v3902_v44 = vpop.f32.mrf.mxu0 }
 0x2d1   :  { %v3773_v33 = vpop.f32.mrf.mxu1 }
 0x2d2   :  { %v3903_v32 = vpop.f32.mrf.mxu0 }
 0x2d3   :  { %v3774_v16 = vpop.f32.mrf.mxu1  ;;  %v8957_v54 = vadd.f32 %v3903_v32, %v8846_v61  ;;  %v5989_v61 = vld [vmem:[%s9907_s0 + $0x5e0] ss:$52 sps:$4 sm:$0xff]  }
 0x2d4   :  { %v8954_v48 = vadd.f32 %v3774_v16, %v8678_v4  ;;  %v3905_v28 = vpop.f32.mrf.mxu0 }
 0x2d5   :  { %v3776_v24 = vpop.f32.mrf.mxu1 }
 0x2d6   :  { %5617 = vmatmul.mubr.msk.bf16.gmra.mxu0 %vm3098_vm1, %v5988_v57  ;;  %v3908_v10 = vpop.f32.mrf.mxu0 }
 0x2d7   :  { %v3779_v43 = vpop.f32.mrf.mxu1  ;;  %5620 = vmatprep.mubr.msk.bf16.mxu0 %vm6062_vm0, %v6061_v39  ;;  %v8966_v26 = vadd.f32 %v3908_v10, %v8858_v56 }
 0x2d8   :  { %v8963_v31 = vadd.f32 %v3779_v43, %v8685_v62  ;;  %v3910_v12 = vpop.f32.mrf.mxu0 }
 0x2d9   :  { %v3781_v4 = vpop.f32.mrf.mxu1 }
 0x2da   :  { %v3911_v60 = vpop.f32.mrf.mxu0 }
 0x2db   :  { %v3782_v27 = vpop.f32.mrf.mxu1  ;;  %v8975_v59 = vadd.f32 %v3911_v60, %v8870_v13  ;;  %v5990_v13 = vld [vmem:[%s9907_s0 + $0x648] ss:$52 sps:$4 sm:$0xff]  }
 0x2dc   :  { %v8972_v51 = vadd.f32 %v3782_v27, %v8698_v49  ;;  %v3913_v40 = vpop.f32.mrf.mxu0 }
 0x2dd   :  { %v3784_v62 = vpop.f32.mrf.mxu1 }
 0x2de   :  { %5621 = vmatmul.mubr.msk.bf16.gmra.mxu0 %vm3098_vm1, %v5989_v61  ;;  %v3916_v18 = vpop.f32.mrf.mxu0 }
 0x2df   :  { %v3787_v56 = vpop.f32.mrf.mxu1  ;;  %5624 = vmatprep.mubr.msk.bf16.mxu0 %vm6062_vm0, %v6061_v39  ;;  %v8984_v53 = vadd.f32 %v3916_v18, %v8882_v47 }
 0x2e0   :  { %v8981_v37 = vadd.f32 %v3787_v56, %v8708_v0  ;;  %v3918_v14 = vpop.f32.mrf.mxu0 }
 0x2e1   :  { %v3789_v49 = vpop.f32.mrf.mxu1 }
 0x2e2   :  { %v3919_v50 = vpop.f32.mrf.mxu0 }
 0x2e3   :  { %v3790_v34 = vpop.f32.mrf.mxu1  ;;  %v8993_v21 = vadd.f32 %v3919_v50, %v8894_v22  ;;  %v5991_v22 = vld [vmem:[%s9907_s0 + $0x6b0] ss:$52 sps:$4 sm:$0xff]  }
 0x2e4   :  { %v8990_v35 = vadd.f32 %v3790_v34, %v8724_v25  ;;  %v3921_v52 = vpop.f32.mrf.mxu0 }
 0x2e5   :  { %v3792_v0 = vpop.f32.mrf.mxu1 }
 0x2e6   :  { %5625 = vmatmul.mubr.msk.bf16.gmra.mxu0 %vm3098_vm1, %v5990_v13  ;;  %v3924_v33 = vpop.f32.mrf.mxu0 }
 0x2e7   :  { %v3795_v47 = vpop.f32.mrf.mxu1  ;;  %5628 = vmatprep.mubr.msk.bf16.mxu0 %vm6062_vm0, %v6061_v39  ;;  %v9000_v44 = vadd.f32 %v3924_v33, %v8906_v23 }
 0x2e8   :  { %v3796_v19 = vadd.f32 %v3795_v47, %v8734_v17  ;;  %v3926_v57 = vpop.f32.mrf.mxu0 }
 0x2e9   :  { %v3797_v25 = vpop.f32.mrf.mxu1 }
 0x2ea   :  { %v3927_v24 = vpop.f32.mrf.mxu0 }
 0x2eb   :  { %v3798_v16 = vpop.f32.mrf.mxu1  ;;  %v9007_v28 = vadd.f32 %v3927_v24, %v8918_v41 }
 0x2ec   :  { %v3799_v32 = vadd.f32 %v3798_v16, %v8750_v38  ;;  %v3929_v43 = vpop.f32.mrf.mxu0 }
 0x2ed   :  { %v3800_v39 = vpop.f32.mrf.mxu1 }
 0x2ee   :  { %5629 = vmatmul.mubr.msk.bf16.gmra.mxu0 %vm3098_vm1, %v5991_v22  ;;  %v3932_v10 = vpop.f32.mrf.mxu0 }
 0x2ef   :  { %v3803_v17 = vpop.f32.mrf.mxu1  ;;  %v9012_v4 = vadd.f32 %v3932_v10, %v8927_v15 }
 0x2f0   :  { %v3804_v23 = vadd.f32 %v3803_v17, %v8760_v6  ;;  %v3934_v61 = vpop.f32.mrf.mxu0 }
 0x2f1   :  { %v3805_v12 = vpop.f32.mrf.mxu1 }
 0x2f2   :  { %v3935_v60 = vpop.f32.mrf.mxu0 }
 0x2f3   :  { %v3806_v27 = vpop.f32.mrf.mxu1  ;;  %v9016_v41 = vadd.f32 %v3935_v60, %v8936_v42 }
 0x2f4   :  { %v3807_v38 = vadd.f32 %v3806_v27, %v8776_v55  ;;  %v3937_v40 = vpop.f32.mrf.mxu0 }
 0x2f5   :  { %v3808_v62 = vpop.f32.mrf.mxu1 }
 0x2f6   :  { %v3940_v49 = vpop.f32.mrf.mxu0 }
 0x2f7   :  { %v3811_v56 = vpop.f32.mrf.mxu1  ;;  %v9020_v6 = vadd.f32 %v3940_v49, %v8945_v30 }
 0x2f8   :  { %v3812_v18 = vadd.f32 %v3811_v56, %v8786_v1  ;;  %v3942_v14 = vpop.f32.mrf.mxu0 }
 0x2f9   :  { %v3813_v15 = vpop.f32.mrf.mxu1 }
 0x2fa   :  { %v3943_v50 = vpop.f32.mrf.mxu0 }
 0x2fb   :  { %v3814_v13 = vpop.f32.mrf.mxu1  ;;  %v9024_v55 = vadd.f32 %v3943_v50, %v8954_v48 }
 0x2fc   :  { %v3815_v34 = vadd.f32 %v3814_v13, %v8802_v8  ;;  %v3945_v0 = vpop.f32.mrf.mxu0 }
 0x2fd   :  { %v3816_v42 = vpop.f32.mrf.mxu1 }
 0x2fe   :  { %v3948_v33 = vpop.f32.mrf.mxu0 }
 0x2ff   :  { %v3819_v52 = vpop.f32.mrf.mxu1  ;;  %v9028_v1 = vadd.f32 %v3948_v33, %v8963_v31 }
 0x300   :  { %v3820_v47 = vadd.f32 %v3819_v52, %v8812_v2  ;;  %v3950_v25 = vpop.f32.mrf.mxu0 }
 0x301   :  { %v3821_v30 = vpop.f32.mrf.mxu1  ;;  %v9056_v25 = vpop.permute.xlu0 %4818 }
 0x302   :  { %v3951_v16 = vpop.f32.mrf.mxu0 }
 0x303   :  { %v3822_v57 = vpop.f32.mrf.mxu1  ;;  %v9032_v8 = vadd.f32 %v3951_v16, %v8972_v51 }
 0x304   :  { %v3823_v22 = vadd.f32 %v3822_v57, %v8828_v36  ;;  %v3953_v24 = vpop.f32.mrf.mxu0 }
 0x305   :  { %v3824_v48 = vpop.f32.mrf.mxu1 }
 0x306   :  { %v3956_v43 = vpop.f32.mrf.mxu0 }
 0x307   :  { %v4029_v39 = vpop.f32.mrf.mxu1  ;;  %v9035_v17 = vadd.f32 %v3956_v43, %v8981_v37 }
 0x308   :  { %v3958_v10 = vpop.f32.mrf.mxu0 }
 0x309   :  { %v4031_v2 = vpop.f32.mrf.mxu1 }
 0x30a   :  { %v3959_v12 = vpop.f32.mrf.mxu0 }
 0x30b   :  { %v4032_v31 = vpop.f32.mrf.mxu1  ;;  %v9038_v61 = vadd.f32 %v3959_v12, %v8990_v35  ;;  %v9050_v35 = vpop.permute.xlu1 %4813 }
 0x30c   :  { %v3961_v36 = vpop.f32.mrf.mxu0  ;;  %v9066_v12 = vpop.permute.xlu0 %4833 }
 0x30d   :  { %v4034_v27 = vpop.f32.mrf.mxu1 }
 0x30e   :  { %v3964_v51 = vpop.f32.mrf.mxu0 }
 0x30f   :  { %v9040_v60 = vpop.f32.mrf.mxu1  ;;  %v9042_v62 = vadd.f32 %v3964_v51, %v3796_v19  ;;  %v9060_v16 = vpop.permute.xlu1 %4823 }
 0x310   :  { %v3966_v56 = vpop.f32.mrf.mxu0 }
 0x311   :  { %v4039_v40 = vpop.f32.mrf.mxu1 }
 0x312   :  { %v3967_v37 = vpop.f32.mrf.mxu0 }
 0x313   :  { %v9044_v49 = vpop.f32.mrf.mxu1  ;;  %v9046_v15 = vadd.f32 %v3967_v37, %v3799_v32  ;;  %v9070_v36 = vpop.permute.xlu1 %4828 }
 0x314   :  { %v3969_v13 = vpop.f32.mrf.mxu0 }
 0x315   :  { %v4042_v14 = vpop.f32.mrf.mxu1  ;;  %v9076_v13 = vpop.permute.xlu0 %4843 }
 0x316   :  { %v3972_v42 = vpop.f32.mrf.mxu0  ;;  %9915 = vst [vmem:[#allocation2_spill] sm:$0xff] %v9076_v13 }
 0x317   :  { %v9048_v50 = vpop.f32.mrf.mxu1  ;;  %v9052_v0 = vadd.f32 %v3972_v42, %v3804_v23 }
 0x318   :  { %v3974_v33 = vpop.f32.mrf.mxu0 }
 0x319   :  { %v4047_v52 = vpop.f32.mrf.mxu1 }
 0x31a   :  { %v3975_v30 = vpop.f32.mrf.mxu0  ;;  %v9080_v52 = vpop.permute.xlu1 %4838 }
 0x31b   :  { %v9054_v19 = vpop.f32.mrf.mxu1  ;;  %v9058_v57 = vadd.f32 %v3975_v30, %v3807_v38  ;;  %9916 = vst [vmem:[#allocation3_spill] sm:$0xff] %v9080_v52 }
 0x31c   :  { %v3977_v48 = vpop.f32.mrf.mxu0 }
 0x31d   :  { %v4050_v32 = vpop.f32.mrf.mxu1 }
 0x31e   :  { %v3980_v43 = vpop.f32.mrf.mxu0 }
 0x31f   :  { %v9062_v24 = vpop.f32.mrf.mxu1  ;;  %v9064_v2 = vadd.f32 %v3980_v43, %v3812_v18 }
 0x320   :  { %v3982_v10 = vpop.f32.mrf.mxu0 }
 0x321   :  { %v4055_v23 = vpop.f32.mrf.mxu1  ;;  %v4030_v10 = vadd.f32 %v4029_v39, %v8837_v45 }
 0x322   :  { %v3983_v51 = vpop.f32.mrf.mxu0  ;;  %v9086_v23 = vpop.permute.xlu0 %4853 }
 0x323   :  { %v9068_v27 = vpop.f32.mrf.mxu1  ;;  %v9072_v38 = vadd.f32 %v3983_v51, %v3815_v34  ;;  %9917 = vst [vmem:[#allocation4_spill] sm:$0xff] %v9086_v23 }
 0x324   :  { %v3985_v56 = vpop.f32.mrf.mxu0 }
 0x325   :  { %v4058_v40 = vpop.f32.mrf.mxu1 }
 0x326   :  { %v3988_v14 = vpop.f32.mrf.mxu0  ;;  %v9091_v40 = vpop.permute.xlu1 %4848 }
 0x327   :  { %v9074_v37 = vpop.f32.mrf.mxu1  ;;  %v9078_v18 = vadd.f32 %v3988_v14, %v3820_v47  ;;  %9918 = vst [vmem:[#allocation5_spill] sm:$0xff] %v9091_v40  ;;  %v9100_v45 = vpop.permute.xlu0 %4863 }
 0x328   :  { %v3990_v33 = vpop.f32.mrf.mxu0  ;;  %9919 = vst [vmem:[#allocation6_spill] sm:$0xff] %v9100_v45 }
 0x329   :  { %v4063_v42 = vpop.f32.mrf.mxu1  ;;  %v4033_v33 = vadd.f32 %v4032_v31, %v8852_v46 }
 0x32a   :  { %v3991_v32 = vpop.f32.mrf.mxu0  ;;  %v9104_v40 = vpop.permute.xlu1 %4858 }
 0x32b   :  { %v9082_v30 = vpop.f32.mrf.mxu1  ;;  %v9084_v48 = vadd.f32 %v3991_v32, %v3823_v22  ;;  %9920 = vst [vmem:[#allocation7_spill] sm:$0xff] %v9104_v40 }
 0x32c   :  { %v3993_v43 = vpop.f32.mrf.mxu0 }
 0x32d   :  { %v4066_v34 = vpop.f32.mrf.mxu1 }
 0x32e   :  { %v4198_v47 = vpop.f32.mrf.mxu0 }
 0x32f   :  { %v9089_v51 = vpop.f32.mrf.mxu1  ;;  %v9093_v56 = vadd.f32 %v4198_v47, %v4030_v10  ;;  %v4038_v47 = vadd.f32 %v9040_v60, %v8861_v11  ;;  %v9122_v60 = vpop.permute.xlu1 %4868 }
 0x330   :  { %v5566_v42 = vpop.f32.mrf.mxu0  ;;  %9922 = vst [vmem:[#allocation9_spill] sm:$0xff] %v9122_v60 }
 0x331   :  { %v4071_v14 = vpop.f32.mrf.mxu1  ;;  %v4334_v32 = vsel %vm4333_vm2, %v9093_v56, 0.0 }
 0x332   :  { %v4201_v34 = vpop.f32.mrf.mxu0  ;;  %4335 = vadd.xlane.f32.xlu0 %v4334_v32 }
 0x333   :  { %v9096_v22 = vpop.f32.mrf.mxu1  ;;  %v9102_v39 = vadd.f32 %v4201_v34, %v4033_v33  ;;  %v9114_v33 = vpop.permute.xlu0 %4873  ;;  %v4041_v34 = vadd.f32 %v9044_v49, %v8876_v7 }
 0x334   :  { %v5567_v10 = vpop.f32.mrf.mxu0  ;;  %9921 = vst [vmem:[#allocation8_spill] sm:$0xff] %v9114_v33 }
 0x335   :  { %v4074_v43 = vpop.f32.mrf.mxu1  ;;  %v4337_v46 = vsel %vm4333_vm2, %v9102_v39, 0.0 }
 0x336   :  { %v4206_v31 = vpop.f32.mrf.mxu0  ;;  %4338 = vadd.xlane.f32.xlu1 %v4337_v46 }
 0x337   :  { %v9108_v14 = vpop.f32.mrf.mxu1  ;;  %v9112_v42 = vadd.f32 %v4206_v31, %v4038_v47 }
 0x338   :  { %v5570_v45 = vpop.f32.mrf.mxu0 }
 0x339   :  { %v4079_v32 = vpop.f32.mrf.mxu1  ;;  %v4340_v11 = vsel %vm4333_vm2, %v9112_v42, 0.0  ;;  %v4046_v45 = vadd.f32 %v9048_v50, %v8885_v9 }
 0x33a   :  { %v4209_v10 = vpop.f32.mrf.mxu0  ;;  %4341 = vadd.xlane.f32.xlu0 %v4340_v11  ;;  %v9132_v32 = vpop.permute.xlu0 %4883 }
 0x33b   :  { %v9118_v43 = vpop.f32.mrf.mxu1  ;;  %v9124_v40 = vadd.f32 %v4209_v10, %v4041_v34  ;;  %9923 = vst [vmem:[#allocation10_spill] sm:$0xff] %v9132_v32  ;;  %v9136_v11 = vpop.permute.xlu1 %4878  ;;  %v4049_v10 = vadd.f32 %v9054_v19, %v8900_v20 }
 0x33c   :  { %v5571_v46 = vpop.f32.mrf.mxu0  ;;  %9924 = vst [vmem:[#allocation11_spill] sm:$0xff] %v9136_v11 }
 0x33d   :  { %v4082_v47 = vpop.f32.mrf.mxu1  ;;  %v4343_v7 = vsel %vm4333_vm2, %v9124_v40, 0.0 }
 0x33e   :  { %v4214_v49 = vpop.f32.mrf.mxu0  ;;  %4344 = vadd.xlane.f32.xlu0 %v4343_v7 }
 0x33f   :  { %v9128_v31 = vpop.f32.mrf.mxu1  ;;  %v9134_v33 = vadd.f32 %v4214_v49, %v4046_v45  ;;  %v9146_v45 = vpop.permute.xlu0 %4893 }
 0x340   :  { %v5574_v34 = vpop.f32.mrf.mxu0  ;;  %9925 = vst [vmem:[#allocation12_spill] sm:$0xff] %v9146_v45  ;;  %v9154_v19 = vpop.permute.xlu1 %4888 }
 0x341   :  { %v4087_v60 = vpop.f32.mrf.mxu1  ;;  %v4346_v9 = vsel %vm4333_vm2, %v9134_v33, 0.0  ;;  %9926 = vst [vmem:[#allocation13_spill] sm:$0xff] %v9154_v19 }
 0x342   :  { %v4217_v50 = vpop.f32.mrf.mxu0  ;;  %4347 = vadd.xlane.f32.xlu1 %v4346_v9  ;;  %v4054_v60 = vadd.f32 %v9062_v24, %v8909_v63 }
 0x343   :  { %v9140_v47 = vpop.f32.mrf.mxu1  ;;  %v9144_v46 = vadd.f32 %v4217_v50, %v4049_v10 }
 0x344   :  { %v5575_v32 = vpop.f32.mrf.mxu0 }
 0x345   :  { %v4090_v7 = vpop.f32.mrf.mxu1  ;;  %v4349_v20 = vsel %vm4333_vm2, %v9144_v46, 0.0  ;;  %v4057_v32 = vadd.f32 %v9068_v27, %v8921_v58 }
 0x346   :  { %v4222_v34 = vpop.f32.mrf.mxu0  ;;  %4350 = vadd.xlane.f32.xlu0 %v4349_v20  ;;  %v9164_v7 = vpop.permute.xlu0 %4903 }
 0x347   :  { %v9150_v49 = vpop.f32.mrf.mxu1  ;;  %v9156_v11 = vadd.f32 %v4222_v34, %v4054_v60  ;;  %9927 = vst [vmem:[#allocation14_spill] sm:$0xff] %v9164_v7  ;;  %v9168_v20 = vpop.permute.xlu1 %4898  ;;  %v4062_v34 = vadd.f32 %v9074_v37, %v8930_v29 }
 0x348   :  { %v5578_v9 = vpop.f32.mrf.mxu0  ;;  %9928 = vst [vmem:[#allocation15_spill] sm:$0xff] %v9168_v20 }
 0x349   :  { %v4095_v10 = vpop.f32.mrf.mxu1  ;;  %v4352_v63 = vsel %vm4333_vm2, %v9156_v11, 0.0 }
 0x34a   :  { %v4225_v24 = vpop.f32.mrf.mxu0  ;;  %4353 = vadd.xlane.f32.xlu1 %v4352_v63 }
 0x34b   :  { %v9160_v50 = vpop.f32.mrf.mxu1  ;;  %v9166_v45 = vadd.f32 %v4225_v24, %v4057_v32  ;;  %v9178_v32 = vpop.permute.xlu0 %4913 }
 0x34c   :  { %v5579_v60 = vpop.f32.mrf.mxu0  ;;  %9929 = vst [vmem:[#allocation16_spill] sm:$0xff] %v9178_v32  ;;  %v9186_v37 = vpop.permute.xlu1 %4908 }
 0x34d   :  { %v4098_v19 = vpop.f32.mrf.mxu1  ;;  %v4355_v58 = vsel %vm4333_vm2, %v9166_v45, 0.0  ;;  %9930 = vst [vmem:[#allocation17_spill] sm:$0xff] %v9186_v37 }
 0x34e   :  { %v4230_v27 = vpop.f32.mrf.mxu0  ;;  %4356 = vadd.xlane.f32.xlu0 %v4355_v58  ;;  %v4065_v19 = vadd.f32 %v9082_v30, %v8939_v5 }
 0x34f   :  { %v9172_v10 = vpop.f32.mrf.mxu1  ;;  %v9176_v9 = vadd.f32 %v4230_v27, %v4062_v34 }
 0x350   :  { %v5582_v7 = vpop.f32.mrf.mxu0 }
 0x351   :  { %v4103_v63 = vpop.f32.mrf.mxu1  ;;  %v4358_v29 = vsel %vm4333_vm2, %v9176_v9, 0.0  ;;  %v4070_v7 = vadd.f32 %v9089_v51, %v8948_v3 }
 0x352   :  { %v4233_v60 = vpop.f32.mrf.mxu0  ;;  %4359 = vadd.xlane.f32.xlu1 %v4358_v29  ;;  %v9196_v63 = vpop.permute.xlu0 %4923 }
 0x353   :  { %v9182_v24 = vpop.f32.mrf.mxu1  ;;  %v9188_v20 = vadd.f32 %v4233_v60, %v4065_v19  ;;  %9931 = vst [vmem:[#allocation18_spill] sm:$0xff] %v9196_v63  ;;  %v9200_v29 = vpop.permute.xlu1 %4918  ;;  %v4073_v60 = vadd.f32 %v9096_v22, %v8957_v54 }
 0x354   :  { %v5583_v58 = vpop.f32.mrf.mxu0  ;;  %9932 = vst [vmem:[#allocation19_spill] sm:$0xff] %v9200_v29 }
 0x355   :  { %v4106_v34 = vpop.f32.mrf.mxu1  ;;  %v4361_v5 = vsel %vm4333_vm2, %v9188_v20, 0.0 }
 0x356   :  { %v4238_v30 = vpop.f32.mrf.mxu0  ;;  %4362 = vadd.xlane.f32.xlu0 %v4361_v5 }
 0x357   :  { %v9192_v27 = vpop.f32.mrf.mxu1  ;;  %v9198_v32 = vadd.f32 %v4238_v30, %v4070_v7  ;;  %v9210_v7 = vpop.permute.xlu0 %4933 }
 0x358   :  { %v5586_v19 = vpop.f32.mrf.mxu0  ;;  %9933 = vst [vmem:[#allocation20_spill] sm:$0xff] %v9210_v7  ;;  %v9218_v22 = vpop.permute.xlu1 %4928 }
 0x359   :  { %v4111_v37 = vpop.f32.mrf.mxu1  ;;  %v4364_v3 = vsel %vm4333_vm2, %v9198_v32, 0.0  ;;  %9934 = vst [vmem:[#allocation21_spill] sm:$0xff] %v9218_v22 }
 0x35a   :  { %v4241_v51 = vpop.f32.mrf.mxu0  ;;  %4365 = vadd.xlane.f32.xlu1 %v4364_v3  ;;  %v4078_v37 = vadd.f32 %v9108_v14, %v8966_v26 }
 0x35b   :  { %v9204_v34 = vpop.f32.mrf.mxu1  ;;  %v9208_v58 = vadd.f32 %v4241_v51, %v4073_v60 }
 0x35c   :  { %v5587_v63 = vpop.f32.mrf.mxu0 }
 0x35d   :  { %v4114_v5 = vpop.f32.mrf.mxu1  ;;  %v4367_v54 = vsel %vm4333_vm2, %v9208_v58, 0.0  ;;  %v4081_v63 = vadd.f32 %v9118_v43, %v8975_v59 }
 0x35e   :  { %v4246_v19 = vpop.f32.mrf.mxu0  ;;  %4368 = vadd.xlane.f32.xlu0 %v4367_v54  ;;  %v9228_v5 = vpop.permute.xlu0 %4943 }
 0x35f   :  { %v9214_v30 = vpop.f32.mrf.mxu1  ;;  %v9220_v29 = vadd.f32 %v4246_v19, %v4078_v37  ;;  %9935 = vst [vmem:[#allocation22_spill] sm:$0xff] %v9228_v5  ;;  %v9232_v54 = vpop.permute.xlu1 %4938  ;;  %v4086_v19 = vadd.f32 %v9128_v31, %v8984_v53 }
 0x360   :  { %v5590_v3 = vpop.f32.mrf.mxu0  ;;  %9936 = vst [vmem:[#allocation23_spill] sm:$0xff] %v9232_v54 }
 0x361   :  { %v4119_v60 = vpop.f32.mrf.mxu1  ;;  %v4370_v26 = vsel %vm4333_vm2, %v9220_v29, 0.0 }
 0x362   :  { %v4249_v14 = vpop.f32.mrf.mxu0  ;;  %4371 = vadd.xlane.f32.xlu1 %v4370_v26 }
 0x363   :  { %v9224_v51 = vpop.f32.mrf.mxu1  ;;  %v9230_v7 = vadd.f32 %v4249_v14, %v4081_v63  ;;  %v9242_v63 = vpop.permute.xlu0 %4953 }
 0x364   :  { %v5591_v37 = vpop.f32.mrf.mxu0  ;;  %9937 = vst [vmem:[#allocation24_spill] sm:$0xff] %v9242_v63  ;;  %v9250_v31 = vpop.permute.xlu1 %4948 }
 0x365   :  { %v4122_v22 = vpop.f32.mrf.mxu1  ;;  %v4373_v59 = vsel %vm4333_vm2, %v9230_v7, 0.0  ;;  %9938 = vst [vmem:[#allocation25_spill] sm:$0xff] %v9250_v31 }
 0x366   :  { %v4254_v43 = vpop.f32.mrf.mxu0  ;;  %4374 = vadd.xlane.f32.xlu0 %v4373_v59  ;;  %v4089_v22 = vadd.f32 %v9140_v47, %v8993_v21 }
 0x367   :  { %v9236_v60 = vpop.f32.mrf.mxu1  ;;  %v9240_v3 = vadd.f32 %v4254_v43, %v4086_v19 }
 0x368   :  { %v5594_v5 = vpop.f32.mrf.mxu0 }
 0x369   :  { %v4127_v26 = vpop.f32.mrf.mxu1  ;;  %v4376_v53 = vsel %vm4333_vm2, %v9240_v3, 0.0  ;;  %v4094_v5 = vadd.f32 %v9150_v49, %v9000_v44 }
 0x36a   :  { %v4257_v37 = vpop.f32.mrf.mxu0  ;;  %4377 = vadd.xlane.f32.xlu1 %v4376_v53  ;;  %v9260_v26 = vpop.permute.xlu0 %4963 }
 0x36b   :  { %v9246_v14 = vpop.f32.mrf.mxu1  ;;  %v9252_v54 = vadd.f32 %v4257_v37, %v4089_v22  ;;  %9939 = vst [vmem:[#allocation26_spill] sm:$0xff] %v9260_v26  ;;  %v9264_v53 = vpop.permute.xlu1 %4958  ;;  %v4097_v37 = vadd.f32 %v9160_v50, %v9007_v28 }
 0x36c   :  { %v5595_v59 = vpop.f32.mrf.mxu0  ;;  %9940 = vst [vmem:[#allocation27_spill] sm:$0xff] %v9264_v53 }
 0x36d   :  { %v4130_v19 = vpop.f32.mrf.mxu1  ;;  %v4379_v21 = vsel %vm4333_vm2, %v9252_v54, 0.0 }
 0x36e   :  { %v4262_v47 = vpop.f32.mrf.mxu0  ;;  %4380 = vadd.xlane.f32.xlu0 %v4379_v21 }
 0x36f   :  { %v9256_v43 = vpop.f32.mrf.mxu1  ;;  %v9262_v63 = vadd.f32 %v4262_v47, %v4094_v5  ;;  %v9274_v5 = vpop.permute.xlu0 %4973 }
 0x370   :  { %v5598_v22 = vpop.f32.mrf.mxu0  ;;  %9941 = vst [vmem:[#allocation28_spill] sm:$0xff] %v9274_v5  ;;  %v9282_v50 = vpop.permute.xlu1 %4968 }
 0x371   :  { %v4135_v31 = vpop.f32.mrf.mxu1  ;;  %v4382_v44 = vsel %vm4333_vm2, %v9262_v63, 0.0  ;;  %9942 = vst [vmem:[#allocation29_spill] sm:$0xff] %v9282_v50 }
 0x372   :  { %v4265_v49 = vpop.f32.mrf.mxu0  ;;  %4383 = vadd.xlane.f32.xlu1 %v4382_v44  ;;  %v4102_v31 = vadd.f32 %v9172_v10, %v9012_v4 }
 0x373   :  { %v9268_v19 = vpop.f32.mrf.mxu1  ;;  %v9272_v59 = vadd.f32 %v4265_v49, %v4097_v37 }
 0x374   :  { %v5599_v26 = vpop.f32.mrf.mxu0 }
 0x375   :  { %v4138_v21 = vpop.f32.mrf.mxu1  ;;  %v4385_v28 = vsel %vm4333_vm2, %v9272_v59, 0.0  ;;  %v4105_v26 = vadd.f32 %v9182_v24, %v9016_v41 }
 0x376   :  { %v4270_v22 = vpop.f32.mrf.mxu0  ;;  %4386 = vadd.xlane.f32.xlu0 %v4385_v28  ;;  %v9292_v21 = vpop.permute.xlu0 %5051 }
 0x377   :  { %v9278_v47 = vpop.f32.mrf.mxu1  ;;  %v9284_v53 = vadd.f32 %v4270_v22, %v4102_v31  ;;  %v9296_v28 = vpop.permute.xlu1 %4978  ;;  %v4110_v22 = vadd.f32 %v9192_v27, %v9020_v6 }
 0x378   :  { %v5602_v44 = vpop.f32.mrf.mxu0  ;;  %9943 = vst [vmem:[#allocation30_spill] sm:$0xff] %v9296_v28 }
 0x379   :  { %v4143_v37 = vpop.f32.mrf.mxu1  ;;  %v4388_v4 = vsel %vm4333_vm2, %v9284_v53, 0.0 }
 0x37a   :  { %v4273_v10 = vpop.f32.mrf.mxu0  ;;  %4389 = vadd.xlane.f32.xlu1 %v4388_v4 }
 0x37b   :  { %v9288_v49 = vpop.f32.mrf.mxu1  ;;  %v9294_v5 = vadd.f32 %v4273_v10, %v4105_v26  ;;  %v9306_v26 = vpop.permute.xlu0 %5061 }
 0x37c   :  { %v5603_v31 = vpop.f32.mrf.mxu0  ;;  %v9314_v27 = vpop.permute.xlu1 %5056 }
 0x37d   :  { %v4146_v50 = vpop.f32.mrf.mxu1  ;;  %v4391_v41 = vsel %vm4333_vm2, %v9294_v5, 0.0 }
 0x37e   :  { %v4278_v24 = vpop.f32.mrf.mxu0  ;;  %4392 = vadd.xlane.f32.xlu0 %v4391_v41  ;;  %v4113_v50 = vadd.f32 %v9204_v34, %v9024_v55 }
 0x37f   :  { %v9300_v37 = vpop.f32.mrf.mxu1  ;;  %v9304_v44 = vadd.f32 %v4278_v24, %v4110_v22 }
 0x380   :  { %v5606_v23 = vpop.f32.mrf.mxu0 }
 0x381   :  { %v4151_v4 = vpop.f32.mrf.mxu1  ;;  %v4394_v6 = vsel %vm4333_vm2, %v9304_v44, 0.0  ;;  %v4118_v23 = vadd.f32 %v9214_v30, %v9028_v1 }
 0x382   :  { %v4281_v31 = vpop.f32.mrf.mxu0  ;;  %4395 = vadd.xlane.f32.xlu1 %v4394_v6  ;;  %v9324_v4 = vpop.permute.xlu0 %5071 }
 0x383   :  { %v9310_v10 = vpop.f32.mrf.mxu1  ;;  %v9316_v28 = vadd.f32 %v4281_v31, %v4113_v50  ;;  %9944 = vst [vmem:[#allocation31_spill] sm:$0xff] %v9324_v4  ;;  %v9328_v6 = vpop.permute.xlu1 %5066  ;;  %v4121_v31 = vadd.f32 %v9224_v51, %v9032_v8 }
 0x384   :  { %v5607_v41 = vpop.f32.mrf.mxu0  ;;  %9945 = vst [vmem:[#allocation32_spill] sm:$0xff] %v9328_v6 }
 0x385   :  { %v4154_v22 = vpop.f32.mrf.mxu1  ;;  %v4397_v55 = vsel %vm4333_vm2, %v9316_v28, 0.0 }
 0x386   :  { %v4286_v34 = vpop.f32.mrf.mxu0  ;;  %4398 = vadd.xlane.f32.xlu0 %v4397_v55 }
 0x387   :  { %v9320_v24 = vpop.f32.mrf.mxu1  ;;  %v9326_v52 = vadd.f32 %v4286_v34, %v4118_v23  ;;  %v9338_v23 = vpop.permute.xlu0 %5081 }
 0x388   :  { %v5610_v50 = vpop.f32.mrf.mxu0  ;;  %v9344_v8 = vpop.permute.xlu1 %5076 }
 0x389   :  { %v4159_v13 = vpop.f32.mrf.mxu1  ;;  %v4400_v1 = vsel %vm4333_vm2, %v9326_v52, 0.0 }
 0x38a   :  { %v4289_v30 = vpop.f32.mrf.mxu0  ;;  %4401 = vadd.xlane.f32.xlu1 %v4400_v1  ;;  %v4126_v13 = vadd.f32 %v9236_v60, %v9035_v17 }
 0x38b   :  { %v9332_v22 = vpop.f32.mrf.mxu1  ;;  %v9336_v41 = vadd.f32 %v4289_v30, %v4121_v31  ;;  %v4129_v31 = vadd.f32 %v9246_v14, %v9038_v61  ;;  %v9352_v30 = vpop.permute.xlu0 %5091 }
 0x38c   :  { %v5611_v4 = vpop.f32.mrf.mxu0  ;;  %v9356_v60 = vpop.permute.xlu1 %5086 }
 0x38d   :  { %v4162_v55 = vpop.f32.mrf.mxu1  ;;  %v4403_v34 = vsel %vm4333_vm2, %v9336_v41, 0.0 }
 0x38e   :  { %v4294_v51 = vpop.f32.mrf.mxu0  ;;  %4404 = vadd.xlane.f32.xlu0 %v4403_v34 }
 0x38f   :  { %v9346_v50 = vadd.f32 %v4294_v51, %v4126_v13  ;;  %v4134_v13 = vadd.f32 %v9256_v43, %v9042_v62  ;;  %v9364_v51 = vpop.permute.xlu0 %5101 }
 0x390   :  { %v5614_v6 = vpop.f32.mrf.mxu0 }
 0x391   :  { %v4406_v4 = vsel %vm4333_vm2, %v9346_v50, 0.0 }
 0x392   :  { %v4297_v1 = vpop.f32.mrf.mxu0  ;;  %4407 = vadd.xlane.f32.xlu1 %v4406_v4 }
 0x393   :  { %v9354_v17 = vadd.f32 %v4297_v1, %v4129_v31  ;;  %v4137_v31 = vadd.f32 %v9268_v19, %v9046_v15  ;;  %v9370_v1 = vpop.permute.xlu1 %5096 }
 0x394   :  { %v5615_v55 = vpop.f32.mrf.mxu0  ;;  %9946 = vst [vmem:[#allocation33_spill] sm:$0xff] %v9370_v1 }
 0x395   :  { %v4409_v6 = vsel %vm4333_vm2, %v9354_v17, 0.0 }
 0x396   :  { %v4302_v34 = vpop.f32.mrf.mxu0  ;;  %4410 = vadd.xlane.f32.xlu0 %v4409_v6 }
 0x397   :  { %v9362_v61 = vadd.f32 %v4302_v34, %v4134_v13  ;;  %v4142_v13 = vadd.f32 %v9278_v47, %v9052_v0  ;;  %v9382_v19 = vpop.permute.xlu1 %5106 }
 0x398   :  { %v5618_v14 = vpop.f32.mrf.mxu0  ;;  %9947 = vst [vmem:[#allocation34_spill] sm:$0xff] %v9382_v19 }
 0x399   :  { %v4412_v4 = vsel %vm4333_vm2, %v9362_v61, 0.0  ;;  %v9378_v14 = vpop.permute.xlu0 %5111 }
 0x39a   :  { %v4305_v55 = vpop.f32.mrf.mxu0  ;;  %4413 = vadd.xlane.f32.xlu1 %v4412_v4 }
 0x39b   :  { %v9372_v62 = vadd.f32 %v4305_v55, %v4137_v31  ;;  %v4145_v31 = vadd.f32 %v9288_v49, %v9058_v57 }
 0x39c   :  { %v5619_v43 = vpop.f32.mrf.mxu0 }
 0x39d   :  { %v4415_v6 = vsel %vm4333_vm2, %v9372_v62, 0.0  ;;  %v9390_v43 = vpop.permute.xlu0 %5121 }
 0x39e   :  { %v4310_v34 = vpop.f32.mrf.mxu0  ;;  %4416 = vadd.xlane.f32.xlu0 %v4415_v6  ;;  %9948 = vst [vmem:[#allocation35_spill] sm:$0xff] %v9390_v43 }
 0x39f   :  { %v9380_v15 = vadd.f32 %v4310_v34, %v4142_v13  ;;  %v4150_v13 = vadd.f32 %v9300_v37, %v9064_v2 }
 0x3a0   :  { %v5622_v1 = vpop.f32.mrf.mxu0 }
 0x3a1   :  { %v4418_v4 = vsel %vm4333_vm2, %v9380_v15, 0.0  ;;  %v9396_v1 = vpop.permute.xlu1 %5116 }
 0x3a2   :  { %v4313_v55 = vpop.f32.mrf.mxu0  ;;  %4419 = vadd.xlane.f32.xlu1 %v4418_v4  ;;  %9949 = vst [vmem:[#allocation36_spill] sm:$0xff] %v9396_v1 }
 0x3a3   :  { %v9388_v0 = vadd.f32 %v4313_v55, %v4145_v31  ;;  %v4153_v31 = vadd.f32 %v9310_v10, %v9072_v38 }
 0x3a4   :  { %v5623_v47 = vpop.f32.mrf.mxu0 }
 0x3a5   :  { %v4421_v6 = vsel %vm4333_vm2, %v9388_v0, 0.0  ;;  %v9404_v47 = vpop.permute.xlu0 %5131  ;;  %v9408_v37 = vpop.permute.xlu1 %5126 }
 0x3a6   :  { %v4318_v34 = vpop.f32.mrf.mxu0  ;;  %4422 = vadd.xlane.f32.xlu0 %v4421_v6  ;;  %9950 = vst [vmem:[#allocation37_spill] sm:$0xff] %v9404_v47  ;;  %9951 = vst [vmem:[#allocation38_spill] sm:$0xff] %v9408_v37 }
 0x3a7   :  { %v9398_v57 = vadd.f32 %v4318_v34, %v4150_v13  ;;  %v4158_v13 = vadd.f32 %v9320_v24, %v9078_v18 }
 0x3a8   :  { %v5626_v49 = vpop.f32.mrf.mxu0 }
 0x3a9   :  { %v4424_v4 = vsel %vm4333_vm2, %v9398_v57, 0.0  ;;  %v9416_v49 = vpop.permute.xlu0 %5141 }
 0x3aa   :  { %v4321_v55 = vpop.f32.mrf.mxu0  ;;  %4425 = vadd.xlane.f32.xlu1 %v4424_v4  ;;  %9952 = vst [vmem:[#allocation39_spill] sm:$0xff] %v9416_v49 }
 0x3ab   :  { %v9406_v2 = vadd.f32 %v4321_v55, %v4153_v31  ;;  %v4161_v31 = vadd.f32 %v9332_v22, %v9084_v48  ;;  %v5046_v22 = vld [vmem:[%s9910_s4 + $0xf8] sm:$0xff] }
 0x3ac   :  { %v5627_v1 = vpop.f32.mrf.mxu0 }
 0x3ad   :  { %v4427_v6 = vsel %vm4333_vm2, %v9406_v2, 0.0  ;;  %v9422_v1 = vpop.permute.xlu1 %5136 }
 0x3ae   :  { %v4326_v34 = vpop.f32.mrf.mxu0  ;;  %4428 = vadd.xlane.f32.xlu0 %v4427_v6  ;;  %9953 = vst [vmem:[#allocation40_spill] sm:$0xff] %v9422_v1  ;;  %v9428_v6 = vpop.permute.xlu0 %5151 }
 0x3af   :  { %v9414_v38 = vadd.f32 %v4326_v34, %v4158_v13  ;;  %9954 = vst [vmem:[#allocation41_spill] sm:$0xff] %v9428_v6 }
 0x3b0   :  { %v5630_v10 = vpop.f32.mrf.mxu0 }
 0x3b1   :  { %v4430_v4 = vsel %vm4333_vm2, %v9414_v38, 0.0  ;;  %v9430_v34 = vpop.permute.xlu1 %5146 }
 0x3b2   :  { %v4329_v55 = vpop.f32.mrf.mxu0  ;;  %4431 = vadd.xlane.f32.xlu1 %v4430_v4  ;;  %9955 = vst [vmem:[#allocation42_spill] sm:$0xff] %v9430_v34  ;;  %v9432_v10 = vpop.permute.xlu0 %5161 }
 0x3b3   :  { %v9424_v18 = vadd.f32 %v4329_v55, %v4161_v31  ;;  %9956 = vst [vmem:[#allocation43_spill] sm:$0xff] %v9432_v10  ;;  %v5045_v55 = vld [vmem:[%s9910_s4 + $0xf0] sm:$0xff] }
 0x3b4   :  { %v5631_v24 = vpop.f32.mrf.mxu0 }
 0x3b5   :  { %v4433_v13 = vsel %vm4333_vm2, %v9424_v18, 0.0  ;;  %v9434_v48 = vpop.permute.xlu1 %5156 }
 0x3b6   :  { %4434 = vadd.xlane.f32.xlu0 %v4433_v13  ;;  %9957 = vst [vmem:[#allocation44_spill] sm:$0xff] %v9434_v48  ;;  %v9439_v31 = vpop.permute.xlu0 %5171 }
 0x3b7   :  { %9958 = vst [vmem:[#allocation45_spill] sm:$0xff] %v9439_v31 }
 0x3b9   :  { %v9441_v4 = vpop.permute.xlu1 %5166 }
 0x3ba   :  { %9959 = vst [vmem:[#allocation46_spill] sm:$0xff] %v9441_v4  ;;  %v9446_v24 = vpop.permute.xlu0 %5181 }
 0x3bb   :  { %9960 = vst [vmem:[#allocation47_spill] sm:$0xff] %v9446_v24 }
 0x3bd   :  { %v9448_v13 = vpop.permute.xlu1 %5176 }
 0x3be   :  { %9961 = vst [vmem:[#allocation48_spill] sm:$0xff] %v9448_v13  ;;  %v9450_v10 = vpop.permute.xlu0 %5191 }
 0x3bf   :  { %9962 = vst [vmem:[#allocation49_spill] sm:$0xff] %v9450_v10 }
 0x3c1   :  { %v9452_v48 = vpop.permute.xlu1 %5186 }
 0x3c2   :  { %9963 = vst [vmem:[#allocation50_spill] sm:$0xff] %v9452_v48  ;;  %v4336_v6 = vpop.xlane.xlu0 %4335 }
 0x3c3   :  { %5206 = vperm.xlu1 %5668, %v5046_v22   ;;  %v4437_v31 = vmul.f32 0.020408163, %v4336_v6 }
 0x3c5   :  { %v9454_v34 = vpop.permute.xlu1 %5196  ;;  %v9457_v49 = vsub.f32 %v9093_v56, %v4437_v31 }
 0x3c6   :  { %9964 = vst [vmem:[#allocation51_spill] sm:$0xff] %v9454_v34  ;;  %v4342_v22 = vpop.xlane.xlu0 %4341 }
 0x3c7   :  { %v4439_v37 = vmul.f32 0.020408163, %v4342_v22  ;;  %v4505_v6 = vmul.f32 %v9457_v49, %v9457_v49 }
 0x3c9   :  { %v4339_v1 = vpop.xlane.xlu1 %4338  ;;  %v9463_v10 = vsub.f32 %v9112_v42, %v4439_v37  ;;  %v4539_v42 = vsel %vm4333_vm2, %v4505_v6, 0.0 }
 0x3ca   :  { %v4438_v4 = vmul.f32 0.020408163, %v4339_v1  ;;  %v4345_v47 = vpop.xlane.xlu0 %4344 }
 0x3cb   :  { %v4507_v37 = vmul.f32 %v9463_v10, %v9463_v10 }
 0x3cc   :  { %5201 = vperm.xlu0 %5667, %v5045_v55   ;;  %v9460_v13 = vsub.f32 %v9102_v39, %v4438_v4  ;;  %v4440_v55 = vmul.f32 0.020408163, %v4345_v47 }
 0x3cd   :  { %v4348_v24 = vpop.xlane.xlu1 %4347  ;;  %v4545_v6 = vsel %vm4333_vm2, %v4507_v37, 0.0 }
 0x3ce   :  { %v4441_v48 = vmul.f32 0.020408163, %v4348_v24  ;;  %v9468_v1 = vsub.f32 %v9124_v40, %v4440_v55  ;;  %v4506_v31 = vmul.f32 %v9460_v13, %v9460_v13 }
 0x3cf   :  { %v4351_v43 = vpop.xlane.xlu0 %4350 }
 0x3d0   :  { %v4442_v56 = vmul.f32 0.020408163, %v4351_v43  ;;  %v9473_v39 = vsub.f32 %v9134_v33, %v4441_v48  ;;  %v4542_v43 = vsel %vm4333_vm2, %v4506_v31, 0.0  ;;  %v4508_v55 = vmul.f32 %v9468_v1, %v9468_v1 }
 0x3d2   :  { %v9479_v22 = vsub.f32 %v9144_v46, %v4442_v56  ;;  %v4509_v19 = vmul.f32 %v9473_v39, %v9473_v39  ;;  %v4548_v31 = vsel %vm4333_vm2, %v4508_v55, 0.0 }
 0x3d3   :  { %v4354_v34 = vpop.xlane.xlu1 %4353 }
 0x3d4   :  { %v4443_v47 = vmul.f32 0.020408163, %v4354_v34 }
 0x3d6   :  { %v9485_v33 = vsub.f32 %v9156_v11, %v4443_v47  ;;  %v4510_v11 = vmul.f32 %v9479_v22, %v9479_v22 }
 0x3d7   :  { %v4357_v4 = vpop.xlane.xlu0 %4356 }
 0x3d8   :  { %v4444_v40 = vmul.f32 0.020408163, %v4357_v4  ;;  %v4554_v55 = vsel %vm4333_vm2, %v4510_v11, 0.0 }
 0x3da   :  { %v9491_v46 = vsub.f32 %v9166_v45, %v4444_v40 }
 0x3db   :  { %v4360_v24 = vpop.xlane.xlu1 %4359 }
 0x3dc   :  { %v4445_v34 = vmul.f32 0.020408163, %v4360_v24  ;;  %v4551_v24 = vsel %vm4333_vm2, %v4509_v19, 0.0 }
 0x3de   :  { %v9497_v47 = vsub.f32 %v9176_v9, %v4445_v34  ;;  %v4512_v9 = vmul.f32 %v9491_v46, %v9491_v46 }
 0x3df   :  { %v4363_v48 = vpop.xlane.xlu0 %4362 }
 0x3e0   :  { %v4446_v56 = vmul.f32 0.020408163, %v4363_v48  ;;  %v4560_v11 = vsel %vm4333_vm2, %v4512_v9, 0.0 }
 0x3e2   :  { %v9503_v45 = vsub.f32 %v9188_v20, %v4446_v56 }
 0x3e7   :  { %4540 = vadd.xlane.f32.xlu1 %v4539_v42  ;;  %v4366_v42 = vpop.xlane.xlu1 %4365  ;;  %v4369_v37 = vpop.xlane.xlu0 %4368 }
 0x3e8   :  { %v4447_v4 = vmul.f32 0.020408163, %v4366_v42  ;;  %v4448_v40 = vmul.f32 0.020408163, %v4369_v37 }
 0x3ea   :  { %v9509_v34 = vsub.f32 %v9198_v32, %v4447_v4  ;;  %v9515_v20 = vsub.f32 %v9208_v58, %v4448_v40  ;;  %v4514_v32 = vmul.f32 %v9503_v45, %v9503_v45 }
 0x3eb   :  { %4543 = vadd.xlane.f32.xlu0 %v4542_v43  ;;  %4546 = vadd.xlane.f32.xlu1 %v4545_v6  ;;  %v4511_v43 = vmul.f32 %v9485_v33, %v9485_v33  ;;  %v4372_v6 = vpop.xlane.xlu1 %4371 }
 0x3ec   :  { %v4449_v48 = vmul.f32 0.020408163, %v4372_v6  ;;  %v4515_v6 = vmul.f32 %v9509_v34, %v9509_v34  ;;  %v4566_v40 = vsel %vm4333_vm2, %v4514_v32, 0.0  ;;  %v4516_v9 = vmul.f32 %v9515_v20, %v9515_v20 }
 0x3ed   :  { %v4557_v42 = vsel %vm4333_vm2, %v4511_v43, 0.0 }
 0x3ee   :  { %v9521_v4 = vsub.f32 %v9220_v29, %v4449_v48 }
 0x3ef   :  { %4552 = vadd.xlane.f32.xlu1 %v4551_v24  ;;  %4549 = vadd.xlane.f32.xlu0 %v4548_v31  ;;  %v4375_v19 = vpop.xlane.xlu0 %4374  ;;  %v4513_v24 = vmul.f32 %v9497_v47, %v9497_v47 }
 0x3f0   :  { %v4450_v56 = vmul.f32 0.020408163, %v4375_v19  ;;  %v4569_v19 = vsel %vm4333_vm2, %v4515_v6, 0.0 }
 0x3f1   :  { %v4563_v43 = vsel %vm4333_vm2, %v4513_v24, 0.0 }
 0x3f2   :  { %v9527_v58 = vsub.f32 %v9230_v7, %v4450_v56  ;;  %v4572_v7 = vsel %vm4333_vm2, %v4516_v9, 0.0 }
 0x3f3   :  { %v4378_v31 = vpop.xlane.xlu1 %4377  ;;  %4558 = vadd.xlane.f32.xlu1 %v4557_v42  ;;  %4555 = vadd.xlane.f32.xlu0 %v4554_v55  ;;  %v4517_v42 = vmul.f32 %v9521_v4, %v9521_v4 }
 0x3f4   :  { %v4451_v37 = vmul.f32 0.020408163, %v4378_v31  ;;  %v4518_v56 = vmul.f32 %v9527_v58, %v9527_v58 }
 0x3f5   :  { %v4575_v32 = vsel %vm4333_vm2, %v4517_v42, 0.0 }
 0x3f6   :  { %v9533_v29 = vsub.f32 %v9240_v3, %v4451_v37 }
 0x3f7   :  { %4564 = vadd.xlane.f32.xlu1 %v4563_v43  ;;  %4561 = vadd.xlane.f32.xlu0 %v4560_v11  ;;  %v4381_v55 = vpop.xlane.xlu0 %4380 }
 0x3f8   :  { %v4452_v48 = vmul.f32 0.020408163, %v4381_v55  ;;  %v4519_v37 = vmul.f32 %v9533_v29, %v9533_v29  ;;  %v4578_v55 = vsel %vm4333_vm2, %v4518_v56, 0.0 }
 0x3fa   :  { %v9542_v11 = vsub.f32 %v9252_v54, %v4452_v48  ;;  %v4581_v54 = vsel %vm4333_vm2, %v4519_v37, 0.0 }
 0x3fb   :  { %v4384_v24 = vpop.xlane.xlu1 %4383  ;;  %4570 = vadd.xlane.f32.xlu1 %v4569_v19  ;;  %4567 = vadd.xlane.f32.xlu0 %v4566_v40 }
 0x3fc   :  { %v4453_v31 = vmul.f32 0.020408163, %v4384_v24  ;;  %v4520_v9 = vmul.f32 %v9542_v11, %v9542_v11 }
 0x3fe   :  { %v9545_v3 = vsub.f32 %v9262_v63, %v4453_v31 }
 0x3ff   :  { %4576 = vadd.xlane.f32.xlu1 %v4575_v32  ;;  %4573 = vadd.xlane.f32.xlu0 %v4572_v7  ;;  %v4387_v43 = vpop.xlane.xlu0 %4386 }
 0x400   :  { %v4454_v6 = vmul.f32 0.020408163, %v4387_v43  ;;  %v4521_v63 = vmul.f32 %v9545_v3, %v9545_v3 }
 0x402   :  { %v9552_v40 = vsub.f32 %v9272_v59, %v4454_v6  ;;  %v4587_v24 = vsel %vm4333_vm2, %v4521_v63, 0.0  ;;  %v4584_v59 = vsel %vm4333_vm2, %v4520_v9, 0.0 }
 0x403   :  { %v4390_v48 = vpop.xlane.xlu1 %4389  ;;  %4582 = vadd.xlane.f32.xlu1 %v4581_v54  ;;  %4579 = vadd.xlane.f32.xlu0 %v4578_v55 }
 0x404   :  { %v4455_v19 = vmul.f32 0.020408163, %v4390_v48  ;;  %v4522_v31 = vmul.f32 %v9552_v40, %v9552_v40 }
 0x406   :  { %v9560_v42 = vsub.f32 %v9284_v53, %v4455_v19  ;;  %v4590_v43 = vsel %vm4333_vm2, %v4522_v31, 0.0 }
 0x407   :  { %4588 = vadd.xlane.f32.xlu1 %v4587_v24  ;;  %4585 = vadd.xlane.f32.xlu0 %v4584_v59  ;;  %v4393_v7 = vpop.xlane.xlu0 %4392 }
 0x408   :  { %v4456_v56 = vmul.f32 0.020408163, %v4393_v7  ;;  %v4523_v32 = vmul.f32 %v9560_v42, %v9560_v42 }
 0x40a   :  { %v9569_v37 = vsub.f32 %v9294_v5, %v4456_v56  ;;  %v4593_v53 = vsel %vm4333_vm2, %v4523_v32, 0.0 }
 0x40b   :  { %v4396_v6 = vpop.xlane.xlu1 %4395  ;;  %4594 = vadd.xlane.f32.xlu1 %v4593_v53  ;;  %4591 = vadd.xlane.f32.xlu0 %v4590_v43 }
 0x40c   :  { %v4457_v55 = vmul.f32 0.020408163, %v4396_v6  ;;  %v4524_v54 = vmul.f32 %v9569_v37, %v9569_v37 }
 0x40e   :  { %v9576_v63 = vsub.f32 %v9304_v44, %v4457_v55  ;;  %v4596_v9 = vsel %vm4333_vm2, %v4524_v54, 0.0 }
 0x40f   :  { %4597 = vadd.xlane.f32.xlu0 %v4596_v9  ;;  %v4399_v48 = vpop.xlane.xlu0 %4398 }
 0x410   :  { %v4458_v5 = vmul.f32 0.020408163, %v4399_v48  ;;  %v4525_v19 = vmul.f32 %v9576_v63, %v9576_v63 }
 0x412   :  { %v9582_v24 = vsub.f32 %v9316_v28, %v4458_v5  ;;  %v4599_v59 = vsel %vm4333_vm2, %v4525_v19, 0.0 }
 0x413   :  { %v4402_v31 = vpop.xlane.xlu1 %4401  ;;  %4600 = vadd.xlane.f32.xlu1 %v4599_v59 }
 0x414   :  { %v4459_v7 = vmul.f32 0.020408163, %v4402_v31  ;;  %v4526_v44 = vmul.f32 %v9582_v24, %v9582_v24 }
 0x416   :  { %v9588_v56 = vsub.f32 %v9326_v52, %v4459_v7  ;;  %v4602_v32 = vsel %vm4333_vm2, %v4526_v44, 0.0 }
 0x417   :  { %4603 = vadd.xlane.f32.xlu0 %v4602_v32  ;;  %v4405_v53 = vpop.xlane.xlu0 %4404 }
 0x418   :  { %v4460_v43 = vmul.f32 0.020408163, %v4405_v53  ;;  %v4527_v28 = vmul.f32 %v9588_v56, %v9588_v56 }
 0x41a   :  { %v9594_v6 = vsub.f32 %v9336_v41, %v4460_v43  ;;  %v4605_v55 = vsel %vm4333_vm2, %v4527_v28, 0.0 }
 0x41b   :  { %v4408_v54 = vpop.xlane.xlu1 %4407  ;;  %4606 = vadd.xlane.f32.xlu1 %v4605_v55 }
 0x41c   :  { %v4461_v9 = vmul.f32 0.020408163, %v4408_v54  ;;  %v4528_v52 = vmul.f32 %v9594_v6, %v9594_v6 }
 0x41e   :  { %v9600_v48 = vsub.f32 %v9346_v50, %v4461_v9  ;;  %v4608_v5 = vsel %vm4333_vm2, %v4528_v52, 0.0 }
 0x41f   :  { %4609 = vadd.xlane.f32.xlu0 %v4608_v5  ;;  %v4411_v19 = vpop.xlane.xlu0 %4410 }
 0x420   :  { %v4462_v59 = vmul.f32 0.020408163, %v4411_v19  ;;  %v4529_v41 = vmul.f32 %v9600_v48, %v9600_v48 }
 0x422   :  { %v9606_v31 = vsub.f32 %v9354_v17, %v4462_v59  ;;  %v4611_v7 = vsel %vm4333_vm2, %v4529_v41, 0.0 }
 0x423   :  { %v4414_v44 = vpop.xlane.xlu1 %4413  ;;  %4612 = vadd.xlane.f32.xlu1 %v4611_v7 }
 0x424   :  { %v4463_v32 = vmul.f32 0.020408163, %v4414_v44  ;;  %v4530_v50 = vmul.f32 %v9606_v31, %v9606_v31 }
 0x426   :  { %v9612_v53 = vsub.f32 %v9362_v61, %v4463_v32  ;;  %v4614_v43 = vsel %vm4333_vm2, %v4530_v50, 0.0 }
 0x427   :  { %4615 = vadd.xlane.f32.xlu0 %v4614_v43  ;;  %v4417_v28 = vpop.xlane.xlu0 %4416 }
 0x428   :  { %v4464_v55 = vmul.f32 0.020408163, %v4417_v28  ;;  %v4531_v17 = vmul.f32 %v9612_v53, %v9612_v53 }
 0x42a   :  { %v9618_v54 = vsub.f32 %v9372_v62, %v4464_v55  ;;  %v4617_v9 = vsel %vm4333_vm2, %v4531_v17, 0.0 }
 0x42b   :  { %v4420_v52 = vpop.xlane.xlu1 %4419  ;;  %4618 = vadd.xlane.f32.xlu1 %v4617_v9 }
 0x42c   :  { %v4465_v5 = vmul.f32 0.020408163, %v4420_v52  ;;  %v4532_v61 = vmul.f32 %v9618_v54, %v9618_v54 }
 0x42e   :  { %v9624_v19 = vsub.f32 %v9380_v15, %v4465_v5  ;;  %v4620_v59 = vsel %vm4333_vm2, %v4532_v61, 0.0 }
 0x42f   :  { %4621 = vadd.xlane.f32.xlu0 %v4620_v59  ;;  %v4423_v41 = vpop.xlane.xlu0 %4422 }
 0x430   :  { %v4466_v7 = vmul.f32 0.020408163, %v4423_v41  ;;  %v4533_v62 = vmul.f32 %v9624_v19, %v9624_v19 }
 0x432   :  { %v9630_v44 = vsub.f32 %v9388_v0, %v4466_v7  ;;  %v4623_v32 = vsel %vm4333_vm2, %v4533_v62, 0.0 }
 0x433   :  { %v4426_v50 = vpop.xlane.xlu1 %4425  ;;  %4624 = vadd.xlane.f32.xlu1 %v4623_v32 }
 0x434   :  { %v4467_v43 = vmul.f32 0.020408163, %v4426_v50  ;;  %v4534_v15 = vmul.f32 %v9630_v44, %v9630_v44 }
 0x436   :  { %v9636_v28 = vsub.f32 %v9398_v57, %v4467_v43  ;;  %v4626_v55 = vsel %vm4333_vm2, %v4534_v15, 0.0 }
 0x437   :  { %4627 = vadd.xlane.f32.xlu0 %v4626_v55  ;;  %v4429_v17 = vpop.xlane.xlu0 %4428  ;;  %v5048_v55 = vld [vmem:[%s9910_s4 + $0x108] sm:$0xff] }
 0x438   :  { %v4468_v9 = vmul.f32 0.020408163, %v4429_v17  ;;  %v4535_v0 = vmul.f32 %v9636_v28, %v9636_v28  ;;  %v5047_v17 = vld [vmem:[%s9910_s4 + $0x100] sm:$0xff] }
 0x43a   :  { %v9642_v52 = vsub.f32 %v9406_v2, %v4468_v9  ;;  %v4629_v5 = vsel %vm4333_vm2, %v4535_v0, 0.0 }
 0x43b   :  { %v4432_v61 = vpop.xlane.xlu1 %4431  ;;  %4630 = vadd.xlane.f32.xlu1 %v4629_v5 }
 0x43c   :  { %9965 = vst [vmem:[#allocation52_spill] sm:$0xff] %v9642_v52  ;;  %v4469_v59 = vmul.f32 0.020408163, %v4432_v61  ;;  %v4536_v57 = vmul.f32 %v9642_v52, %v9642_v52 }
 0x43e   :  { %v9648_v41 = vsub.f32 %v9414_v38, %v4469_v59  ;;  %v4632_v7 = vsel %vm4333_vm2, %v4536_v57, 0.0 }
 0x43f   :  { %4633 = vadd.xlane.f32.xlu0 %v4632_v7  ;;  %v4435_v62 = vpop.xlane.xlu0 %4434 }
 0x440   :  { %9966 = vst [vmem:[#allocation53_spill] sm:$0xff] %v9648_v41  ;;  %v4470_v32 = vmul.f32 0.020408163, %v4435_v62  ;;  %v4537_v2 = vmul.f32 %v9648_v41, %v9648_v41 }
 0x442   :  { %v9654_v50 = vsub.f32 %v9424_v18, %v4470_v32  ;;  %v4635_v43 = vsel %vm4333_vm2, %v4537_v2, 0.0  ;;  %v9666_v18 = vpop.permute.xlu1 %5206 }
 0x443   :  { %4636 = vadd.xlane.f32.xlu1 %v4635_v43  ;;  %9968 = vst [vmem:[#allocation55_spill] sm:$0xff] %v9666_v18 }
 0x444   :  { %9967 = vst [vmem:[#allocation54_spill] sm:$0xff] %v9654_v50  ;;  %v4538_v15 = vmul.f32 %v9654_v50, %v9654_v50 }
 0x446   :  { %v4638_v38 = vsel %vm4333_vm2, %v4538_v15, 0.0 }
 0x447   :  { %4639 = vadd.xlane.f32.xlu0 %v4638_v38  ;;  %v9668_v9 = vpop.permute.xlu0 %5201 }
 0x448   :  { %9969 = vst [vmem:[#allocation56_spill] sm:$0xff] %v9668_v9 }
 0x454   :  { %5216 = vperm.xlu1 %5668, %v5048_v55  }
 0x45d   :  { %5211 = vperm.xlu0 %5667, %v5047_v17  }
 0x470   :  { %v4541_v0 = vpop.xlane.xlu1 %4540 }
 0x471   :  { %v4641_v5 = vmul.f32 0.020408163, %v4541_v0 }
 0x473   :  { %v4675_v61 = vadd.f32 1e-05, %v4641_v5 }
 0x474   :  { %v4547_v59 = vpop.xlane.xlu1 %4546  ;;  %v4544_v57 = vpop.xlane.xlu0 %4543 }
 0x475   :  { %5992 = vrsqrt.f32 %v4675_v61  ;;  %v4643_v7 = vmul.f32 0.020408163, %v4547_v59  ;;  %v4642_v62 = vmul.f32 0.020408163, %v4544_v57 }
 0x477   :  { %v4677_v32 = vadd.f32 1e-05, %v4643_v7  ;;  %v4676_v2 = vadd.f32 1e-05, %v4642_v62 }
 0x478   :  { %v4553_v43 = vpop.xlane.xlu1 %4552  ;;  %v4550_v15 = vpop.xlane.xlu0 %4549 }
 0x479   :  { %5994 = vrsqrt.f32 %v4677_v32  ;;  %v4645_v38 = vmul.f32 0.020408163, %v4553_v43  ;;  %v4644_v55 = vmul.f32 0.020408163, %v4550_v15 }
 0x47a   :  { %5996 = vrsqrt.f32 %v4676_v2 }
 0x47b   :  { %v4679_v17 = vadd.f32 1e-05, %v4645_v38  ;;  %v4678_v50 = vadd.f32 1e-05, %v4644_v55 }
 0x47c   :  { %v4559_v41 = vpop.xlane.xlu1 %4558  ;;  %v4556_v18 = vpop.xlane.xlu0 %4555 }
 0x47d   :  { %5998 = vrsqrt.f32 %v4679_v17  ;;  %v4647_v0 = vmul.f32 0.020408163, %v4559_v41  ;;  %v4646_v5 = vmul.f32 0.020408163, %v4556_v18 }
 0x47e   :  { %6000 = vrsqrt.f32 %v4678_v50 }
 0x47f   :  { %v4681_v52 = vadd.f32 1e-05, %v4647_v0  ;;  %v4680_v61 = vadd.f32 1e-05, %v4646_v5 }
 0x480   :  { %v4565_v59 = vpop.xlane.xlu1 %4564  ;;  %v4562_v57 = vpop.xlane.xlu0 %4561 }
 0x481   :  { %6002 = vrsqrt.f32 %v4681_v52  ;;  %v4649_v7 = vmul.f32 0.020408163, %v4565_v59  ;;  %v4648_v62 = vmul.f32 0.020408163, %v4562_v57 }
 0x482   :  { %v5993_v9 = vpop.eup %5992  ;;  %6004 = vrsqrt.f32 %v4680_v61 }
 0x483   :  { %v4743_v32 = vmul.f32 %v5993_v9, %v9457_v49  ;;  %v4683_v2 = vadd.f32 1e-05, %v4649_v7  ;;  %v4682_v43 = vadd.f32 1e-05, %v4648_v62 }
 0x484   :  { %v4571_v15 = vpop.xlane.xlu1 %4570  ;;  %v4568_v38 = vpop.xlane.xlu0 %4567 }
 0x485   :  { %v4981_v55 = vmul.f32 %v9050_v35, %v4743_v32  ;;  %6006 = vrsqrt.f32 %v4683_v2  ;;  %v4651_v41 = vmul.f32 0.020408163, %v4571_v15  ;;  %v4650_v50 = vmul.f32 0.020408163, %v4568_v38 }
 0x486   :  { %v5995_v18 = vpop.eup %5994  ;;  %6008 = vrsqrt.f32 %v4682_v43 }
 0x487   :  { %v5997_v17 = vpop.eup %5996  ;;  %v5219_v52 = vadd.f32 %v9292_v21, %v4981_v55  ;;  %v4745_v0 = vmul.f32 %v5995_v18, %v9463_v10  ;;  %v4685_v5 = vadd.f32 1e-05, %v4651_v41  ;;  %v4684_v61 = vadd.f32 1e-05, %v4650_v50 }
 0x488   :  { %v4744_v49 = vmul.f32 %v5997_v17, %v9460_v13  ;;  %v4577_v9 = vpop.xlane.xlu1 %4576  ;;  %v4574_v59 = vpop.xlane.xlu0 %4573 }
 0x489   :  { %5253 = vst.msk [vmem:[%s9911_s5] sm:$0xff] %vm4333_vm2, %v5219_v52  ;;  %v4983_v35 = vmul.f32 %v9060_v16, %v4745_v0  ;;  %6010 = vrsqrt.f32 %v4685_v5  ;;  %v4653_v57 = vmul.f32 0.020408163, %v4577_v9  ;;  %v4652_v7 = vmul.f32 0.020408163, %v4574_v59 }
 0x48a   :  { %v5999_v62 = vpop.eup %5998  ;;  %v4982_v21 = vmul.f32 %v9056_v25, %v4744_v49  ;;  %6012 = vrsqrt.f32 %v4684_v61 }
 0x48b   :  { %v6001_v10 = vpop.eup %6000  ;;  %v5221_v32 = vadd.f32 %v9306_v26, %v4983_v35  ;;  %v4747_v13 = vmul.f32 %v5999_v62, %v9473_v39  ;;  %v4687_v2 = vadd.f32 1e-05, %v4653_v57  ;;  %v4686_v43 = vadd.f32 1e-05, %v4652_v7  ;;  %v9970_v39 = vld [vmem:[#allocation31_spill] sm:$0xff] }
 0x48c   :  { %v5220_v15 = vadd.f32 %v9314_v27, %v4982_v21  ;;  %v4746_v38 = vmul.f32 %v6001_v10, %v9468_v1  ;;  %v4583_v55 = vpop.xlane.xlu1 %4582  ;;  %v4580_v16 = vpop.xlane.xlu0 %4579 }
 0x48d   :  { %5255 = vst.msk [vmem:[%s9911_s5 + $0x10] sm:$0xff] %vm4333_vm2, %v5221_v32  ;;  %v4985_v25 = vmul.f32 %v9066_v12, %v4747_v13  ;;  %6014 = vrsqrt.f32 %v4687_v2  ;;  %v4655_v41 = vmul.f32 0.020408163, %v4583_v55  ;;  %v4654_v26 = vmul.f32 0.020408163, %v4580_v16  ;;  %v9971_v12 = vld [vmem:[#allocation32_spill] sm:$0xff] }
 0x48e   :  { %v6003_v50 = vpop.eup %6002  ;;  %5254 = vst.msk [vmem:[%s9911_s5 + $0x8] sm:$0xff] %vm4333_vm2, %v5220_v15  ;;  %v4984_v27 = vmul.f32 %v9070_v36, %v4746_v38  ;;  %6016 = vrsqrt.f32 %v4686_v43  ;;  %v9972_v36 = vld [vmem:[#allocation2_spill] sm:$0xff]  ;;  %v9974_v55 = vld [vmem:[#allocation4_spill] sm:$0xff] }
 0x48f   :  { %v6005_v1 = vpop.eup %6004  ;;  %v5223_v18 = vadd.f32 %v9970_v39, %v4985_v25  ;;  %v4749_v17 = vmul.f32 %v6003_v50, %v9485_v33  ;;  %v4689_v52 = vadd.f32 1e-05, %v4655_v41  ;;  %v4688_v0 = vadd.f32 1e-05, %v4654_v26  ;;  %v9973_v33 = vld [vmem:[#allocation3_spill] sm:$0xff] }
 0x490   :  { %v5222_v5 = vadd.f32 %v9971_v12, %v4984_v27  ;;  %v4748_v61 = vmul.f32 %v6005_v1, %v9479_v22  ;;  %v4589_v49 = vpop.xlane.xlu1 %4588  ;;  %v4586_v9 = vpop.xlane.xlu0 %4585 }
 0x491   :  { %5257 = vst.msk [vmem:[%s9911_s5 + $0x20] sm:$0xff] %vm4333_vm2, %v5223_v18  ;;  %v4987_v59 = vmul.f32 %v9972_v36, %v4749_v17  ;;  %6018 = vrsqrt.f32 %v4689_v52  ;;  %v4657_v35 = vmul.f32 0.020408163, %v4589_v49  ;;  %v4656_v57 = vmul.f32 0.020408163, %v4586_v9  ;;  %v9976_v52 = vld [vmem:[#allocation6_spill] sm:$0xff] }
 0x492   :  { %v6007_v7 = vpop.eup %6006  ;;  %5256 = vst.msk [vmem:[%s9911_s5 + $0x18] sm:$0xff] %vm4333_vm2, %v5222_v5  ;;  %v4986_v22 = vmul.f32 %v9973_v33, %v4748_v61  ;;  %6020 = vrsqrt.f32 %v4688_v0  ;;  %v9978_v9 = vld [vmem:[#allocation33_spill] sm:$0xff] }
 0x493   :  { %v6009_v62 = vpop.eup %6008  ;;  %v5225_v21 = vadd.f32 %v9338_v23, %v4987_v59  ;;  %v4751_v10 = vmul.f32 %v6007_v7, %v9497_v47  ;;  %v4691_v32 = vadd.f32 1e-05, %v4657_v35  ;;  %v4690_v13 = vadd.f32 1e-05, %v4656_v57  ;;  %v9979_v57 = vld [vmem:[#allocation8_spill] sm:$0xff] }
 0x494   :  { %v5224_v2 = vadd.f32 %v9344_v8, %v4986_v22  ;;  %v4750_v43 = vmul.f32 %v6009_v62, %v9491_v46  ;;  %v4595_v15 = vpop.xlane.xlu1 %4594  ;;  %v4592_v38 = vpop.xlane.xlu0 %4591  ;;  %v9975_v8 = vld [vmem:[#allocation5_spill] sm:$0xff] }
 0x495   :  { %5259 = vst.msk [vmem:[%s9911_s5 + $0x30] sm:$0xff] %vm4333_vm2, %v5225_v21  ;;  %v4989_v16 = vmul.f32 %v9974_v55, %v4751_v10  ;;  %6022 = vrsqrt.f32 %v4691_v32  ;;  %v4659_v25 = vmul.f32 0.020408163, %v4595_v15  ;;  %v4658_v23 = vmul.f32 0.020408163, %v4592_v38  ;;  %v9981_v32 = vld [vmem:[#allocation34_spill] sm:$0xff] }
 0x496   :  { %v6011_v41 = vpop.eup %6010  ;;  %5258 = vst.msk [vmem:[%s9911_s5 + $0x28] sm:$0xff] %vm4333_vm2, %v5224_v2  ;;  %v4988_v46 = vmul.f32 %v9975_v8, %v4750_v43  ;;  %6024 = vrsqrt.f32 %v4690_v13  ;;  %v9982_v15 = vld [vmem:[#allocation10_spill] sm:$0xff] }
 0x497   :  { %v6013_v47 = vpop.eup %6012  ;;  %v5227_v26 = vadd.f32 %v9352_v30, %v4989_v16  ;;  %v4753_v50 = vmul.f32 %v6011_v41, %v9509_v34  ;;  %v4693_v27 = vadd.f32 1e-05, %v4659_v25  ;;  %v4692_v1 = vadd.f32 1e-05, %v4658_v23  ;;  %v9977_v30 = vld [vmem:[#allocation7_spill] sm:$0xff] }
 0x498   :  { %v5226_v39 = vadd.f32 %v9356_v60, %v4988_v46  ;;  %v4752_v18 = vmul.f32 %v6013_v47, %v9503_v45  ;;  %v4598_v17 = vpop.xlane.xlu0 %4597  ;;  %v9985_v46 = vld [vmem:[#allocation36_spill] sm:$0xff] }
 0x499   :  { %5261 = vst.msk [vmem:[%s9911_s5 + $0x40] sm:$0xff] %vm4333_vm2, %v5227_v26  ;;  %v4991_v0 = vmul.f32 %v9976_v52, %v4753_v50  ;;  %6026 = vrsqrt.f32 %v4693_v27  ;;  %v4660_v12 = vmul.f32 0.020408163, %v4598_v17  ;;  %v9986_v27 = vld [vmem:[#allocation12_spill] sm:$0xff] }
 0x49a   :  { %v6015_v5 = vpop.eup %6014  ;;  %5260 = vst.msk [vmem:[%s9911_s5 + $0x38] sm:$0xff] %vm4333_vm2, %v5226_v39  ;;  %v4990_v60 = vmul.f32 %v9977_v30, %v4752_v18  ;;  %6028 = vrsqrt.f32 %v4692_v1  ;;  %v9989_v30 = vld [vmem:[#allocation38_spill] sm:$0xff] }
 0x49b   :  { %v6017_v45 = vpop.eup %6016  ;;  %v5229_v34 = vadd.f32 %v9364_v51, %v4991_v0  ;;  %v4755_v61 = vmul.f32 %v6015_v5, %v9521_v4  ;;  %v4694_v49 = vadd.f32 1e-05, %v4660_v12  ;;  %v9980_v51 = vld [vmem:[#allocation9_spill] sm:$0xff] }
 0x49c   :  { %v5228_v36 = vadd.f32 %v9978_v9, %v4990_v60  ;;  %v4754_v59 = vmul.f32 %v6017_v45, %v9515_v20  ;;  %v4601_v35 = vpop.xlane.xlu1 %4600 }
 0x49d   :  { %5263 = vst.msk [vmem:[%s9911_s5 + $0x50] sm:$0xff] %vm4333_vm2, %v5229_v34  ;;  %v4993_v7 = vmul.f32 %v9979_v57, %v4755_v61  ;;  %6030 = vrsqrt.f32 %v4694_v49  ;;  %v4661_v33 = vmul.f32 0.020408163, %v4601_v35  ;;  %v9990_v61 = vld [vmem:[#allocation14_spill] sm:$0xff]  ;;  %v9992_v35 = vld [vmem:[#allocation39_spill] sm:$0xff] }
 0x49e   :  { %v6019_v22 = vpop.eup %6018  ;;  %5262 = vst.msk [vmem:[%s9911_s5 + $0x48] sm:$0xff] %vm4333_vm2, %v5228_v36  ;;  %v4992_v4 = vmul.f32 %v9980_v51, %v4754_v59 }
 0x49f   :  { %v6021_v62 = vpop.eup %6020  ;;  %v5231_v20 = vadd.f32 %v9378_v14, %v4993_v7  ;;  %v4757_v21 = vmul.f32 %v6019_v22, %v9533_v29  ;;  %v4695_v10 = vadd.f32 1e-05, %v4661_v33  ;;  %v9983_v14 = vld [vmem:[#allocation11_spill] sm:$0xff]  ;;  %v9993_v33 = vld [vmem:[#allocation40_spill] sm:$0xff] }
 0x4a0   :  { %v5230_v13 = vadd.f32 %v9981_v32, %v4992_v4  ;;  %v4756_v2 = vmul.f32 %v6021_v62, %v9527_v58  ;;  %v4604_v43 = vpop.xlane.xlu0 %4603  ;;  %v9984_v58 = vld [vmem:[#allocation35_spill] sm:$0xff]  ;;  %v9994_v4 = vld [vmem:[#allocation17_spill] sm:$0xff] }
 0x4a1   :  { %5265 = vst.msk [vmem:[%s9911_s5 + $0x60] sm:$0xff] %vm4333_vm2, %v5231_v20  ;;  %v4995_v38 = vmul.f32 %v9982_v15, %v4757_v21  ;;  %6032 = vrsqrt.f32 %v4695_v10  ;;  %v4662_v55 = vmul.f32 0.020408163, %v4604_v43  ;;  %v9996_v43 = vld [vmem:[#allocation16_spill] sm:$0xff] }
 0x4a2   :  { %v6023_v16 = vpop.eup %6022  ;;  %5264 = vst.msk [vmem:[%s9911_s5 + $0x58] sm:$0xff] %vm4333_vm2, %v5230_v13  ;;  %v4994_v29 = vmul.f32 %v9983_v14, %v4756_v2 }
 0x4a3   :  { %v6025_v25 = vpop.eup %6024  ;;  %v5233_v23 = vadd.f32 %v9984_v58, %v4995_v38  ;;  %v4759_v41 = vmul.f32 %v6023_v16, %v9545_v3  ;;  %v4696_v8 = vadd.f32 1e-05, %v4662_v55  ;;  %v9987_v3 = vld [vmem:[#allocation13_spill] sm:$0xff] }
 0x4a4   :  { %v5232_v47 = vadd.f32 %v9985_v46, %v4994_v29  ;;  %v4758_v26 = vmul.f32 %v6025_v25, %v9542_v11  ;;  %v4607_v50 = vpop.xlane.xlu1 %4606  ;;  %v9988_v11 = vld [vmem:[#allocation37_spill] sm:$0xff]  ;;  %v9999_v46 = vld [vmem:[#allocation44_spill] sm:$0xff] }
 0x4a5   :  { %5267 = vst.msk [vmem:[%s9911_s5 + $0x70] sm:$0xff] %vm4333_vm2, %v5233_v23  ;;  %v4997_v1 = vmul.f32 %v9986_v27, %v4759_v41  ;;  %6034 = vrsqrt.f32 %v4696_v8  ;;  %v4663_v39 = vmul.f32 0.020408163, %v4607_v50  ;;  %v9997_v16 = vld [vmem:[#allocation41_spill] sm:$0xff] }
 0x4a6   :  { %v6027_v18 = vpop.eup %6026  ;;  %5266 = vst.msk [vmem:[%s9911_s5 + $0x68] sm:$0xff] %vm4333_vm2, %v5232_v47  ;;  %v4996_v17 = vmul.f32 %v9987_v3, %v4758_v26  ;;  %v10001_v3 = vld [vmem:[#allocation43_spill] sm:$0xff] }
 0x4a7   :  { %v6029_v52 = vpop.eup %6028  ;;  %v5235_v0 = vadd.f32 %v9988_v11, %v4997_v1  ;;  %v4761_v12 = vmul.f32 %v6027_v18, %v9560_v42  ;;  %v4697_v5 = vadd.f32 1e-05, %v4663_v39  ;;  %v9991_v42 = vld [vmem:[#allocation15_spill] sm:$0xff] }
 0x4a8   :  { %v5234_v60 = vadd.f32 %v9989_v30, %v4996_v17  ;;  %v4760_v45 = vmul.f32 %v6029_v52, %v9552_v40  ;;  %v4610_v34 = vpop.xlane.xlu0 %4609 }
 0x4a9   :  { %5269 = vst.msk [vmem:[%s9911_s5 + $0x80] sm:$0xff] %vm4333_vm2, %v5235_v0  ;;  %v4999_v49 = vmul.f32 %v9990_v61, %v4761_v12  ;;  %6036 = vrsqrt.f32 %v4697_v5  ;;  %v4664_v9 = vmul.f32 0.020408163, %v4610_v34 }
 0x4aa   :  { %v6031_v36 = vpop.eup %6030  ;;  %5268 = vst.msk [vmem:[%s9911_s5 + $0x78] sm:$0xff] %vm4333_vm2, %v5234_v60  ;;  %v4998_v59 = vmul.f32 %v9991_v42, %v4760_v45  ;;  %v10003_v60 = vld [vmem:[#allocation46_spill] sm:$0xff] }
 0x4ab   :  { %v5237_v40 = vadd.f32 %v9992_v35, %v4999_v49  ;;  %v4762_v57 = vmul.f32 %v6031_v36, %v9569_v37  ;;  %v4698_v7 = vadd.f32 1e-05, %v4664_v9  ;;  %v9995_v37 = vld [vmem:[#allocation42_spill] sm:$0xff] }
 0x4ac   :  { %v5236_v22 = vadd.f32 %v9993_v33, %v4998_v59  ;;  %v4613_v51 = vpop.xlane.xlu1 %4612  ;;  %v10005_v59 = vld [vmem:[#allocation45_spill] sm:$0xff] }
 0x4ad   :  { %5271 = vst.msk [vmem:[%s9911_s5 + $0x90] sm:$0xff] %vm4333_vm2, %v5237_v40  ;;  %v5000_v62 = vmul.f32 %v9994_v4, %v4762_v57  ;;  %6038 = vrsqrt.f32 %v4698_v7  ;;  %v4665_v20 = vmul.f32 0.020408163, %v4613_v51  ;;  %v10007_v4 = vld [vmem:[#allocation48_spill] sm:$0xff] }
 0x4ae   :  { %v6033_v21 = vpop.eup %6032  ;;  %5270 = vst.msk [vmem:[%s9911_s5 + $0x88] sm:$0xff] %vm4333_vm2, %v5236_v22 }
 0x4af   :  { %v5238_v10 = vadd.f32 %v9995_v37, %v5000_v62  ;;  %v4763_v32 = vmul.f32 %v6033_v21, %v9576_v63  ;;  %v4699_v13 = vadd.f32 1e-05, %v4665_v20  ;;  %v9998_v63 = vld [vmem:[#allocation19_spill] sm:$0xff] }
 0x4b0   :  { %v4616_v2 = vpop.xlane.xlu0 %4615 }
 0x4b1   :  { %5272 = vst.msk [vmem:[%s9911_s5 + $0x98] sm:$0xff] %vm4333_vm2, %v5238_v10  ;;  %v5001_v15 = vmul.f32 %v9996_v43, %v4763_v32  ;;  %6040 = vrsqrt.f32 %v4699_v13  ;;  %v4666_v38 = vmul.f32 0.020408163, %v4616_v2  ;;  %v10009_v2 = vld [vmem:[#allocation47_spill] sm:$0xff] }
 0x4b2   :  { %v6035_v55 = vpop.eup %6034 }
 0x4b3   :  { %v5239_v14 = vadd.f32 %v9997_v16, %v5001_v15  ;;  %v4764_v29 = vmul.f32 %v6035_v55, %v9582_v24  ;;  %v4700_v25 = vadd.f32 1e-05, %v4666_v38  ;;  %v10000_v24 = vld [vmem:[#allocation18_spill] sm:$0xff] }
 0x4b4   :  { %v4619_v58 = vpop.xlane.xlu1 %4618 }
 0x4b5   :  { %5273 = vst.msk [vmem:[%s9911_s5 + $0xa0] sm:$0xff] %vm4333_vm2, %v5239_v14  ;;  %v5002_v23 = vmul.f32 %v9998_v63, %v4764_v29  ;;  %6042 = vrsqrt.f32 %v4700_v25  ;;  %v4667_v41 = vmul.f32 0.020408163, %v4619_v58  ;;  %v10011_v25 = vld [vmem:[#allocation50_spill] sm:$0xff] }
 0x4b6   :  { %v6037_v8 = vpop.eup %6036 }
 0x4b7   :  { %v5240_v47 = vadd.f32 %v9999_v46, %v5002_v23  ;;  %v4765_v26 = vmul.f32 %v6037_v8, %v9588_v56  ;;  %v4701_v50 = vadd.f32 1e-05, %v4667_v41  ;;  %v10002_v56 = vld [vmem:[#allocation21_spill] sm:$0xff] }
 0x4b8   :  { %v4622_v27 = vpop.xlane.xlu0 %4621 }
 0x4b9   :  { %5274 = vst.msk [vmem:[%s9911_s5 + $0xa8] sm:$0xff] %vm4333_vm2, %v5240_v47  ;;  %v5003_v1 = vmul.f32 %v10000_v24, %v4765_v26  ;;  %6044 = vrsqrt.f32 %v4701_v50  ;;  %v4668_v39 = vmul.f32 0.020408163, %v4622_v27  ;;  %v10013_v26 = vld [vmem:[#allocation49_spill] sm:$0xff] }
 0x4ba   :  { %v6039_v18 = vpop.eup %6038 }
 0x4bb   :  { %v5241_v17 = vadd.f32 %v10001_v3, %v5003_v1  ;;  %v4766_v52 = vmul.f32 %v6039_v18, %v9594_v6  ;;  %v4702_v11 = vadd.f32 1e-05, %v4668_v39  ;;  %v10004_v6 = vld [vmem:[#allocation20_spill] sm:$0xff]  ;;  %v10015_v18 = vld [vmem:[#allocation51_spill] sm:$0xff] }
 0x4bc   :  { %v4625_v0 = vpop.xlane.xlu1 %4624 }
 0x4bd   :  { %5275 = vst.msk [vmem:[%s9911_s5 + $0xb0] sm:$0xff] %vm4333_vm2, %v5241_v17  ;;  %v5004_v12 = vmul.f32 %v10002_v56, %v4766_v52  ;;  %6046 = vrsqrt.f32 %v4702_v11  ;;  %v4669_v5 = vmul.f32 0.020408163, %v4625_v0  ;;  %v10017_v0 = vld [vmem:[#allocation56_spill] sm:$0xff] }
 0x4be   :  { %v6041_v30 = vpop.eup %6040 }
 0x4bf   :  { %v5242_v45 = vadd.f32 %v10003_v60, %v5004_v12  ;;  %v4767_v34 = vmul.f32 %v6041_v30, %v9600_v48  ;;  %v4703_v61 = vadd.f32 1e-05, %v4669_v5  ;;  %v10006_v48 = vld [vmem:[#allocation23_spill] sm:$0xff]  ;;  %v10018_v12 = vld [vmem:[#allocation52_spill] sm:$0xff]  ;;  %v10019_v30 = vld [vmem:[#allocation29_spill] sm:$0xff] }
 0x4c0   :  { %v4628_v49 = vpop.xlane.xlu0 %4627 }
 0x4c1   :  { %5276 = vst.msk [vmem:[%s9911_s5 + $0xb8] sm:$0xff] %vm4333_vm2, %v5242_v45  ;;  %v5005_v9 = vmul.f32 %v10004_v6, %v4767_v34  ;;  %6048 = vrsqrt.f32 %v4703_v61  ;;  %v4670_v36 = vmul.f32 0.020408163, %v4628_v49  ;;  %v10020_v45 = vld [vmem:[#allocation55_spill] sm:$0xff]  ;;  %v10021_v61 = vld [vmem:[#allocation53_spill] sm:$0xff]  ;;  %v10022_v6 = vld [vmem:[#allocation28_spill] sm:$0xff] }
 0x4c2   :  { %v6043_v42 = vpop.eup %6042 }
 0x4c3   :  { %v5243_v35 = vadd.f32 %v10005_v59, %v5005_v9  ;;  %v4768_v40 = vmul.f32 %v6043_v42, %v9606_v31  ;;  %v4704_v57 = vadd.f32 1e-05, %v4670_v36  ;;  %v10008_v31 = vld [vmem:[#allocation22_spill] sm:$0xff] }
 0x4c4   :  { %v4631_v7 = vpop.xlane.xlu1 %4630  ;;  %v10023_v59 = vld [vmem:[#allocation54_spill] sm:$0xff] }
 0x4c5   :  { %5277 = vst.msk [vmem:[%s9911_s5 + $0xc0] sm:$0xff] %vm4333_vm2, %v5243_v35  ;;  %v5006_v33 = vmul.f32 %v10006_v48, %v4768_v40  ;;  %6050 = vrsqrt.f32 %v4704_v57  ;;  %v4671_v22 = vmul.f32 0.020408163, %v4631_v7  ;;  %v10024_v57 = vld [vmem:[#allocation30_spill] sm:$0xff] }
 0x4c6   :  { %v6045_v51 = vpop.eup %6044 }
 0x4c7   :  { %v5244_v62 = vadd.f32 %v10007_v4, %v5006_v33  ;;  %v4769_v20 = vmul.f32 %v6045_v51, %v9612_v53  ;;  %v4705_v21 = vadd.f32 1e-05, %v4671_v22  ;;  %v10010_v53 = vld [vmem:[#allocation25_spill] sm:$0xff] }
 0x4c8   :  { %v4634_v37 = vpop.xlane.xlu0 %4633 }
 0x4c9   :  { %5278 = vst.msk [vmem:[%s9911_s5 + $0xc8] sm:$0xff] %vm4333_vm2, %v5244_v62  ;;  %v5007_v10 = vmul.f32 %v10008_v31, %v4769_v20  ;;  %6052 = vrsqrt.f32 %v4705_v21  ;;  %v4672_v32 = vmul.f32 0.020408163, %v4634_v37 }
 0x4ca   :  { %v6047_v13 = vpop.eup %6046 }
 0x4cb   :  { %v5245_v43 = vadd.f32 %v10009_v2, %v5007_v10  ;;  %v4770_v15 = vmul.f32 %v6047_v13, %v9618_v54  ;;  %v4706_v38 = vadd.f32 1e-05, %v4672_v32  ;;  %v10012_v54 = vld [vmem:[#allocation24_spill] sm:$0xff] }
 0x4cc   :  { %v4637_v55 = vpop.xlane.xlu1 %4636 }
 0x4cd   :  { %5279 = vst.msk [vmem:[%s9911_s5 + $0xd0] sm:$0xff] %vm4333_vm2, %v5245_v43  ;;  %v5008_v16 = vmul.f32 %v10010_v53, %v4770_v15  ;;  %6054 = vrsqrt.f32 %v4706_v38  ;;  %v4673_v14 = vmul.f32 0.020408163, %v4637_v55 }
 0x4ce   :  { %v6049_v29 = vpop.eup %6048 }
 0x4cf   :  { %v5246_v58 = vadd.f32 %v10011_v25, %v5008_v16  ;;  %v4771_v63 = vmul.f32 %v6049_v29, %v9624_v19  ;;  %v4707_v23 = vadd.f32 1e-05, %v4673_v14  ;;  %v10014_v19 = vld [vmem:[#allocation27_spill] sm:$0xff] }
 0x4d0   :  { %v4640_v41 = vpop.xlane.xlu0 %4639  ;;  %v5217_v48 = vpop.permute.xlu1 %5216 }
 0x4d1   :  { %5280 = vst.msk [vmem:[%s9911_s5 + $0xd8] sm:$0xff] %vm4333_vm2, %v5246_v58  ;;  %v5009_v8 = vmul.f32 %v10012_v54, %v4771_v63  ;;  %6056 = vrsqrt.f32 %v4707_v23  ;;  %v4674_v46 = vmul.f32 0.020408163, %v4640_v41 }
 0x4d2   :  { %v6051_v47 = vpop.eup %6050 }
 0x4d3   :  { %v5247_v50 = vadd.f32 %v10013_v26, %v5009_v8  ;;  %v4772_v27 = vmul.f32 %v6051_v47, %v9630_v44  ;;  %v4708_v24 = vadd.f32 1e-05, %v4674_v46  ;;  %v10016_v44 = vld [vmem:[#allocation26_spill] sm:$0xff] }
 0x4d5   :  { %5281 = vst.msk [vmem:[%s9911_s5 + $0xe0] sm:$0xff] %vm4333_vm2, %v5247_v50  ;;  %v5010_v1 = vmul.f32 %v10014_v19, %v4772_v27  ;;  %6058 = vrsqrt.f32 %v4708_v24 }
 0x4d6   :  { %v6053_v39 = vpop.eup %6052 }
 0x4d7   :  { %v5248_v3 = vadd.f32 %v10015_v18, %v5010_v1  ;;  %v4773_v17 = vmul.f32 %v6053_v39, %v9636_v28 }
 0x4d8   :  { %v5212_v42 = vpop.permute.xlu0 %5211 }
 0x4d9   :  { %5282 = vst.msk [vmem:[%s9911_s5 + $0xe8] sm:$0xff] %vm4333_vm2, %v5248_v3  ;;  %v5011_v52 = vmul.f32 %v10016_v44, %v4773_v17 }
 0x4da   :  { %v6055_v11 = vpop.eup %6054 }
 0x4db   :  { %v5249_v56 = vadd.f32 %v10017_v0, %v5011_v52  ;;  %v4774_v5 = vmul.f32 %v6055_v11, %v10018_v12 }
 0x4dd   :  { %5283 = vst.msk [vmem:[%s9911_s5 + $0xf0] sm:$0xff] %vm4333_vm2, %v5249_v56  ;;  %v5012_v60 = vmul.f32 %v10019_v30, %v4774_v5 }
 0x4de   :  { %v6057_v28 = vpop.eup %6056 }
 0x4df   :  { %v5250_v34 = vadd.f32 %v10020_v45, %v5012_v60  ;;  %v4775_v49 = vmul.f32 %v6057_v28, %v10021_v61 }
 0x4e1   :  { %5284 = vst.msk [vmem:[%s9911_s5 + $0xf8] sm:$0xff] %vm4333_vm2, %v5250_v34  ;;  %v5013_v9 = vmul.f32 %v10022_v6, %v4775_v49 }
 0x4e2   :  { %v6059_v36 = vpop.eup %6058 }
 0x4e3   :  { %v4776_v35 = vmul.f32 %v6059_v36, %v10023_v59  ;;  %v5251_v40 = vadd.f32 %v5212_v42, %v5013_v9 }
 0x4e5   :  { %v5014_v7 = vmul.f32 %v10024_v57, %v4776_v35  ;;  %5285 = vst.msk [vmem:[%s9911_s5 + $0x100] sm:$0xff] %vm4333_vm2, %v5251_v40 }
 0x4e7   :  { %v5252_v33 = vadd.f32 %v5217_v48, %v5014_v7 }
 0x4e9   :  { %5286 = vst.msk [vmem:[%s9911_s5 + $0x108] sm:$0xff] %vm4333_vm2, %v5252_v33 }

</bundles_post_ra>
